<compile_context>
chip_gen: v7x
topology: tpu7x:2x2x1
jax: 0.10.0
libtpu: 0.0.40
codegen_flags: <defaults>
</compile_context>

<pallas_src>
import numpy as np
import jax
import jax.numpy as jnp
from jax.experimental import pallas as pl
from jax.experimental.pallas import tpu as pltpu

KH, KW = 5, 5
C_OUT = 6
POOL = 2
L_OUT = 128  # padded pooled-output lane width -> dense, unmasked vst


def _make_kernel(CW, OH):
    """Kernel for one grid step: NB lane-packed images -> (SR_pad, 128) pooled slab."""

    def kernel(w_ref, b_ref, csel_ref, rsel_ref, x_ref, o_ref):
        x = x_ref[0]                                      # (H, NB*W) images packed on lanes

        # lane-shifted copies, hoisted once and reused by all 25 taps / 6 channels
        xs = [x[:, kj:kj + CW] for kj in range(KW)]       # KW x (H, CW)

        # per-channel conv accumulators (f32), initialised with bias
        accs = [jnp.full((OH, CW), b_ref[c], dtype=jnp.float32) for c in range(C_OUT)]

        # direct 5x5 cross-correlation: one shifted tile per tap, reused by all channels
        for ki in range(KH):
            for kj in range(KW):
                tile = xs[kj][ki:ki + OH, :]              # (OH, CW)
                for c in range(C_OUT):
                    accs[c] = accs[c] + tile * w_ref[c * (KH * KW) + ki * KW + kj]

        # stack channels along sublanes + ReLU
        a = jnp.maximum(jnp.concatenate(accs, axis=0), 0.0)        # (C_OUT*OH, CW)

        # 2x2 max-pool:
        #  1) column neighbour pair-max (VPU), then even-column gather + image repack
        #     via ONE lane-dense selection matmul (csel, hoisted constant).
        #  2) row neighbour pair-max (VPU) on the 128-lane-dense result, then
        #     even-row gather / channel restack via a tiny selection matmul (rsel).
        colp = jnp.maximum(a[:, :CW - 1], a[:, 1:])                 # (C_OUT*OH, CW-1)
        cols = jnp.dot(colp, csel_ref[...],
                       preferred_element_type=jnp.float32)          # (C_OUT*OH, L_OUT)
        rowp = jnp.maximum(cols[:-1, :], cols[1:, :])               # (C_OUT*OH-1, L_OUT)
        pooled = jnp.dot(rsel_ref[...], rowp,
                         preferred_element_type=jnp.float32)        # (SR_pad, L_OUT)

        o_ref[0] = pooled.astype(o_ref.dtype)

    return kernel


def c1_forward(x, weight, bias, *, nb=None):
    """x: (N, 1, H, W) f32; weight: (6, 1, 5, 5) f32; bias: (6,) f32 -> (N, 6, PH, PW)."""
    N, Cin, H, W = x.shape
    assert Cin == 1
    assert H >= KH and W >= KW, "input smaller than conv kernel"
    OH, OW = H - KH + 1, W - KW + 1                  # conv output
    assert OH >= POOL and OW >= POOL, "input too small for 2x2 pooling"
    PH, PW = OH // POOL, OW // POOL                  # pooled output
    assert PW <= L_OUT, "pooled width must fit in one 128-lane slab"
    SR = C_OUT * PH                                  # packed output rows (c*PH + i)
    SR_pad = -(-SR // 8) * 8                         # pad rows to 8 sublanes

    # ---- choose images per grid step ----
    if nb is None:
        nb = max(1, 512 // W)                        # pack up to ~512 input lanes per step
    nb = min(nb, max(1, L_OUT // PW))                # pooled slab must fit 128 lanes
    nb = min(nb, N)
    if N >= 2:
        nb = min(nb, -(-N // 2))                     # keep >= 2 grid steps (v7x: 2 TCs)
    NB = max(1, nb)
    G = -(-N // NB)
    N_pad = G * NB
    NBW = NB * W
    CW = NBW - (KW - 1)                              # packed conv/pool working width
    assert NB * PW <= L_OUT

    # ---- wrapper-side layout: pack NB images along the lane axis ----
    x_sq = x[:, 0].astype(jnp.float32)               # (N, H, W)
    if N_pad > N:
        x_sq = jnp.concatenate(
            [x_sq, jnp.zeros((N_pad - N, H, W), jnp.float32)], axis=0)
    x_pack = x_sq.reshape(G, NB, H, W).transpose(0, 2, 1, 3).reshape(G, H, NBW)

    w_flat = weight.reshape(-1).astype(jnp.float32)  # (C_OUT*KH*KW,) scalars in SMEM
    b_vec = bias.astype(jnp.float32)                 # (C_OUT,) scalars in SMEM

    # ---- constant pooling selectors: built once here, resident in VMEM ----
    # column selector: colp column q = b*W + 2p  ->  output lane b*PW + p
    q = np.arange(CW - 1)[:, None]
    lane = np.arange(L_OUT)[None, :]
    b_idx, p_idx = lane // PW, lane % PW
    csel = ((b_idx < NB) & (q == b_idx * W + 2 * p_idx)).astype(np.float32)   # (CW-1, 128)

    # row selector: rowp row s = c*OH + 2i  ->  output row c*PH + i  (rows >= SR are zero)
    k = np.arange(SR_pad)[:, None]
    s = np.arange(C_OUT * OH - 1)[None, :]
    c_idx, i_idx = k // PH, k % PH
    rsel = ((k < SR) & (s == c_idx * OH + 2 * i_idx)).astype(np.float32)      # (SR_pad, 71)

    csel = jnp.asarray(csel)
    rsel = jnp.asarray(rsel)

    kernel = _make_kernel(CW, OH)

    flops = 2 * N_pad * C_OUT * OH * OW * KH * KW
    bytes_accessed = 4 * (x_pack.size + w_flat.size + b_vec.size
                          + csel.size + rsel.size + G * SR_pad * L_OUT)

    out = pl.pallas_call(
        kernel,
        out_shape=jax.ShapeDtypeStruct((G, SR_pad, L_OUT), jnp.float32),
        grid=(G,),
        in_specs=[
            pl.BlockSpec(memory_space=pltpu.MemorySpace.SMEM),           # conv weights (scalars)
            pl.BlockSpec(memory_space=pltpu.MemorySpace.SMEM),           # bias (scalars)
            pl.BlockSpec((CW - 1, L_OUT), lambda g: (0, 0)),             # csel (resident)
            pl.BlockSpec((SR_pad, C_OUT * OH - 1), lambda g: (0, 0)),    # rsel (resident)
            pl.BlockSpec((1, H, NBW), lambda g: (g, 0, 0)),              # NB packed images
        ],
        out_specs=pl.BlockSpec((1, SR_pad, L_OUT), lambda g: (g, 0, 0)),  # lane-dense slab
        compiler_params=pltpu.CompilerParams(
            dimension_semantics=("parallel",)),
        cost_estimate=pl.CostEstimate(
            flops=flops, transcendentals=0, bytes_accessed=bytes_accessed),
    )(w_flat, b_vec, csel, rsel, x_pack)

    # (G, SR_pad, 128) -> (N, C_OUT, PH, PW)
    o = out[:, :SR, :NB * PW]                                   # (G, C_OUT*PH, NB*PW)
    o = o.reshape(G, C_OUT, PH, NB, PW).transpose(0, 3, 1, 2, 4)
    return o.reshape(G * NB, C_OUT, PH, PW)[:N]


def c1_reference(x, weight, bias):
    y = jax.lax.conv_general_dilated(
        x, weight, window_strides=(1, 1), padding="VALID",
        dimension_numbers=("NCHW", "OIHW", "NCHW"))
    y = y + bias[None, :, None, None]
    y = jnp.maximum(y, 0.0)
    y = jax.lax.reduce_window(y, -jnp.inf, jax.lax.max,
                              (1, 1, POOL, POOL), (1, 1, POOL, POOL), "VALID")
    return y


if __name__ == "__main__":
    key = jax.random.PRNGKey(0)
    kx, kw, kb = jax.random.split(key, 3)

    N, H, W = 8, 16, 16   # small shapes; exercises NB=4 images per step, 2 grid steps
    x = jax.random.normal(kx, (N, 1, H, W), dtype=jnp.float32)
    # deterministic synthetic parameters (shapes from nn.Conv2d(1, 6, kernel_size=(5, 5)))
    weight = 0.1 * jax.random.normal(kw, (C_OUT, 1, KH, KW), dtype=jnp.float32)
    bias = 0.1 * jax.random.normal(kb, (C_OUT,), dtype=jnp.float32)

    out = c1_forward(x, weight, bias)
    out = jax.block_until_ready(out)

    ref = c1_reference(x, weight, bias)
    assert out.shape == (N, C_OUT, (H - KH + 1) // 2, (W - KW + 1) // 2)
    if not jnp.allclose(out, ref, atol=1e-4, rtol=1e-4):
        raise AssertionError("Pallas C1 output mismatch vs JAX reference")

    print("KERNEL_OK")
</pallas_src>

<mosaic_0001>
module attributes {stable_mosaic.version = 11 : i64} {
  func.func @kernel(%arg0: i32, %arg1: memref<150xf32, #tpu.memory_space<smem>>, %arg2: memref<6xf32, #tpu.memory_space<smem>>, %arg3: memref<59x128xf32, #tpu.memory_space<vmem>>, %arg4: memref<40x71xf32, #tpu.memory_space<vmem>>, %arg5: memref<1x16x64xf32, #tpu.memory_space<vmem>>, %arg6: memref<1x40x128xf32, #tpu.memory_space<vmem>>) attributes {dimension_semantics = [#tpu.dimension_semantics<parallel>], iteration_bounds = array<i64: 2>, scalar_prefetch = 0 : i64, scratch_operands = 0 : i64, tpu.core_type = #tpu.core_type<tc>, window_params = [{transform_indices = @transform_0, window_bounds = array<i64: 150>}, {transform_indices = @transform_1, window_bounds = array<i64: 6>}, {pipeline_mode = #tpu.pipeline_mode<synchronous>, transform_indices = @transform_2, window_bounds = array<i64: 59, 128>}, {pipeline_mode = #tpu.pipeline_mode<synchronous>, transform_indices = @transform_3, window_bounds = array<i64: 40, 71>}, {transform_indices = @transform_4, window_bounds = array<i64: 1, 16, 64>}, {transform_indices = @transform_5, window_bounds = array<i64: 1, 40, 128>}]} {
    %c0 = arith.constant 0 : index
    %c0_0 = arith.constant 0 : index
    %c0_1 = arith.constant 0 : index
    %0 = vector.load %arg5[%c0, %c0_0, %c0_1] : memref<1x16x64xf32, #tpu.memory_space<vmem>>, vector<1x16x64xf32>
    %1 = vector.shape_cast %0 : vector<1x16x64xf32> to vector<16x64xf32>
    %2 = vector.extract_strided_slice %1 {offsets = [0, 0], sizes = [16, 60], strides = [1, 1]} : vector<16x64xf32> to vector<16x60xf32>
    %3 = vector.extract_strided_slice %1 {offsets = [0, 1], sizes = [16, 60], strides = [1, 1]} : vector<16x64xf32> to vector<16x60xf32>
    %4 = vector.extract_strided_slice %1 {offsets = [0, 2], sizes = [16, 60], strides = [1, 1]} : vector<16x64xf32> to vector<16x60xf32>
    %5 = vector.extract_strided_slice %1 {offsets = [0, 3], sizes = [16, 60], strides = [1, 1]} : vector<16x64xf32> to vector<16x60xf32>
    %6 = vector.extract_strided_slice %1 {offsets = [0, 4], sizes = [16, 60], strides = [1, 1]} : vector<16x64xf32> to vector<16x60xf32>
    %c0_2 = arith.constant 0 : index
    %7 = memref.load %arg2[%c0_2] : memref<6xf32, #tpu.memory_space<smem>>
    %8 = vector.broadcast %7 : f32 to vector<12x60xf32>
    %c1 = arith.constant 1 : index
    %9 = memref.load %arg2[%c1] : memref<6xf32, #tpu.memory_space<smem>>
    %10 = vector.broadcast %9 : f32 to vector<12x60xf32>
    %c2 = arith.constant 2 : index
    %11 = memref.load %arg2[%c2] : memref<6xf32, #tpu.memory_space<smem>>
    %12 = vector.broadcast %11 : f32 to vector<12x60xf32>
    %c3 = arith.constant 3 : index
    %13 = memref.load %arg2[%c3] : memref<6xf32, #tpu.memory_space<smem>>
    %14 = vector.broadcast %13 : f32 to vector<12x60xf32>
    %c4 = arith.constant 4 : index
    %15 = memref.load %arg2[%c4] : memref<6xf32, #tpu.memory_space<smem>>
    %16 = vector.broadcast %15 : f32 to vector<12x60xf32>
    %c5 = arith.constant 5 : index
    %17 = memref.load %arg2[%c5] : memref<6xf32, #tpu.memory_space<smem>>
    %18 = vector.broadcast %17 : f32 to vector<12x60xf32>
    %19 = vector.extract_strided_slice %2 {offsets = [0, 0], sizes = [12, 60], strides = [1, 1]} : vector<16x60xf32> to vector<12x60xf32>
    %c0_3 = arith.constant 0 : index
    %20 = memref.load %arg1[%c0_3] : memref<150xf32, #tpu.memory_space<smem>>
    %21 = vector.broadcast %20 : f32 to vector<12x60xf32>
    %22 = arith.mulf %19, %21 : vector<12x60xf32>
    %23 = arith.addf %8, %22 : vector<12x60xf32>
    %c25 = arith.constant 25 : index
    %24 = memref.load %arg1[%c25] : memref<150xf32, #tpu.memory_space<smem>>
    %25 = vector.broadcast %24 : f32 to vector<12x60xf32>
    %26 = arith.mulf %19, %25 : vector<12x60xf32>
    %27 = arith.addf %10, %26 : vector<12x60xf32>
    %c50 = arith.constant 50 : index
    %28 = memref.load %arg1[%c50] : memref<150xf32, #tpu.memory_space<smem>>
    %29 = vector.broadcast %28 : f32 to vector<12x60xf32>
    %30 = arith.mulf %19, %29 : vector<12x60xf32>
    %31 = arith.addf %12, %30 : vector<12x60xf32>
    %c75 = arith.constant 75 : index
    %32 = memref.load %arg1[%c75] : memref<150xf32, #tpu.memory_space<smem>>
    %33 = vector.broadcast %32 : f32 to vector<12x60xf32>
    %34 = arith.mulf %19, %33 : vector<12x60xf32>
    %35 = arith.addf %14, %34 : vector<12x60xf32>
    %c100 = arith.constant 100 : index
    %36 = memref.load %arg1[%c100] : memref<150xf32, #tpu.memory_space<smem>>
    %37 = vector.broadcast %36 : f32 to vector<12x60xf32>
    %38 = arith.mulf %19, %37 : vector<12x60xf32>
    %39 = arith.addf %16, %38 : vector<12x60xf32>
    %c125 = arith.constant 125 : index
    %40 = memref.load %arg1[%c125] : memref<150xf32, #tpu.memory_space<smem>>
    %41 = vector.broadcast %40 : f32 to vector<12x60xf32>
    %42 = arith.mulf %19, %41 : vector<12x60xf32>
    %43 = arith.addf %18, %42 : vector<12x60xf32>
    %44 = vector.extract_strided_slice %3 {offsets = [0, 0], sizes = [12, 60], strides = [1, 1]} : vector<16x60xf32> to vector<12x60xf32>
    %c1_4 = arith.constant 1 : index
    %45 = memref.load %arg1[%c1_4] : memref<150xf32, #tpu.memory_space<smem>>
    %46 = vector.broadcast %45 : f32 to vector<12x60xf32>
    %47 = arith.mulf %44, %46 : vector<12x60xf32>
    %48 = arith.addf %23, %47 : vector<12x60xf32>
    %c26 = arith.constant 26 : index
    %49 = memref.load %arg1[%c26] : memref<150xf32, #tpu.memory_space<smem>>
    %50 = vector.broadcast %49 : f32 to vector<12x60xf32>
    %51 = arith.mulf %44, %50 : vector<12x60xf32>
    %52 = arith.addf %27, %51 : vector<12x60xf32>
    %c51 = arith.constant 51 : index
    %53 = memref.load %arg1[%c51] : memref<150xf32, #tpu.memory_space<smem>>
    %54 = vector.broadcast %53 : f32 to vector<12x60xf32>
    %55 = arith.mulf %44, %54 : vector<12x60xf32>
    %56 = arith.addf %31, %55 : vector<12x60xf32>
    %c76 = arith.constant 76 : index
    %57 = memref.load %arg1[%c76] : memref<150xf32, #tpu.memory_space<smem>>
    %58 = vector.broadcast %57 : f32 to vector<12x60xf32>
    %59 = arith.mulf %44, %58 : vector<12x60xf32>
    %60 = arith.addf %35, %59 : vector<12x60xf32>
    %c101 = arith.constant 101 : index
    %61 = memref.load %arg1[%c101] : memref<150xf32, #tpu.memory_space<smem>>
    %62 = vector.broadcast %61 : f32 to vector<12x60xf32>
    %63 = arith.mulf %44, %62 : vector<12x60xf32>
    %64 = arith.addf %39, %63 : vector<12x60xf32>
    %c126 = arith.constant 126 : index
    %65 = memref.load %arg1[%c126] : memref<150xf32, #tpu.memory_space<smem>>
    %66 = vector.broadcast %65 : f32 to vector<12x60xf32>
    %67 = arith.mulf %44, %66 : vector<12x60xf32>
    %68 = arith.addf %43, %67 : vector<12x60xf32>
    %69 = vector.extract_strided_slice %4 {offsets = [0, 0], sizes = [12, 60], strides = [1, 1]} : vector<16x60xf32> to vector<12x60xf32>
    %c2_5 = arith.constant 2 : index
    %70 = memref.load %arg1[%c2_5] : memref<150xf32, #tpu.memory_space<smem>>
    %71 = vector.broadcast %70 : f32 to vector<12x60xf32>
    %72 = arith.mulf %69, %71 : vector<12x60xf32>
    %73 = arith.addf %48, %72 : vector<12x60xf32>
    %c27 = arith.constant 27 : index
    %74 = memref.load %arg1[%c27] : memref<150xf32, #tpu.memory_space<smem>>
    %75 = vector.broadcast %74 : f32 to vector<12x60xf32>
    %76 = arith.mulf %69, %75 : vector<12x60xf32>
    %77 = arith.addf %52, %76 : vector<12x60xf32>
    %c52 = arith.constant 52 : index
    %78 = memref.load %arg1[%c52] : memref<150xf32, #tpu.memory_space<smem>>
    %79 = vector.broadcast %78 : f32 to vector<12x60xf32>
    %80 = arith.mulf %69, %79 : vector<12x60xf32>
    %81 = arith.addf %56, %80 : vector<12x60xf32>
    %c77 = arith.constant 77 : index
    %82 = memref.load %arg1[%c77] : memref<150xf32, #tpu.memory_space<smem>>
    %83 = vector.broadcast %82 : f32 to vector<12x60xf32>
    %84 = arith.mulf %69, %83 : vector<12x60xf32>
    %85 = arith.addf %60, %84 : vector<12x60xf32>
    %c102 = arith.constant 102 : index
    %86 = memref.load %arg1[%c102] : memref<150xf32, #tpu.memory_space<smem>>
    %87 = vector.broadcast %86 : f32 to vector<12x60xf32>
    %88 = arith.mulf %69, %87 : vector<12x60xf32>
    %89 = arith.addf %64, %88 : vector<12x60xf32>
    %c127 = arith.constant 127 : index
    %90 = memref.load %arg1[%c127] : memref<150xf32, #tpu.memory_space<smem>>
    %91 = vector.broadcast %90 : f32 to vector<12x60xf32>
    %92 = arith.mulf %69, %91 : vector<12x60xf32>
    %93 = arith.addf %68, %92 : vector<12x60xf32>
    %94 = vector.extract_strided_slice %5 {offsets = [0, 0], sizes = [12, 60], strides = [1, 1]} : vector<16x60xf32> to vector<12x60xf32>
    %c3_6 = arith.constant 3 : index
    %95 = memref.load %arg1[%c3_6] : memref<150xf32, #tpu.memory_space<smem>>
    %96 = vector.broadcast %95 : f32 to vector<12x60xf32>
    %97 = arith.mulf %94, %96 : vector<12x60xf32>
    %98 = arith.addf %73, %97 : vector<12x60xf32>
    %c28 = arith.constant 28 : index
    %99 = memref.load %arg1[%c28] : memref<150xf32, #tpu.memory_space<smem>>
    %100 = vector.broadcast %99 : f32 to vector<12x60xf32>
    %101 = arith.mulf %94, %100 : vector<12x60xf32>
    %102 = arith.addf %77, %101 : vector<12x60xf32>
    %c53 = arith.constant 53 : index
    %103 = memref.load %arg1[%c53] : memref<150xf32, #tpu.memory_space<smem>>
    %104 = vector.broadcast %103 : f32 to vector<12x60xf32>
    %105 = arith.mulf %94, %104 : vector<12x60xf32>
    %106 = arith.addf %81, %105 : vector<12x60xf32>
    %c78 = arith.constant 78 : index
    %107 = memref.load %arg1[%c78] : memref<150xf32, #tpu.memory_space<smem>>
    %108 = vector.broadcast %107 : f32 to vector<12x60xf32>
    %109 = arith.mulf %94, %108 : vector<12x60xf32>
    %110 = arith.addf %85, %109 : vector<12x60xf32>
    %c103 = arith.constant 103 : index
    %111 = memref.load %arg1[%c103] : memref<150xf32, #tpu.memory_space<smem>>
    %112 = vector.broadcast %111 : f32 to vector<12x60xf32>
    %113 = arith.mulf %94, %112 : vector<12x60xf32>
    %114 = arith.addf %89, %113 : vector<12x60xf32>
    %c128 = arith.constant 128 : index
    %115 = memref.load %arg1[%c128] : memref<150xf32, #tpu.memory_space<smem>>
    %116 = vector.broadcast %115 : f32 to vector<12x60xf32>
    %117 = arith.mulf %94, %116 : vector<12x60xf32>
    %118 = arith.addf %93, %117 : vector<12x60xf32>
    %119 = vector.extract_strided_slice %6 {offsets = [0, 0], sizes = [12, 60], strides = [1, 1]} : vector<16x60xf32> to vector<12x60xf32>
    %c4_7 = arith.constant 4 : index
    %120 = memref.load %arg1[%c4_7] : memref<150xf32, #tpu.memory_space<smem>>
    %121 = vector.broadcast %120 : f32 to vector<12x60xf32>
    %122 = arith.mulf %119, %121 : vector<12x60xf32>
    %123 = arith.addf %98, %122 : vector<12x60xf32>
    %c29 = arith.constant 29 : index
    %124 = memref.load %arg1[%c29] : memref<150xf32, #tpu.memory_space<smem>>
    %125 = vector.broadcast %124 : f32 to vector<12x60xf32>
    %126 = arith.mulf %119, %125 : vector<12x60xf32>
    %127 = arith.addf %102, %126 : vector<12x60xf32>
    %c54 = arith.constant 54 : index
    %128 = memref.load %arg1[%c54] : memref<150xf32, #tpu.memory_space<smem>>
    %129 = vector.broadcast %128 : f32 to vector<12x60xf32>
    %130 = arith.mulf %119, %129 : vector<12x60xf32>
    %131 = arith.addf %106, %130 : vector<12x60xf32>
    %c79 = arith.constant 79 : index
    %132 = memref.load %arg1[%c79] : memref<150xf32, #tpu.memory_space<smem>>
    %133 = vector.broadcast %132 : f32 to vector<12x60xf32>
    %134 = arith.mulf %119, %133 : vector<12x60xf32>
    %135 = arith.addf %110, %134 : vector<12x60xf32>
    %c104 = arith.constant 104 : index
    %136 = memref.load %arg1[%c104] : memref<150xf32, #tpu.memory_space<smem>>
    %137 = vector.broadcast %136 : f32 to vector<12x60xf32>
    %138 = arith.mulf %119, %137 : vector<12x60xf32>
    %139 = arith.addf %114, %138 : vector<12x60xf32>
    %c129 = arith.constant 129 : index
    %140 = memref.load %arg1[%c129] : memref<150xf32, #tpu.memory_space<smem>>
    %141 = vector.broadcast %140 : f32 to vector<12x60xf32>
    %142 = arith.mulf %119, %141 : vector<12x60xf32>
    %143 = arith.addf %118, %142 : vector<12x60xf32>
    %144 = vector.extract_strided_slice %2 {offsets = [1, 0], sizes = [12, 60], strides = [1, 1]} : vector<16x60xf32> to vector<12x60xf32>
    %c5_8 = arith.constant 5 : index
    %145 = memref.load %arg1[%c5_8] : memref<150xf32, #tpu.memory_space<smem>>
    %146 = vector.broadcast %145 : f32 to vector<12x60xf32>
    %147 = arith.mulf %144, %146 : vector<12x60xf32>
    %148 = arith.addf %123, %147 : vector<12x60xf32>
    %c30 = arith.constant 30 : index
    %149 = memref.load %arg1[%c30] : memref<150xf32, #tpu.memory_space<smem>>
    %150 = vector.broadcast %149 : f32 to vector<12x60xf32>
    %151 = arith.mulf %144, %150 : vector<12x60xf32>
    %152 = arith.addf %127, %151 : vector<12x60xf32>
    %c55 = arith.constant 55 : index
    %153 = memref.load %arg1[%c55] : memref<150xf32, #tpu.memory_space<smem>>
    %154 = vector.broadcast %153 : f32 to vector<12x60xf32>
    %155 = arith.mulf %144, %154 : vector<12x60xf32>
    %156 = arith.addf %131, %155 : vector<12x60xf32>
    %c80 = arith.constant 80 : index
    %157 = memref.load %arg1[%c80] : memref<150xf32, #tpu.memory_space<smem>>
    %158 = vector.broadcast %157 : f32 to vector<12x60xf32>
    %159 = arith.mulf %144, %158 : vector<12x60xf32>
    %160 = arith.addf %135, %159 : vector<12x60xf32>
    %c105 = arith.constant 105 : index
    %161 = memref.load %arg1[%c105] : memref<150xf32, #tpu.memory_space<smem>>
    %162 = vector.broadcast %161 : f32 to vector<12x60xf32>
    %163 = arith.mulf %144, %162 : vector<12x60xf32>
    %164 = arith.addf %139, %163 : vector<12x60xf32>
    %c130 = arith.constant 130 : index
    %165 = memref.load %arg1[%c130] : memref<150xf32, #tpu.memory_space<smem>>
    %166 = vector.broadcast %165 : f32 to vector<12x60xf32>
    %167 = arith.mulf %144, %166 : vector<12x60xf32>
    %168 = arith.addf %143, %167 : vector<12x60xf32>
    %169 = vector.extract_strided_slice %3 {offsets = [1, 0], sizes = [12, 60], strides = [1, 1]} : vector<16x60xf32> to vector<12x60xf32>
    %c6 = arith.constant 6 : index
    %170 = memref.load %arg1[%c6] : memref<150xf32, #tpu.memory_space<smem>>
    %171 = vector.broadcast %170 : f32 to vector<12x60xf32>
    %172 = arith.mulf %169, %171 : vector<12x60xf32>
    %173 = arith.addf %148, %172 : vector<12x60xf32>
    %c31 = arith.constant 31 : index
    %174 = memref.load %arg1[%c31] : memref<150xf32, #tpu.memory_space<smem>>
    %175 = vector.broadcast %174 : f32 to vector<12x60xf32>
    %176 = arith.mulf %169, %175 : vector<12x60xf32>
    %177 = arith.addf %152, %176 : vector<12x60xf32>
    %c56 = arith.constant 56 : index
    %178 = memref.load %arg1[%c56] : memref<150xf32, #tpu.memory_space<smem>>
    %179 = vector.broadcast %178 : f32 to vector<12x60xf32>
    %180 = arith.mulf %169, %179 : vector<12x60xf32>
    %181 = arith.addf %156, %180 : vector<12x60xf32>
    %c81 = arith.constant 81 : index
    %182 = memref.load %arg1[%c81] : memref<150xf32, #tpu.memory_space<smem>>
    %183 = vector.broadcast %182 : f32 to vector<12x60xf32>
    %184 = arith.mulf %169, %183 : vector<12x60xf32>
    %185 = arith.addf %160, %184 : vector<12x60xf32>
    %c106 = arith.constant 106 : index
    %186 = memref.load %arg1[%c106] : memref<150xf32, #tpu.memory_space<smem>>
    %187 = vector.broadcast %186 : f32 to vector<12x60xf32>
    %188 = arith.mulf %169, %187 : vector<12x60xf32>
    %189 = arith.addf %164, %188 : vector<12x60xf32>
    %c131 = arith.constant 131 : index
    %190 = memref.load %arg1[%c131] : memref<150xf32, #tpu.memory_space<smem>>
    %191 = vector.broadcast %190 : f32 to vector<12x60xf32>
    %192 = arith.mulf %169, %191 : vector<12x60xf32>
    %193 = arith.addf %168, %192 : vector<12x60xf32>
    %194 = vector.extract_strided_slice %4 {offsets = [1, 0], sizes = [12, 60], strides = [1, 1]} : vector<16x60xf32> to vector<12x60xf32>
    %c7 = arith.constant 7 : index
    %195 = memref.load %arg1[%c7] : memref<150xf32, #tpu.memory_space<smem>>
    %196 = vector.broadcast %195 : f32 to vector<12x60xf32>
    %197 = arith.mulf %194, %196 : vector<12x60xf32>
    %198 = arith.addf %173, %197 : vector<12x60xf32>
    %c32 = arith.constant 32 : index
    %199 = memref.load %arg1[%c32] : memref<150xf32, #tpu.memory_space<smem>>
    %200 = vector.broadcast %199 : f32 to vector<12x60xf32>
    %201 = arith.mulf %194, %200 : vector<12x60xf32>
    %202 = arith.addf %177, %201 : vector<12x60xf32>
    %c57 = arith.constant 57 : index
    %203 = memref.load %arg1[%c57] : memref<150xf32, #tpu.memory_space<smem>>
    %204 = vector.broadcast %203 : f32 to vector<12x60xf32>
    %205 = arith.mulf %194, %204 : vector<12x60xf32>
    %206 = arith.addf %181, %205 : vector<12x60xf32>
    %c82 = arith.constant 82 : index
    %207 = memref.load %arg1[%c82] : memref<150xf32, #tpu.memory_space<smem>>
    %208 = vector.broadcast %207 : f32 to vector<12x60xf32>
    %209 = arith.mulf %194, %208 : vector<12x60xf32>
    %210 = arith.addf %185, %209 : vector<12x60xf32>
    %c107 = arith.constant 107 : index
    %211 = memref.load %arg1[%c107] : memref<150xf32, #tpu.memory_space<smem>>
    %212 = vector.broadcast %211 : f32 to vector<12x60xf32>
    %213 = arith.mulf %194, %212 : vector<12x60xf32>
    %214 = arith.addf %189, %213 : vector<12x60xf32>
    %c132 = arith.constant 132 : index
    %215 = memref.load %arg1[%c132] : memref<150xf32, #tpu.memory_space<smem>>
    %216 = vector.broadcast %215 : f32 to vector<12x60xf32>
    %217 = arith.mulf %194, %216 : vector<12x60xf32>
    %218 = arith.addf %193, %217 : vector<12x60xf32>
    %219 = vector.extract_strided_slice %5 {offsets = [1, 0], sizes = [12, 60], strides = [1, 1]} : vector<16x60xf32> to vector<12x60xf32>
    %c8 = arith.constant 8 : index
    %220 = memref.load %arg1[%c8] : memref<150xf32, #tpu.memory_space<smem>>
    %221 = vector.broadcast %220 : f32 to vector<12x60xf32>
    %222 = arith.mulf %219, %221 : vector<12x60xf32>
    %223 = arith.addf %198, %222 : vector<12x60xf32>
    %c33 = arith.constant 33 : index
    %224 = memref.load %arg1[%c33] : memref<150xf32, #tpu.memory_space<smem>>
    %225 = vector.broadcast %224 : f32 to vector<12x60xf32>
    %226 = arith.mulf %219, %225 : vector<12x60xf32>
    %227 = arith.addf %202, %226 : vector<12x60xf32>
    %c58 = arith.constant 58 : index
    %228 = memref.load %arg1[%c58] : memref<150xf32, #tpu.memory_space<smem>>
    %229 = vector.broadcast %228 : f32 to vector<12x60xf32>
    %230 = arith.mulf %219, %229 : vector<12x60xf32>
    %231 = arith.addf %206, %230 : vector<12x60xf32>
    %c83 = arith.constant 83 : index
    %232 = memref.load %arg1[%c83] : memref<150xf32, #tpu.memory_space<smem>>
    %233 = vector.broadcast %232 : f32 to vector<12x60xf32>
    %234 = arith.mulf %219, %233 : vector<12x60xf32>
    %235 = arith.addf %210, %234 : vector<12x60xf32>
    %c108 = arith.constant 108 : index
    %236 = memref.load %arg1[%c108] : memref<150xf32, #tpu.memory_space<smem>>
    %237 = vector.broadcast %236 : f32 to vector<12x60xf32>
    %238 = arith.mulf %219, %237 : vector<12x60xf32>
    %239 = arith.addf %214, %238 : vector<12x60xf32>
    %c133 = arith.constant 133 : index
    %240 = memref.load %arg1[%c133] : memref<150xf32, #tpu.memory_space<smem>>
    %241 = vector.broadcast %240 : f32 to vector<12x60xf32>
    %242 = arith.mulf %219, %241 : vector<12x60xf32>
    %243 = arith.addf %218, %242 : vector<12x60xf32>
    %244 = vector.extract_strided_slice %6 {offsets = [1, 0], sizes = [12, 60], strides = [1, 1]} : vector<16x60xf32> to vector<12x60xf32>
    %c9 = arith.constant 9 : index
    %245 = memref.load %arg1[%c9] : memref<150xf32, #tpu.memory_space<smem>>
    %246 = vector.broadcast %245 : f32 to vector<12x60xf32>
    %247 = arith.mulf %244, %246 : vector<12x60xf32>
    %248 = arith.addf %223, %247 : vector<12x60xf32>
    %c34 = arith.constant 34 : index
    %249 = memref.load %arg1[%c34] : memref<150xf32, #tpu.memory_space<smem>>
    %250 = vector.broadcast %249 : f32 to vector<12x60xf32>
    %251 = arith.mulf %244, %250 : vector<12x60xf32>
    %252 = arith.addf %227, %251 : vector<12x60xf32>
    %c59 = arith.constant 59 : index
    %253 = memref.load %arg1[%c59] : memref<150xf32, #tpu.memory_space<smem>>
    %254 = vector.broadcast %253 : f32 to vector<12x60xf32>
    %255 = arith.mulf %244, %254 : vector<12x60xf32>
    %256 = arith.addf %231, %255 : vector<12x60xf32>
    %c84 = arith.constant 84 : index
    %257 = memref.load %arg1[%c84] : memref<150xf32, #tpu.memory_space<smem>>
    %258 = vector.broadcast %257 : f32 to vector<12x60xf32>
    %259 = arith.mulf %244, %258 : vector<12x60xf32>
    %260 = arith.addf %235, %259 : vector<12x60xf32>
    %c109 = arith.constant 109 : index
    %261 = memref.load %arg1[%c109] : memref<150xf32, #tpu.memory_space<smem>>
    %262 = vector.broadcast %261 : f32 to vector<12x60xf32>
    %263 = arith.mulf %244, %262 : vector<12x60xf32>
    %264 = arith.addf %239, %263 : vector<12x60xf32>
    %c134 = arith.constant 134 : index
    %265 = memref.load %arg1[%c134] : memref<150xf32, #tpu.memory_space<smem>>
    %266 = vector.broadcast %265 : f32 to vector<12x60xf32>
    %267 = arith.mulf %244, %266 : vector<12x60xf32>
    %268 = arith.addf %243, %267 : vector<12x60xf32>
    %269 = vector.extract_strided_slice %2 {offsets = [2, 0], sizes = [12, 60], strides = [1, 1]} : vector<16x60xf32> to vector<12x60xf32>
    %c10 = arith.constant 10 : index
    %270 = memref.load %arg1[%c10] : memref<150xf32, #tpu.memory_space<smem>>
    %271 = vector.broadcast %270 : f32 to vector<12x60xf32>
    %272 = arith.mulf %269, %271 : vector<12x60xf32>
    %273 = arith.addf %248, %272 : vector<12x60xf32>
    %c35 = arith.constant 35 : index
    %274 = memref.load %arg1[%c35] : memref<150xf32, #tpu.memory_space<smem>>
    %275 = vector.broadcast %274 : f32 to vector<12x60xf32>
    %276 = arith.mulf %269, %275 : vector<12x60xf32>
    %277 = arith.addf %252, %276 : vector<12x60xf32>
    %c60 = arith.constant 60 : index
    %278 = memref.load %arg1[%c60] : memref<150xf32, #tpu.memory_space<smem>>
    %279 = vector.broadcast %278 : f32 to vector<12x60xf32>
    %280 = arith.mulf %269, %279 : vector<12x60xf32>
    %281 = arith.addf %256, %280 : vector<12x60xf32>
    %c85 = arith.constant 85 : index
    %282 = memref.load %arg1[%c85] : memref<150xf32, #tpu.memory_space<smem>>
    %283 = vector.broadcast %282 : f32 to vector<12x60xf32>
    %284 = arith.mulf %269, %283 : vector<12x60xf32>
    %285 = arith.addf %260, %284 : vector<12x60xf32>
    %c110 = arith.constant 110 : index
    %286 = memref.load %arg1[%c110] : memref<150xf32, #tpu.memory_space<smem>>
    %287 = vector.broadcast %286 : f32 to vector<12x60xf32>
    %288 = arith.mulf %269, %287 : vector<12x60xf32>
    %289 = arith.addf %264, %288 : vector<12x60xf32>
    %c135 = arith.constant 135 : index
    %290 = memref.load %arg1[%c135] : memref<150xf32, #tpu.memory_space<smem>>
    %291 = vector.broadcast %290 : f32 to vector<12x60xf32>
    %292 = arith.mulf %269, %291 : vector<12x60xf32>
    %293 = arith.addf %268, %292 : vector<12x60xf32>
    %294 = vector.extract_strided_slice %3 {offsets = [2, 0], sizes = [12, 60], strides = [1, 1]} : vector<16x60xf32> to vector<12x60xf32>
    %c11 = arith.constant 11 : index
    %295 = memref.load %arg1[%c11] : memref<150xf32, #tpu.memory_space<smem>>
    %296 = vector.broadcast %295 : f32 to vector<12x60xf32>
    %297 = arith.mulf %294, %296 : vector<12x60xf32>
    %298 = arith.addf %273, %297 : vector<12x60xf32>
    %c36 = arith.constant 36 : index
    %299 = memref.load %arg1[%c36] : memref<150xf32, #tpu.memory_space<smem>>
    %300 = vector.broadcast %299 : f32 to vector<12x60xf32>
    %301 = arith.mulf %294, %300 : vector<12x60xf32>
    %302 = arith.addf %277, %301 : vector<12x60xf32>
    %c61 = arith.constant 61 : index
    %303 = memref.load %arg1[%c61] : memref<150xf32, #tpu.memory_space<smem>>
    %304 = vector.broadcast %303 : f32 to vector<12x60xf32>
    %305 = arith.mulf %294, %304 : vector<12x60xf32>
    %306 = arith.addf %281, %305 : vector<12x60xf32>
    %c86 = arith.constant 86 : index
    %307 = memref.load %arg1[%c86] : memref<150xf32, #tpu.memory_space<smem>>
    %308 = vector.broadcast %307 : f32 to vector<12x60xf32>
    %309 = arith.mulf %294, %308 : vector<12x60xf32>
    %310 = arith.addf %285, %309 : vector<12x60xf32>
    %c111 = arith.constant 111 : index
    %311 = memref.load %arg1[%c111] : memref<150xf32, #tpu.memory_space<smem>>
    %312 = vector.broadcast %311 : f32 to vector<12x60xf32>
    %313 = arith.mulf %294, %312 : vector<12x60xf32>
    %314 = arith.addf %289, %313 : vector<12x60xf32>
    %c136 = arith.constant 136 : index
    %315 = memref.load %arg1[%c136] : memref<150xf32, #tpu.memory_space<smem>>
    %316 = vector.broadcast %315 : f32 to vector<12x60xf32>
    %317 = arith.mulf %294, %316 : vector<12x60xf32>
    %318 = arith.addf %293, %317 : vector<12x60xf32>
    %319 = vector.extract_strided_slice %4 {offsets = [2, 0], sizes = [12, 60], strides = [1, 1]} : vector<16x60xf32> to vector<12x60xf32>
    %c12 = arith.constant 12 : index
    %320 = memref.load %arg1[%c12] : memref<150xf32, #tpu.memory_space<smem>>
    %321 = vector.broadcast %320 : f32 to vector<12x60xf32>
    %322 = arith.mulf %319, %321 : vector<12x60xf32>
    %323 = arith.addf %298, %322 : vector<12x60xf32>
    %c37 = arith.constant 37 : index
    %324 = memref.load %arg1[%c37] : memref<150xf32, #tpu.memory_space<smem>>
    %325 = vector.broadcast %324 : f32 to vector<12x60xf32>
    %326 = arith.mulf %319, %325 : vector<12x60xf32>
    %327 = arith.addf %302, %326 : vector<12x60xf32>
    %c62 = arith.constant 62 : index
    %328 = memref.load %arg1[%c62] : memref<150xf32, #tpu.memory_space<smem>>
    %329 = vector.broadcast %328 : f32 to vector<12x60xf32>
    %330 = arith.mulf %319, %329 : vector<12x60xf32>
    %331 = arith.addf %306, %330 : vector<12x60xf32>
    %c87 = arith.constant 87 : index
    %332 = memref.load %arg1[%c87] : memref<150xf32, #tpu.memory_space<smem>>
    %333 = vector.broadcast %332 : f32 to vector<12x60xf32>
    %334 = arith.mulf %319, %333 : vector<12x60xf32>
    %335 = arith.addf %310, %334 : vector<12x60xf32>
    %c112 = arith.constant 112 : index
    %336 = memref.load %arg1[%c112] : memref<150xf32, #tpu.memory_space<smem>>
    %337 = vector.broadcast %336 : f32 to vector<12x60xf32>
    %338 = arith.mulf %319, %337 : vector<12x60xf32>
    %339 = arith.addf %314, %338 : vector<12x60xf32>
    %c137 = arith.constant 137 : index
    %340 = memref.load %arg1[%c137] : memref<150xf32, #tpu.memory_space<smem>>
    %341 = vector.broadcast %340 : f32 to vector<12x60xf32>
    %342 = arith.mulf %319, %341 : vector<12x60xf32>
    %343 = arith.addf %318, %342 : vector<12x60xf32>
    %344 = vector.extract_strided_slice %5 {offsets = [2, 0], sizes = [12, 60], strides = [1, 1]} : vector<16x60xf32> to vector<12x60xf32>
    %c13 = arith.constant 13 : index
    %345 = memref.load %arg1[%c13] : memref<150xf32, #tpu.memory_space<smem>>
    %346 = vector.broadcast %345 : f32 to vector<12x60xf32>
    %347 = arith.mulf %344, %346 : vector<12x60xf32>
    %348 = arith.addf %323, %347 : vector<12x60xf32>
    %c38 = arith.constant 38 : index
    %349 = memref.load %arg1[%c38] : memref<150xf32, #tpu.memory_space<smem>>
    %350 = vector.broadcast %349 : f32 to vector<12x60xf32>
    %351 = arith.mulf %344, %350 : vector<12x60xf32>
    %352 = arith.addf %327, %351 : vector<12x60xf32>
    %c63 = arith.constant 63 : index
    %353 = memref.load %arg1[%c63] : memref<150xf32, #tpu.memory_space<smem>>
    %354 = vector.broadcast %353 : f32 to vector<12x60xf32>
    %355 = arith.mulf %344, %354 : vector<12x60xf32>
    %356 = arith.addf %331, %355 : vector<12x60xf32>
    %c88 = arith.constant 88 : index
    %357 = memref.load %arg1[%c88] : memref<150xf32, #tpu.memory_space<smem>>
    %358 = vector.broadcast %357 : f32 to vector<12x60xf32>
    %359 = arith.mulf %344, %358 : vector<12x60xf32>
    %360 = arith.addf %335, %359 : vector<12x60xf32>
    %c113 = arith.constant 113 : index
    %361 = memref.load %arg1[%c113] : memref<150xf32, #tpu.memory_space<smem>>
    %362 = vector.broadcast %361 : f32 to vector<12x60xf32>
    %363 = arith.mulf %344, %362 : vector<12x60xf32>
    %364 = arith.addf %339, %363 : vector<12x60xf32>
    %c138 = arith.constant 138 : index
    %365 = memref.load %arg1[%c138] : memref<150xf32, #tpu.memory_space<smem>>
    %366 = vector.broadcast %365 : f32 to vector<12x60xf32>
    %367 = arith.mulf %344, %366 : vector<12x60xf32>
    %368 = arith.addf %343, %367 : vector<12x60xf32>
    %369 = vector.extract_strided_slice %6 {offsets = [2, 0], sizes = [12, 60], strides = [1, 1]} : vector<16x60xf32> to vector<12x60xf32>
    %c14 = arith.constant 14 : index
    %370 = memref.load %arg1[%c14] : memref<150xf32, #tpu.memory_space<smem>>
    %371 = vector.broadcast %370 : f32 to vector<12x60xf32>
    %372 = arith.mulf %369, %371 : vector<12x60xf32>
    %373 = arith.addf %348, %372 : vector<12x60xf32>
    %c39 = arith.constant 39 : index
    %374 = memref.load %arg1[%c39] : memref<150xf32, #tpu.memory_space<smem>>
    %375 = vector.broadcast %374 : f32 to vector<12x60xf32>
    %376 = arith.mulf %369, %375 : vector<12x60xf32>
    %377 = arith.addf %352, %376 : vector<12x60xf32>
    %c64 = arith.constant 64 : index
    %378 = memref.load %arg1[%c64] : memref<150xf32, #tpu.memory_space<smem>>
    %379 = vector.broadcast %378 : f32 to vector<12x60xf32>
    %380 = arith.mulf %369, %379 : vector<12x60xf32>
    %381 = arith.addf %356, %380 : vector<12x60xf32>
    %c89 = arith.constant 89 : index
    %382 = memref.load %arg1[%c89] : memref<150xf32, #tpu.memory_space<smem>>
    %383 = vector.broadcast %382 : f32 to vector<12x60xf32>
    %384 = arith.mulf %369, %383 : vector<12x60xf32>
    %385 = arith.addf %360, %384 : vector<12x60xf32>
    %c114 = arith.constant 114 : index
    %386 = memref.load %arg1[%c114] : memref<150xf32, #tpu.memory_space<smem>>
    %387 = vector.broadcast %386 : f32 to vector<12x60xf32>
    %388 = arith.mulf %369, %387 : vector<12x60xf32>
    %389 = arith.addf %364, %388 : vector<12x60xf32>
    %c139 = arith.constant 139 : index
    %390 = memref.load %arg1[%c139] : memref<150xf32, #tpu.memory_space<smem>>
    %391 = vector.broadcast %390 : f32 to vector<12x60xf32>
    %392 = arith.mulf %369, %391 : vector<12x60xf32>
    %393 = arith.addf %368, %392 : vector<12x60xf32>
    %394 = vector.extract_strided_slice %2 {offsets = [3, 0], sizes = [12, 60], strides = [1, 1]} : vector<16x60xf32> to vector<12x60xf32>
    %c15 = arith.constant 15 : index
    %395 = memref.load %arg1[%c15] : memref<150xf32, #tpu.memory_space<smem>>
    %396 = vector.broadcast %395 : f32 to vector<12x60xf32>
    %397 = arith.mulf %394, %396 : vector<12x60xf32>
    %398 = arith.addf %373, %397 : vector<12x60xf32>
    %c40 = arith.constant 40 : index
    %399 = memref.load %arg1[%c40] : memref<150xf32, #tpu.memory_space<smem>>
    %400 = vector.broadcast %399 : f32 to vector<12x60xf32>
    %401 = arith.mulf %394, %400 : vector<12x60xf32>
    %402 = arith.addf %377, %401 : vector<12x60xf32>
    %c65 = arith.constant 65 : index
    %403 = memref.load %arg1[%c65] : memref<150xf32, #tpu.memory_space<smem>>
    %404 = vector.broadcast %403 : f32 to vector<12x60xf32>
    %405 = arith.mulf %394, %404 : vector<12x60xf32>
    %406 = arith.addf %381, %405 : vector<12x60xf32>
    %c90 = arith.constant 90 : index
    %407 = memref.load %arg1[%c90] : memref<150xf32, #tpu.memory_space<smem>>
    %408 = vector.broadcast %407 : f32 to vector<12x60xf32>
    %409 = arith.mulf %394, %408 : vector<12x60xf32>
    %410 = arith.addf %385, %409 : vector<12x60xf32>
    %c115 = arith.constant 115 : index
    %411 = memref.load %arg1[%c115] : memref<150xf32, #tpu.memory_space<smem>>
    %412 = vector.broadcast %411 : f32 to vector<12x60xf32>
    %413 = arith.mulf %394, %412 : vector<12x60xf32>
    %414 = arith.addf %389, %413 : vector<12x60xf32>
    %c140 = arith.constant 140 : index
    %415 = memref.load %arg1[%c140] : memref<150xf32, #tpu.memory_space<smem>>
    %416 = vector.broadcast %415 : f32 to vector<12x60xf32>
    %417 = arith.mulf %394, %416 : vector<12x60xf32>
    %418 = arith.addf %393, %417 : vector<12x60xf32>
    %419 = vector.extract_strided_slice %3 {offsets = [3, 0], sizes = [12, 60], strides = [1, 1]} : vector<16x60xf32> to vector<12x60xf32>
    %c16 = arith.constant 16 : index
    %420 = memref.load %arg1[%c16] : memref<150xf32, #tpu.memory_space<smem>>
    %421 = vector.broadcast %420 : f32 to vector<12x60xf32>
    %422 = arith.mulf %419, %421 : vector<12x60xf32>
    %423 = arith.addf %398, %422 : vector<12x60xf32>
    %c41 = arith.constant 41 : index
    %424 = memref.load %arg1[%c41] : memref<150xf32, #tpu.memory_space<smem>>
    %425 = vector.broadcast %424 : f32 to vector<12x60xf32>
    %426 = arith.mulf %419, %425 : vector<12x60xf32>
    %427 = arith.addf %402, %426 : vector<12x60xf32>
    %c66 = arith.constant 66 : index
    %428 = memref.load %arg1[%c66] : memref<150xf32, #tpu.memory_space<smem>>
    %429 = vector.broadcast %428 : f32 to vector<12x60xf32>
    %430 = arith.mulf %419, %429 : vector<12x60xf32>
    %431 = arith.addf %406, %430 : vector<12x60xf32>
    %c91 = arith.constant 91 : index
    %432 = memref.load %arg1[%c91] : memref<150xf32, #tpu.memory_space<smem>>
    %433 = vector.broadcast %432 : f32 to vector<12x60xf32>
    %434 = arith.mulf %419, %433 : vector<12x60xf32>
    %435 = arith.addf %410, %434 : vector<12x60xf32>
    %c116 = arith.constant 116 : index
    %436 = memref.load %arg1[%c116] : memref<150xf32, #tpu.memory_space<smem>>
    %437 = vector.broadcast %436 : f32 to vector<12x60xf32>
    %438 = arith.mulf %419, %437 : vector<12x60xf32>
    %439 = arith.addf %414, %438 : vector<12x60xf32>
    %c141 = arith.constant 141 : index
    %440 = memref.load %arg1[%c141] : memref<150xf32, #tpu.memory_space<smem>>
    %441 = vector.broadcast %440 : f32 to vector<12x60xf32>
    %442 = arith.mulf %419, %441 : vector<12x60xf32>
    %443 = arith.addf %418, %442 : vector<12x60xf32>
    %444 = vector.extract_strided_slice %4 {offsets = [3, 0], sizes = [12, 60], strides = [1, 1]} : vector<16x60xf32> to vector<12x60xf32>
    %c17 = arith.constant 17 : index
    %445 = memref.load %arg1[%c17] : memref<150xf32, #tpu.memory_space<smem>>
    %446 = vector.broadcast %445 : f32 to vector<12x60xf32>
    %447 = arith.mulf %444, %446 : vector<12x60xf32>
    %448 = arith.addf %423, %447 : vector<12x60xf32>
    %c42 = arith.constant 42 : index
    %449 = memref.load %arg1[%c42] : memref<150xf32, #tpu.memory_space<smem>>
    %450 = vector.broadcast %449 : f32 to vector<12x60xf32>
    %451 = arith.mulf %444, %450 : vector<12x60xf32>
    %452 = arith.addf %427, %451 : vector<12x60xf32>
    %c67 = arith.constant 67 : index
    %453 = memref.load %arg1[%c67] : memref<150xf32, #tpu.memory_space<smem>>
    %454 = vector.broadcast %453 : f32 to vector<12x60xf32>
    %455 = arith.mulf %444, %454 : vector<12x60xf32>
    %456 = arith.addf %431, %455 : vector<12x60xf32>
    %c92 = arith.constant 92 : index
    %457 = memref.load %arg1[%c92] : memref<150xf32, #tpu.memory_space<smem>>
    %458 = vector.broadcast %457 : f32 to vector<12x60xf32>
    %459 = arith.mulf %444, %458 : vector<12x60xf32>
    %460 = arith.addf %435, %459 : vector<12x60xf32>
    %c117 = arith.constant 117 : index
    %461 = memref.load %arg1[%c117] : memref<150xf32, #tpu.memory_space<smem>>
    %462 = vector.broadcast %461 : f32 to vector<12x60xf32>
    %463 = arith.mulf %444, %462 : vector<12x60xf32>
    %464 = arith.addf %439, %463 : vector<12x60xf32>
    %c142 = arith.constant 142 : index
    %465 = memref.load %arg1[%c142] : memref<150xf32, #tpu.memory_space<smem>>
    %466 = vector.broadcast %465 : f32 to vector<12x60xf32>
    %467 = arith.mulf %444, %466 : vector<12x60xf32>
    %468 = arith.addf %443, %467 : vector<12x60xf32>
    %469 = vector.extract_strided_slice %5 {offsets = [3, 0], sizes = [12, 60], strides = [1, 1]} : vector<16x60xf32> to vector<12x60xf32>
    %c18 = arith.constant 18 : index
    %470 = memref.load %arg1[%c18] : memref<150xf32, #tpu.memory_space<smem>>
    %471 = vector.broadcast %470 : f32 to vector<12x60xf32>
    %472 = arith.mulf %469, %471 : vector<12x60xf32>
    %473 = arith.addf %448, %472 : vector<12x60xf32>
    %c43 = arith.constant 43 : index
    %474 = memref.load %arg1[%c43] : memref<150xf32, #tpu.memory_space<smem>>
    %475 = vector.broadcast %474 : f32 to vector<12x60xf32>
    %476 = arith.mulf %469, %475 : vector<12x60xf32>
    %477 = arith.addf %452, %476 : vector<12x60xf32>
    %c68 = arith.constant 68 : index
    %478 = memref.load %arg1[%c68] : memref<150xf32, #tpu.memory_space<smem>>
    %479 = vector.broadcast %478 : f32 to vector<12x60xf32>
    %480 = arith.mulf %469, %479 : vector<12x60xf32>
    %481 = arith.addf %456, %480 : vector<12x60xf32>
    %c93 = arith.constant 93 : index
    %482 = memref.load %arg1[%c93] : memref<150xf32, #tpu.memory_space<smem>>
    %483 = vector.broadcast %482 : f32 to vector<12x60xf32>
    %484 = arith.mulf %469, %483 : vector<12x60xf32>
    %485 = arith.addf %460, %484 : vector<12x60xf32>
    %c118 = arith.constant 118 : index
    %486 = memref.load %arg1[%c118] : memref<150xf32, #tpu.memory_space<smem>>
    %487 = vector.broadcast %486 : f32 to vector<12x60xf32>
    %488 = arith.mulf %469, %487 : vector<12x60xf32>
    %489 = arith.addf %464, %488 : vector<12x60xf32>
    %c143 = arith.constant 143 : index
    %490 = memref.load %arg1[%c143] : memref<150xf32, #tpu.memory_space<smem>>
    %491 = vector.broadcast %490 : f32 to vector<12x60xf32>
    %492 = arith.mulf %469, %491 : vector<12x60xf32>
    %493 = arith.addf %468, %492 : vector<12x60xf32>
    %494 = vector.extract_strided_slice %6 {offsets = [3, 0], sizes = [12, 60], strides = [1, 1]} : vector<16x60xf32> to vector<12x60xf32>
    %c19 = arith.constant 19 : index
    %495 = memref.load %arg1[%c19] : memref<150xf32, #tpu.memory_space<smem>>
    %496 = vector.broadcast %495 : f32 to vector<12x60xf32>
    %497 = arith.mulf %494, %496 : vector<12x60xf32>
    %498 = arith.addf %473, %497 : vector<12x60xf32>
    %c44 = arith.constant 44 : index
    %499 = memref.load %arg1[%c44] : memref<150xf32, #tpu.memory_space<smem>>
    %500 = vector.broadcast %499 : f32 to vector<12x60xf32>
    %501 = arith.mulf %494, %500 : vector<12x60xf32>
    %502 = arith.addf %477, %501 : vector<12x60xf32>
    %c69 = arith.constant 69 : index
    %503 = memref.load %arg1[%c69] : memref<150xf32, #tpu.memory_space<smem>>
    %504 = vector.broadcast %503 : f32 to vector<12x60xf32>
    %505 = arith.mulf %494, %504 : vector<12x60xf32>
    %506 = arith.addf %481, %505 : vector<12x60xf32>
    %c94 = arith.constant 94 : index
    %507 = memref.load %arg1[%c94] : memref<150xf32, #tpu.memory_space<smem>>
    %508 = vector.broadcast %507 : f32 to vector<12x60xf32>
    %509 = arith.mulf %494, %508 : vector<12x60xf32>
    %510 = arith.addf %485, %509 : vector<12x60xf32>
    %c119 = arith.constant 119 : index
    %511 = memref.load %arg1[%c119] : memref<150xf32, #tpu.memory_space<smem>>
    %512 = vector.broadcast %511 : f32 to vector<12x60xf32>
    %513 = arith.mulf %494, %512 : vector<12x60xf32>
    %514 = arith.addf %489, %513 : vector<12x60xf32>
    %c144 = arith.constant 144 : index
    %515 = memref.load %arg1[%c144] : memref<150xf32, #tpu.memory_space<smem>>
    %516 = vector.broadcast %515 : f32 to vector<12x60xf32>
    %517 = arith.mulf %494, %516 : vector<12x60xf32>
    %518 = arith.addf %493, %517 : vector<12x60xf32>
    %519 = vector.extract_strided_slice %2 {offsets = [4, 0], sizes = [12, 60], strides = [1, 1]} : vector<16x60xf32> to vector<12x60xf32>
    %c20 = arith.constant 20 : index
    %520 = memref.load %arg1[%c20] : memref<150xf32, #tpu.memory_space<smem>>
    %521 = vector.broadcast %520 : f32 to vector<12x60xf32>
    %522 = arith.mulf %519, %521 : vector<12x60xf32>
    %523 = arith.addf %498, %522 : vector<12x60xf32>
    %c45 = arith.constant 45 : index
    %524 = memref.load %arg1[%c45] : memref<150xf32, #tpu.memory_space<smem>>
    %525 = vector.broadcast %524 : f32 to vector<12x60xf32>
    %526 = arith.mulf %519, %525 : vector<12x60xf32>
    %527 = arith.addf %502, %526 : vector<12x60xf32>
    %c70 = arith.constant 70 : index
    %528 = memref.load %arg1[%c70] : memref<150xf32, #tpu.memory_space<smem>>
    %529 = vector.broadcast %528 : f32 to vector<12x60xf32>
    %530 = arith.mulf %519, %529 : vector<12x60xf32>
    %531 = arith.addf %506, %530 : vector<12x60xf32>
    %c95 = arith.constant 95 : index
    %532 = memref.load %arg1[%c95] : memref<150xf32, #tpu.memory_space<smem>>
    %533 = vector.broadcast %532 : f32 to vector<12x60xf32>
    %534 = arith.mulf %519, %533 : vector<12x60xf32>
    %535 = arith.addf %510, %534 : vector<12x60xf32>
    %c120 = arith.constant 120 : index
    %536 = memref.load %arg1[%c120] : memref<150xf32, #tpu.memory_space<smem>>
    %537 = vector.broadcast %536 : f32 to vector<12x60xf32>
    %538 = arith.mulf %519, %537 : vector<12x60xf32>
    %539 = arith.addf %514, %538 : vector<12x60xf32>
    %c145 = arith.constant 145 : index
    %540 = memref.load %arg1[%c145] : memref<150xf32, #tpu.memory_space<smem>>
    %541 = vector.broadcast %540 : f32 to vector<12x60xf32>
    %542 = arith.mulf %519, %541 : vector<12x60xf32>
    %543 = arith.addf %518, %542 : vector<12x60xf32>
    %544 = vector.extract_strided_slice %3 {offsets = [4, 0], sizes = [12, 60], strides = [1, 1]} : vector<16x60xf32> to vector<12x60xf32>
    %c21 = arith.constant 21 : index
    %545 = memref.load %arg1[%c21] : memref<150xf32, #tpu.memory_space<smem>>
    %546 = vector.broadcast %545 : f32 to vector<12x60xf32>
    %547 = arith.mulf %544, %546 : vector<12x60xf32>
    %548 = arith.addf %523, %547 : vector<12x60xf32>
    %c46 = arith.constant 46 : index
    %549 = memref.load %arg1[%c46] : memref<150xf32, #tpu.memory_space<smem>>
    %550 = vector.broadcast %549 : f32 to vector<12x60xf32>
    %551 = arith.mulf %544, %550 : vector<12x60xf32>
    %552 = arith.addf %527, %551 : vector<12x60xf32>
    %c71 = arith.constant 71 : index
    %553 = memref.load %arg1[%c71] : memref<150xf32, #tpu.memory_space<smem>>
    %554 = vector.broadcast %553 : f32 to vector<12x60xf32>
    %555 = arith.mulf %544, %554 : vector<12x60xf32>
    %556 = arith.addf %531, %555 : vector<12x60xf32>
    %c96 = arith.constant 96 : index
    %557 = memref.load %arg1[%c96] : memref<150xf32, #tpu.memory_space<smem>>
    %558 = vector.broadcast %557 : f32 to vector<12x60xf32>
    %559 = arith.mulf %544, %558 : vector<12x60xf32>
    %560 = arith.addf %535, %559 : vector<12x60xf32>
    %c121 = arith.constant 121 : index
    %561 = memref.load %arg1[%c121] : memref<150xf32, #tpu.memory_space<smem>>
    %562 = vector.broadcast %561 : f32 to vector<12x60xf32>
    %563 = arith.mulf %544, %562 : vector<12x60xf32>
    %564 = arith.addf %539, %563 : vector<12x60xf32>
    %c146 = arith.constant 146 : index
    %565 = memref.load %arg1[%c146] : memref<150xf32, #tpu.memory_space<smem>>
    %566 = vector.broadcast %565 : f32 to vector<12x60xf32>
    %567 = arith.mulf %544, %566 : vector<12x60xf32>
    %568 = arith.addf %543, %567 : vector<12x60xf32>
    %569 = vector.extract_strided_slice %4 {offsets = [4, 0], sizes = [12, 60], strides = [1, 1]} : vector<16x60xf32> to vector<12x60xf32>
    %c22 = arith.constant 22 : index
    %570 = memref.load %arg1[%c22] : memref<150xf32, #tpu.memory_space<smem>>
    %571 = vector.broadcast %570 : f32 to vector<12x60xf32>
    %572 = arith.mulf %569, %571 : vector<12x60xf32>
    %573 = arith.addf %548, %572 : vector<12x60xf32>
    %c47 = arith.constant 47 : index
    %574 = memref.load %arg1[%c47] : memref<150xf32, #tpu.memory_space<smem>>
    %575 = vector.broadcast %574 : f32 to vector<12x60xf32>
    %576 = arith.mulf %569, %575 : vector<12x60xf32>
    %577 = arith.addf %552, %576 : vector<12x60xf32>
    %c72 = arith.constant 72 : index
    %578 = memref.load %arg1[%c72] : memref<150xf32, #tpu.memory_space<smem>>
    %579 = vector.broadcast %578 : f32 to vector<12x60xf32>
    %580 = arith.mulf %569, %579 : vector<12x60xf32>
    %581 = arith.addf %556, %580 : vector<12x60xf32>
    %c97 = arith.constant 97 : index
    %582 = memref.load %arg1[%c97] : memref<150xf32, #tpu.memory_space<smem>>
    %583 = vector.broadcast %582 : f32 to vector<12x60xf32>
    %584 = arith.mulf %569, %583 : vector<12x60xf32>
    %585 = arith.addf %560, %584 : vector<12x60xf32>
    %c122 = arith.constant 122 : index
    %586 = memref.load %arg1[%c122] : memref<150xf32, #tpu.memory_space<smem>>
    %587 = vector.broadcast %586 : f32 to vector<12x60xf32>
    %588 = arith.mulf %569, %587 : vector<12x60xf32>
    %589 = arith.addf %564, %588 : vector<12x60xf32>
    %c147 = arith.constant 147 : index
    %590 = memref.load %arg1[%c147] : memref<150xf32, #tpu.memory_space<smem>>
    %591 = vector.broadcast %590 : f32 to vector<12x60xf32>
    %592 = arith.mulf %569, %591 : vector<12x60xf32>
    %593 = arith.addf %568, %592 : vector<12x60xf32>
    %594 = vector.extract_strided_slice %5 {offsets = [4, 0], sizes = [12, 60], strides = [1, 1]} : vector<16x60xf32> to vector<12x60xf32>
    %c23 = arith.constant 23 : index
    %595 = memref.load %arg1[%c23] : memref<150xf32, #tpu.memory_space<smem>>
    %596 = vector.broadcast %595 : f32 to vector<12x60xf32>
    %597 = arith.mulf %594, %596 : vector<12x60xf32>
    %598 = arith.addf %573, %597 : vector<12x60xf32>
    %c48 = arith.constant 48 : index
    %599 = memref.load %arg1[%c48] : memref<150xf32, #tpu.memory_space<smem>>
    %600 = vector.broadcast %599 : f32 to vector<12x60xf32>
    %601 = arith.mulf %594, %600 : vector<12x60xf32>
    %602 = arith.addf %577, %601 : vector<12x60xf32>
    %c73 = arith.constant 73 : index
    %603 = memref.load %arg1[%c73] : memref<150xf32, #tpu.memory_space<smem>>
    %604 = vector.broadcast %603 : f32 to vector<12x60xf32>
    %605 = arith.mulf %594, %604 : vector<12x60xf32>
    %606 = arith.addf %581, %605 : vector<12x60xf32>
    %c98 = arith.constant 98 : index
    %607 = memref.load %arg1[%c98] : memref<150xf32, #tpu.memory_space<smem>>
    %608 = vector.broadcast %607 : f32 to vector<12x60xf32>
    %609 = arith.mulf %594, %608 : vector<12x60xf32>
    %610 = arith.addf %585, %609 : vector<12x60xf32>
    %c123 = arith.constant 123 : index
    %611 = memref.load %arg1[%c123] : memref<150xf32, #tpu.memory_space<smem>>
    %612 = vector.broadcast %611 : f32 to vector<12x60xf32>
    %613 = arith.mulf %594, %612 : vector<12x60xf32>
    %614 = arith.addf %589, %613 : vector<12x60xf32>
    %c148 = arith.constant 148 : index
    %615 = memref.load %arg1[%c148] : memref<150xf32, #tpu.memory_space<smem>>
    %616 = vector.broadcast %615 : f32 to vector<12x60xf32>
    %617 = arith.mulf %594, %616 : vector<12x60xf32>
    %618 = arith.addf %593, %617 : vector<12x60xf32>
    %619 = vector.extract_strided_slice %6 {offsets = [4, 0], sizes = [12, 60], strides = [1, 1]} : vector<16x60xf32> to vector<12x60xf32>
    %c24 = arith.constant 24 : index
    %620 = memref.load %arg1[%c24] : memref<150xf32, #tpu.memory_space<smem>>
    %621 = vector.broadcast %620 : f32 to vector<12x60xf32>
    %622 = arith.mulf %619, %621 : vector<12x60xf32>
    %623 = arith.addf %598, %622 : vector<12x60xf32>
    %c49 = arith.constant 49 : index
    %624 = memref.load %arg1[%c49] : memref<150xf32, #tpu.memory_space<smem>>
    %625 = vector.broadcast %624 : f32 to vector<12x60xf32>
    %626 = arith.mulf %619, %625 : vector<12x60xf32>
    %627 = arith.addf %602, %626 : vector<12x60xf32>
    %c74 = arith.constant 74 : index
    %628 = memref.load %arg1[%c74] : memref<150xf32, #tpu.memory_space<smem>>
    %629 = vector.broadcast %628 : f32 to vector<12x60xf32>
    %630 = arith.mulf %619, %629 : vector<12x60xf32>
    %631 = arith.addf %606, %630 : vector<12x60xf32>
    %c99 = arith.constant 99 : index
    %632 = memref.load %arg1[%c99] : memref<150xf32, #tpu.memory_space<smem>>
    %633 = vector.broadcast %632 : f32 to vector<12x60xf32>
    %634 = arith.mulf %619, %633 : vector<12x60xf32>
    %635 = arith.addf %610, %634 : vector<12x60xf32>
    %c124 = arith.constant 124 : index
    %636 = memref.load %arg1[%c124] : memref<150xf32, #tpu.memory_space<smem>>
    %637 = vector.broadcast %636 : f32 to vector<12x60xf32>
    %638 = arith.mulf %619, %637 : vector<12x60xf32>
    %639 = arith.addf %614, %638 : vector<12x60xf32>
    %c149 = arith.constant 149 : index
    %640 = memref.load %arg1[%c149] : memref<150xf32, #tpu.memory_space<smem>>
    %641 = vector.broadcast %640 : f32 to vector<12x60xf32>
    %642 = arith.mulf %619, %641 : vector<12x60xf32>
    %643 = arith.addf %618, %642 : vector<12x60xf32>
    %644 = tpu.concatenate %623, %627, %631, %635, %639, %643 in 0 : vector<12x60xf32>, vector<12x60xf32>, vector<12x60xf32>, vector<12x60xf32>, vector<12x60xf32>, vector<12x60xf32> -> vector<72x60xf32>
    %cst = arith.constant 0.000000e+00 : f32
    %645 = vector.broadcast %cst : f32 to vector<72x60xf32>
    %646 = arith.maximumf %644, %645 : vector<72x60xf32>
    %647 = vector.extract_strided_slice %646 {offsets = [0, 0], sizes = [72, 59], strides = [1, 1]} : vector<72x60xf32> to vector<72x59xf32>
    %648 = vector.extract_strided_slice %646 {offsets = [0, 1], sizes = [72, 59], strides = [1, 1]} : vector<72x60xf32> to vector<72x59xf32>
    %649 = arith.maximumf %647, %648 : vector<72x59xf32>
    %c0_9 = arith.constant 0 : index
    %c0_10 = arith.constant 0 : index
    %650 = vector.load %arg3[%c0_9, %c0_10] : memref<59x128xf32, #tpu.memory_space<vmem>>, vector<59x128xf32>
    %cst_11 = arith.constant dense<0.000000e+00> : vector<72x128xf32>
    %651 = tpu.matmul %649, %650, %cst_11 {dimension_numbers = #tpu.dot_dimension_numbers<[1], [0], [0], [1], [0, 0, 1, 1], [], []>} : vector<72x59xf32>, vector<59x128xf32>, vector<72x128xf32> -> vector<72x128xf32>
    %652 = vector.extract_strided_slice %651 {offsets = [0, 0], sizes = [71, 128], strides = [1, 1]} : vector<72x128xf32> to vector<71x128xf32>
    %653 = vector.extract_strided_slice %651 {offsets = [1, 0], sizes = [71, 128], strides = [1, 1]} : vector<72x128xf32> to vector<71x128xf32>
    %654 = arith.maximumf %652, %653 : vector<71x128xf32>
    %c0_12 = arith.constant 0 : index
    %c0_13 = arith.constant 0 : index
    %655 = vector.load %arg4[%c0_12, %c0_13] : memref<40x71xf32, #tpu.memory_space<vmem>>, vector<40x71xf32>
    %cst_14 = arith.constant dense<0.000000e+00> : vector<40x128xf32>
    %656 = tpu.matmul %655, %654, %cst_14 {dimension_numbers = #tpu.dot_dimension_numbers<[1], [0], [0], [1], [0, 0, 1, 1], [], []>} : vector<40x71xf32>, vector<71x128xf32>, vector<40x128xf32> -> vector<40x128xf32>
    %c0_15 = arith.constant 0 : index
    %c0_16 = arith.constant 0 : index
    %c0_17 = arith.constant 0 : index
    %657 = vector.load %arg6[%c0_15, %c0_16, %c0_17] : memref<1x40x128xf32, #tpu.memory_space<vmem>>, vector<1x40x128xf32>
    %658 = vector.shape_cast %657 : vector<1x40x128xf32> to vector<40x128xf32>
    %659 = vector.shape_cast %656 : vector<40x128xf32> to vector<1x40x128xf32>
    tpu.vector_store %arg6[%c0_15, %c0_16, %c0_17], %659 {strides = array<i32>} : memref<1x40x128xf32, #tpu.memory_space<vmem>>, vector<1x40x128xf32>,
    return
  }
  func.func @transform_0(%arg0: i32) -> i32 {
    %c0_i32 = arith.constant 0 : i32
    %c0_i32_0 = arith.constant 0 : i32
    return %c0_i32 : i32
  }
  func.func @transform_1(%arg0: i32) -> i32 {
    %c0_i32 = arith.constant 0 : i32
    %c0_i32_0 = arith.constant 0 : i32
    return %c0_i32 : i32
  }
  func.func @transform_2(%arg0: i32) -> (i32, i32) {
    %c0_i32 = arith.constant 0 : i32
    %c0_i32_0 = arith.constant 0 : i32
    %c0_i32_1 = arith.constant 0 : i32
    return %c0_i32, %c0_i32_0 : i32, i32
  }
  func.func @transform_3(%arg0: i32) -> (i32, i32) {
    %c0_i32 = arith.constant 0 : i32
    %c0_i32_0 = arith.constant 0 : i32
    %c0_i32_1 = arith.constant 0 : i32
    return %c0_i32, %c0_i32_0 : i32, i32
  }
  func.func @transform_4(%arg0: i32) -> (i32, i32, i32) {
    %c0_i32 = arith.constant 0 : i32
    %c0_i32_0 = arith.constant 0 : i32
    %c0_i32_1 = arith.constant 0 : i32
    return %arg0, %c0_i32, %c0_i32_0 : i32, i32, i32
  }
  func.func @transform_5(%arg0: i32) -> (i32, i32, i32) {
    %c0_i32 = arith.constant 0 : i32
    %c0_i32_0 = arith.constant 0 : i32
    %c0_i32_1 = arith.constant 0 : i32
    return %arg0, %c0_i32, %c0_i32_0 : i32, i32, i32
  }
}

</mosaic_0001>

<bundles_post_ra>
// kernel: tpu_custom_call.1
= control target key start
LH: loop header
LB: loop body
LE: loop exit
PB: predicated region body
PF: predicated region fallthrough
CT: control target
= control target key end

     0   :  { %10 = vsyncpa [#allocation5], 0  ;;  %s6681_s0 = inlined_call_operand.hbm [shape: f32[150], index: 0, kind: input, shape index: {}]   ;;  %s6682_s1 = inlined_call_operand.vmem [shape: f32[6], index: 1, kind: input, shape index: {}]   ;;  %s6683_s2 = inlined_call_operand.hbm [shape: f32[59,128], index: 2, kind: input, shape index: {}]   ;;  %s6684_s3 = inlined_call_operand.hbm [shape: f32[40,71], index: 3, kind: input, shape index: {}]   ;;  %s6685_s4 = inlined_call_operand.hbm [shape: f32[2,16,64], index: 4, kind: input, shape index: {}]   ;;  %s6686_s5 = inlined_call_operand.hbm [shape: f32[2,40,128], index: 5, kind: output, shape index: {}]  }
   0x1   :  { %11 = vsyncpa [#allocation6], 0 }
   0x2   :  { %12 = vsyncpa [#allocation3], 0 }
   0x3   :  { %13 = vsyncpa [#allocation10], 0 }
   0x4   :  { %14 = vsyncpa [#allocation4], 0 }
   0x5   :  { %16 = vsyncpa [#allocation4 + $0x1], 0  ;;  %s3825_s18 = smov 0   ;;  %s3827_s19 = smov 0  }
   0x6   :  { %s3829_s20 = smov 0   ;;  %s3831_s21 = smov 0  }
   0x7 LB: > { %s3846_s22 = sadd.s32 4294967295, %s3775_s21   ;;  %s3150_s23 = sadd.s32 4294967294, %s3775_s21   ;;  %s3775_s21 = sphi %s3831_s21, %s7166_s21   ;;  %s3771_s20 = sphi %s3829_s20, %s7165_s20   ;;  %s3767_s19 = sphi %s3827_s19, %s7164_s19   ;;  %s3763_s18 = sphi %s3825_s18, %s7163_s18  }
   0x8   : > { %p126_p0 = scmp.ne.s32.totalorder %s3767_s19, %s3763_s18  ;;  %p6687_p1 = scmp.eq.s32.totalorder %s3846_s22, 0 }
   0x9   : > { %p156_p3 = scmp.eq.s32.totalorder %s3150_s23, 1  ;;  %p3151_p5 = scmp.ge.s32.totalorder %s3775_s21, 1 }
   0xa   : > { %p3855_p4 = por %p6687_p1, %p126_p0  ;;  %p163_p7 = scmp.lt.s32.totalorder %s3775_s21, 3 }
   0xb   : > { %p3860_p6 = por %p156_p3, %p126_p0  ;;  %s3777_s27 = smov [#allocation8]  }
   0xc   : > { %s6749_s24 = scalar_select %p3855_p4, 1, 0 }
   0xd   : > { %s6750_s25 = scalar_select %p3860_p6, 1, 0 }
   0xe   : > { %p3865_p8 = pnand %p3151_p5, %p163_p7  ;;  %s195_s28 = sshll.u32 %s3777_s27, 4  ;;  %s196_s28 = int_to_ptr.vmem [resolvable:$true] %s195_s28 }
   0xf   : > { %s185_s7 = sshll.u32 %s6682_s1, 4  ;;  %s3579_s10 = scalar_lea.hbm %s6683_s2, 1024  ;;  %s3881_s7 = int_to_ptr.vmem [resolvable:$true] %s185_s7 }
  0x10   : > { %s6751_s26 = scalar_select %p3865_p8, 1, 0 }
  0x11   : > { %p3494_p9 = pneg %p3865_p8  ;;  %p3580_p12 = scmp.ne.s32.totalorder %s6683_s2, %s3579_s10 }
  0x12   : > { %p3586_p5 = scmp.lt.u32.totalorder %s3579_s10, %s6683_s2 }
  0x13   : > { %p3874_p11 = pnand %p3494_p9, %p6687_p1 }
  0x15   : > { %p3891_p13 = pneg %p3874_p11 }
  0x17   : > { %p3582_p0 = pnand %p3891_p13, %p3580_p12 }
  0x19   : > { %p3583_p3 = pneg %p3582_p0 }
  0x1b   : > { %p3588_p7 = pnand %p3586_p5, %p3583_p3 }
  0x1d   : > { %3591 = shalt.err (!%p3588_p7)
}
  0x1e   : > { %s3592_s16 = scalar_lea.vmem %s196_s28, 1024  ;;  %p3600_p2 = scmp.lt.s32.totalorder %s196_s28, %s196_s28 }
  0x1f   : > { %p3593_p9 = scmp.ne.s32.totalorder %s196_s28, %s3592_s16  ;;  %p3601_p6 = scmp.lt.s32.totalorder %s3592_s16, %s3592_s16 }
  0x21   : > { %p3595_p10 = pnand %p3593_p9, %p3891_p13  ;;  %p3602_p4 = por %p3601_p6, %p3600_p2 }
  0x23   : > { %p3596_p1 = pneg %p3595_p10 }
  0x25   : > { %p3603_p8 = pnand %p3602_p4, %p3596_p1 }
  0x27   : > { %3606 = shalt.err (!%p3603_p8)
}
  0x28   : > { %s3778_s17 = smov 128   ;;  %s3779_s23 = smov 8  }
  0x29   : > { %3503 = dma.hbm_to_vmem [thread:$0]  (!%p3874_p11), %s6683_s2, 1024, %s196_s28, [#allocation3], %s3778_s17, %s3778_s17, %s3779_s23  }
  0x2a   : > { %s3607_s9 = scalar_lea.hbm %s6681_s0, 32 }
  0x2b   : > { %p3608_p1 = scmp.ne.s32.totalorder %s6681_s0, %s3607_s9  ;;  %p3614_p6 = scmp.lt.u32.totalorder %s3607_s9, %s6681_s0 }
  0x2d   : > { %p3610_p2 = pnand %p3608_p1, %p3891_p13 }
  0x2f   : > { %p3611_p4 = pneg %p3610_p2 }
  0x31   : > { %p3616_p8 = pnand %p3614_p6, %p3611_p4 }
  0x33   : > { %3619 = shalt.err (!%p3616_p8)
}
  0x34   : > { %s3780_s15 = smov [#allocation2]   ;;  %s3620_s27 = scalar_lea.vmem %s3881_s7, 16 }
  0x35   : > { %3497 = dma.hbm_to_smem (!%p3874_p11), %s6681_s0, 32, %s3780_s15, [#allocation5]  }
  0x36   : > { %p3621_p10 = scmp.ne.s32.totalorder %s3881_s7, %s3620_s27  ;;  %p3628_p3 = scmp.lt.s32.totalorder %s3881_s7, %s3881_s7 }
  0x37   : > { %p3629_p5 = scmp.lt.s32.totalorder %s3620_s27, %s3620_s27 }
  0x38   : > { %p3623_p12 = pnand %p3621_p10, %p3891_p13 }
  0x39   : > { %p3630_p7 = por %p3629_p5, %p3628_p3 }
  0x3a   : > { %p3624_p0 = pneg %p3623_p12 }
  0x3c   : > { %p3631_p9 = pnand %p3630_p7, %p3624_p0 }
  0x3e   : > { %3634 = shalt.err (!%p3631_p9)
}
  0x3f   : > { %s3781_s30 = smov [#allocation7]   ;;  %s3782_s6 = smov [#allocation9]  }
  0x40   : > { %3500 = dma.vmem_to_smem (!%p3874_p11), %s3881_s7, 16, %s3781_s30, [#allocation6]  }
  0x41   : > { %s208_s8 = sshll.u32 %s3782_s6, 4  ;;  %s3635_s11 = scalar_lea.hbm %s6684_s3, 640  ;;  %s209_s8 = int_to_ptr.vmem [resolvable:$true] %s208_s8 }
  0x42   : > { %p3636_p1 = scmp.ne.s32.totalorder %s6684_s3, %s3635_s11  ;;  %p3642_p6 = scmp.lt.u32.totalorder %s3635_s11, %s6684_s3 }
  0x44   : > { %p3638_p2 = pnand %p3636_p1, %p3891_p13 }
  0x46   : > { %p3639_p4 = pneg %p3638_p2 }
  0x48   : > { %p3644_p8 = pnand %p3642_p6, %p3639_p4 }
  0x4a   : > { %3647 = shalt.err (!%p3644_p8)
}
  0x4b   : > { %s3648_s7 = scalar_lea.vmem %s209_s8, 640  ;;  %p3656_p3 = scmp.lt.s32.totalorder %s209_s8, %s209_s8 }
  0x4c   : > { %p3649_p10 = scmp.ne.s32.totalorder %s209_s8, %s3648_s7  ;;  %p3657_p5 = scmp.lt.s32.totalorder %s3648_s7, %s3648_s7 }
  0x4e   : > { %p3651_p12 = pnand %p3649_p10, %p3891_p13  ;;  %p3658_p7 = por %p3657_p5, %p3656_p3 }
  0x50   : > { %p3652_p0 = pneg %p3651_p12 }
  0x52   : > { %p3659_p9 = pnand %p3658_p7, %p3652_p0 }
  0x54   : > { %3662 = shalt.err (!%p3659_p9)
}
  0x55   : > { %3506 = dma.hbm_to_vmem [thread:$0]  (!%p3874_p11), %s6684_s3, 640, %s209_s8, [#allocation10], %s3778_s17, %s3778_s17, %s3779_s23  }
  0x56   : > { %s3957_s29 = sadd.s32 1, %s3775_s21   ;;  %s113_s13 = sadd.s32 1, %s3771_s20 }
  0x57   : > { %s110_s30 = ssub.s32 %s3775_s21, %s3957_s29  ;;  %p120_p13 = scmp.ne.s32.totalorder %s3771_s20, %s3767_s19 }
  0x58   : > { %p111_p1 = scmp.eq.s32.totalorder %s110_s30, 0  ;;  %p121_p2 = scmp.eq.s32.totalorder %s3775_s21, 0 }
  0x59   : > { %p6754_p4 = scmp.eq.s32.totalorder %s3846_s22, 1  ;;  %p3519_p8 = scmp.lt.s32.totalorder %s3775_s21, 2 }
  0x5a   : > { %s3973_s9 = scalar_select %p111_p1, %s3771_s20, %s113_s13  }
  0x5b   : > { %p3967_p6 = por %p6754_p4, %p120_p13  ;;  %p122_p10 = por %p121_p2, %p120_p13 }
  0x5c   : > { %s222_s10 = sand.u32 1, %s3775_s21   ;;  %s224_s11 = sand.u32 1, %s3771_s20  }
  0x5d   : > { %s3157_s8 = sshll.u32 %s224_s11, 4  ;;  %s3339_s12 = sshll.u32 %s3775_s21, 8 }
  0x5e   : > { %s3981_s28 = scalar_lea.hbm %s6685_s4, %s3339_s12  ;;  %s226_s7 = scalar_lea.vmem [#allocation11], %s3157_s8 }
  0x5f   : > { %s233_s16 = sshll.u32 %s226_s7, 4  ;;  %p3983_p11 = pnand %p3519_p8, %p122_p10  ;;  %s3987_s16 = int_to_ptr.vmem [resolvable:$true] %s233_s16 }
  0x60   : > { %s3989_s13 = scalar_lea.sflag [#allocation3], %s222_s10  ;;  %s3663_s30 = scalar_lea.hbm %s3981_s28, 256 }
  0x61   : > { %p3664_p12 = scmp.ne.s32.totalorder %s3981_s28, %s3663_s30  ;;  %p3665_p0 = pneg %p3983_p11 }
  0x62   : > { %s3668_s12 = scalar_lea.hbm %s6685_s4, 512  ;;  %p3669_p7 = scmp.lt.u32.totalorder %s3981_s28, %s6685_s4 }
  0x63   : > { %p3666_p3 = pnand %p3665_p0, %p3664_p12  ;;  %p3670_p9 = scmp.lt.u32.totalorder %s3668_s12, %s3663_s30 }
  0x64   : > { %p3672_p1 = scmp.lt.u32.totalorder %s3663_s30, %s3981_s28 }
  0x65   : > { %p3667_p5 = pneg %p3666_p3  ;;  %p3671_p13 = por %p3670_p9, %p3669_p7 }
  0x67   : > { %p3673_p2 = por %p3672_p1, %p3671_p13 }
  0x69   : > { %p3674_p4 = pnand %p3673_p2, %p3667_p5 }
  0x6b   : > { %3677 = shalt.err (!%p3674_p4)
}
  0x6c   : > { %s3678_s10 = scalar_lea.vmem %s3987_s16, 256  ;;  %s3783_s7 = smov [#allocation11]  }
  0x6d   : > { %p3679_p8 = scmp.ne.s32.totalorder %s3987_s16, %s3678_s10  ;;  %s3683_s11 = sshll.u32 %s3783_s7, 4  ;;  %s3684_s11 = int_to_ptr.vmem [resolvable:$false] %s3683_s11 }
  0x6e   : > { %s3685_s8 = scalar_lea.vmem %s3684_s11, 512  ;;  %p3686_p3 = scmp.lt.s32.totalorder %s3987_s16, %s3684_s11 }
  0x6f   : > { %p3681_p10 = pnand %p3679_p8, %p3665_p0  ;;  %p3687_p7 = scmp.lt.s32.totalorder %s3685_s8, %s3678_s10 }
  0x71   : > { %p3682_p12 = pneg %p3681_p10  ;;  %p3688_p9 = por %p3687_p7, %p3686_p3 }
  0x73   : > { %p3689_p13 = pnand %p3688_p9, %p3682_p12 }
  0x75   : > { %3692 = shalt.err (!%p3689_p13)
}
  0x76   : > { %3510 = dma.hbm_to_vmem [thread:$0]  (!%p3983_p11), %s3981_s28, 256, %s3987_s16, %s3989_s13, %s3778_s17, %s3778_s17, %s3779_s23  }
  0x77   : > { %p6757_p0 = scmp.ne.s32.totalorder %s6751_s26, 0 }
  0x79   : > { %245 = sbr.rel (%p6757_p0) target bundleno = 1349 (0x545), region = 40 }
  0x80   : > { %p6758_p5 = scmp.eq.s32.totalorder %s3846_s22, 0 }
  0x82   : > { %3738 = dma.done.wait (%p6758_p5), [#allocation5], 32   ;;  %p6759_p1 = pmov %p6758_p5 }
  0x84   : > { %3740 = vsyncadd (%p6759_p1), [#allocation5], 4294967264  ;;  %p6760_p2 = pmov %p6759_p1 }
  0x85   : > { %p6761_p4 = pmov %p6759_p1 }
  0x86   : > { %3742 = dma.done.wait (%p6760_p2), [#allocation6], 16  }
  0x87   : > { %3744 = vsyncadd (%p6761_p4), [#allocation6], 4294967280  ;;  %p6762_p8 = pmov %p6759_p1 }
  0x88   : > { %p6763_p11 = pmov %p6759_p1 }
  0x89   : > { %3746 = dma.done.wait (%p6762_p8), [#allocation3], 1024  }
  0x8a   : > { %3748 = vsyncadd (%p6763_p11), [#allocation3], 4294966272  ;;  %p6764_p10 = pmov %p6759_p1 }
  0x8b   : > { %p6765_p12 = pmov %p6759_p1 }
  0x8c   : > { %3750 = dma.done.wait (%p6764_p10), [#allocation10], 640  }
  0x8d   : > { %3752 = vsyncadd (%p6765_p12), [#allocation10], 4294966656  ;;  %s263_s26 = sand.u32 1, %s3846_s22   ;;  %s4040_s17 = sand.u32 1, %s3767_s19  }
  0x8e   : > { %s3165_s23 = sshll.u32 %s4040_s17, 4  ;;  %s264_s28 = scalar_lea.sflag [#allocation3], %s263_s26 }
  0x8f   : > { %s4043_s16 = scalar_lea.vmem [#allocation11], %s3165_s23  ;;  %p6766_p3 = scmp.ne.s32.totalorder %s6749_s24, 0 }
  0x91   : > { %3754 = dma.done.wait (%p6766_p3), %s264_s28, 256  }
  0x92   : > { %3756 = vsyncadd (%p6766_p3), %s264_s28, 4294967040 }
  0x93   : > { %272 = sfence }
  0x94   : > { %s3182_s27 = sld [smem:[#allocation2 + $0x2]]  ;;  %s3176_s13 = sld [smem:[#allocation2 + $0x1]]  ;;  %v4054_v0 = vld [vmem:[%s4043_s16] sm:$0xff]  ;;  %v4057_v1 = vld [vmem:[%s4043_s16 + $0x8] sm:$0xff]  ;;  %vm687_vm0 = vcmask 1046528   ;;  %vm1174_vm1 = vcmask 1045504  }
  0x95   : > { %s3177_s30 = sld [smem:[#allocation2 + $0x1a]]  ;;  %s4049_s12 = sld [smem:[#allocation2 + $0x3]]  ;;  %vm1661_vm2 = vcmask 1044480   ;;  %vm2148_vm3 = vcmask 1043456   ;;  %vm2743_vm4 = vcmask 1042432   ;;  %vm3789_vm5 = vmmov 1  }
  0x96   : > { %s4051_s14 = sld [smem:[#allocation2 + $0x1b]]  ;;  %s6727_s24 = smov 126   ;;  %vm3458_vm6 = vmpackc.low %vm2743_vm4, %vm3789_vm5  ;;  %vm3790_vm7 = vmmov 0   ;;  %vm2715_vm8 = vcmask 482304   ;;  %vm2906_vm9 = vcmask 580608  }
  0x97   : > { %s3785_s15 = smov 127   ;;  %s4066_s10 = sld [smem:[#allocation2 + $0x4]] }
  0x98   : > { %s4069_s7 = sld [smem:[#allocation2 + $0x1c]]  ;;  %s3206_s11 = sld [smem:[#allocation2 + $0x6]] }
  0x99   : > { %s3786_s8 = smov 125   ;;  %s4080_s26 = sld [smem:[#allocation2 + $0x1d]] }
  0x9a   : > { %v430_v2 = vstv %s3182_s27  ;;  %v346_v4 = vstv %s3176_s13  ;;  %s3207_s23 = sld [smem:[#allocation2 + $0x1f]]  ;;  %s3787_s27 = smov 124  }
  0x9b   : > { %v431_v3 = vmul.f32 %v430_v2, %v4054_v0  ;;  %v347_v5 = vmul.f32 %v346_v4, %v4054_v0  ;;  %v360_v6 = vstv %s3177_s30  ;;  %v348_v7 = vmul.f32 %v346_v4, %v4057_v1  ;;  %s3212_s28 = sld [smem:[#allocation2 + $0x7]]  ;;  %s4102_s13 = sld [smem:[#allocation2 + $0x33]] }
  0x9c   : > { %v361_v8 = vmul.f32 %v360_v6, %v4054_v0  ;;  %v514_v9 = vstv %s4049_s12  ;;  %v444_v10 = vstv %s4051_s14  ;;  %v432_v13 = vmul.f32 %v430_v2, %v4057_v1  ;;  %s3213_s30 = sld [smem:[#allocation2 + $0x20]]  ;;  %s4113_s12 = sld [smem:[#allocation2 + $0x4c]] }
  0x9d   : > { %435 = vrot.lane.b32.xlu1 %v431_v3, %s6727_s24  ;;  %351 = vrot.lane.b32.xlu0 %v347_v5, %s3785_s15  ;;  %v515_v11 = vmul.f32 %v514_v9, %v4054_v0  ;;  %v445_v12 = vmul.f32 %v444_v10, %v4054_v0  ;;  %v362_v14 = vmul.f32 %v360_v6, %v4057_v1  ;;  %v598_v15 = vstv %s4066_s10  ;;  %s3218_s14 = sld [smem:[#allocation2 + $0x8]]  ;;  %s4120_s10 = sld [smem:[#allocation2 + $0x34]] }
  0x9e   : > { %v528_v16 = vstv %s4069_s7  ;;  %v599_v17 = vmul.f32 %v598_v15, %v4054_v0  ;;  %v761_v19 = vstv %s3206_s11  ;;  %v516_v20 = vmul.f32 %v514_v9, %v4057_v1  ;;  %s3219_s7 = sld [smem:[#allocation2 + $0x21]]  ;;  %s4136_s11 = sld [smem:[#allocation2 + $0x4d]] }
  0x9f   : > { %v529_v18 = vmul.f32 %v528_v16, %v4054_v0  ;;  %v446_v21 = vmul.f32 %v444_v10, %v4057_v1  ;;  %v612_v22 = vstv %s4080_s26  ;;  %v762_v23 = vmul.f32 %v761_v19, %v4054_v0  ;;  %s3224_s26 = sld [smem:[#allocation2 + $0x9]] }
  0xa0   : > { %v763_v24 = vmul.f32 %v761_v19, %v4057_v1  ;;  %v778_v25 = vstv %s3207_s23  ;;  %v530_v26 = vmul.f32 %v528_v16, %v4057_v1  ;;  %v613_v27 = vmul.f32 %v612_v22, %v4054_v0  ;;  %s4154_s23 = sld [smem:[#allocation2 + $0x35]] }
  0xa1   : > { %353 = vrot.lane.b32.xlu1 %v348_v7, %s3785_s15  ;;  %365 = vrot.lane.b32.xlu0 %v361_v8, %s3785_s15  ;;  %v779_v28 = vmul.f32 %v778_v25, %v4054_v0  ;;  %v766_v29 = vrot.slane %v762_v23, 1  ;;  %v4100_v31 = vmul.f32 %v778_v25, %v4057_v1  ;;  %v863_v32 = vstv %s3212_s28  ;;  %s3225_s28 = sld [smem:[#allocation2 + $0x22]] }
  0xa2   : > { %v767_v30 = vrot.slane %v763_v24, 1  ;;  %v600_v33 = vmul.f32 %v598_v15, %v4057_v1  ;;  %v864_v34 = vmul.f32 %v863_v32, %v4054_v0  ;;  %v4111_v38 = vmul.f32 %v863_v32, %v4057_v1 }
  0xa3   : > { %v783_v36 = vrot.slane %v779_v28, 1  ;;  %v784_v37 = vrot.slane %v4100_v31, 1  ;;  %v614_v40 = vmul.f32 %v612_v22, %v4057_v1  ;;  %v374_v43 = vstv %s4102_s13  ;;  %s4166_s13 = sld [smem:[#allocation2 + $0x4e]] }
  0xa4   : > { %v768_v35 = vsel %vm687_vm0, %v766_v29, %v767_v30  ;;  %v868_v41 = vrot.slane %v864_v34, 1  ;;  %v869_v42 = vrot.slane %v4111_v38, 1  ;;  %v880_v44 = vstv %s3213_s30  ;;  %s4179_s30 = sld [smem:[#allocation2 + $0x36]] }
  0xa5   : > { %519 = vrot.lane.b32.xlu1 %v515_v11, %s3786_s8  ;;  %449 = vrot.lane.b32.xlu0 %v445_v12, %s6727_s24  ;;  %v785_v39 = vsel %vm687_vm0, %v783_v36, %v784_v37  ;;  %v375_v46 = vmul.f32 %v374_v43, %v4054_v0  ;;  %v388_v47 = vstv %s4113_s12  ;;  %v881_v48 = vmul.f32 %v880_v44, %v4054_v0  ;;  %s4184_s12 = sld [smem:[#allocation2 + $0x4f]] }
  0xa6   : > { %v870_v45 = vsel %vm687_vm0, %v868_v41, %v869_v42  ;;  %v4130_v49 = vmul.f32 %v880_v44, %v4057_v1  ;;  %v965_v50 = vstv %s3218_s14  ;;  %v389_v51 = vmul.f32 %v388_v47, %v4054_v0  ;;  %s3236_s14 = sld [smem:[#allocation2 + $0xb]] }
  0xa7   : > { %v458_v52 = vstv %s4120_s10  ;;  %v885_v53 = vrot.slane %v881_v48, 1  ;;  %v966_v55 = vmul.f32 %v965_v50, %v4054_v0  ;;  %v967_v56 = vmul.f32 %v965_v50, %v4057_v1  ;;  %s3208_s10 = sld [smem:[#allocation2 + $0x38]] }
  0xa8   : > { %v886_v54 = vrot.slane %v4130_v49, 1  ;;  %v459_v57 = vmul.f32 %v458_v52, %v4054_v0  ;;  %v982_v61 = vstv %s3219_s7  ;;  %v376_v62 = vmul.f32 %v374_v43, %v4057_v1  ;;  %s3237_s7 = sld [smem:[#allocation2 + $0x24]] }
  0xa9   : > { %437 = vrot.lane.b32.xlu1 %v432_v13, %s6727_s24  ;;  %367 = vrot.lane.b32.xlu0 %v362_v14, %s3785_s15  ;;  %v970_v59 = vrot.slane %v966_v55, 1  ;;  %v971_v60 = vrot.slane %v967_v56, 1  ;;  %v472_v63 = vstv %s4136_s11  ;;  %v983_v2 = vmul.f32 %v982_v61, %v4054_v0  ;;  %s3242_s11 = sld [smem:[#allocation2 + $0xc]] }
  0xaa   : > { %v887_v58 = vsel %vm687_vm0, %v885_v53, %v886_v54  ;;  %v4151_v3 = vmul.f32 %v982_v61, %v4057_v1  ;;  %v1067_v5 = vstv %s3224_s26  ;;  %v473_v6 = vmul.f32 %v472_v63, %v4054_v0  ;;  %s4206_s26 = sld [smem:[#allocation2 + $0x51]] }
  0xab   : > { %v972_v4 = vsel %vm687_vm0, %v970_v59, %v971_v60  ;;  %v987_v7 = vrot.slane %v983_v2, 1  ;;  %v1068_v9 = vmul.f32 %v1067_v5, %v4054_v0  ;;  %v1069_v10 = vmul.f32 %v1067_v5, %v4057_v1 }
  0xac   : > { %v988_v8 = vrot.slane %v4151_v3, 1  ;;  %v542_v14 = vstv %s4154_s23  ;;  %v390_v19 = vmul.f32 %v388_v47, %v4057_v1  ;;  %v556_v22 = vstv %s4166_s13  ;;  %s3243_s23 = sld [smem:[#allocation2 + $0x25]]  ;;  %s4230_s13 = sld [smem:[#allocation2 + $0x39]] }
  0xad   : > { %603 = vrot.lane.b32.xlu1 %v599_v17, %s3787_s27  ;;  %533 = vrot.lane.b32.xlu0 %v529_v18, %s3786_s8  ;;  %v1072_v12 = vrot.slane %v1068_v9, 1  ;;  %v1073_v13 = vrot.slane %v1069_v10, 1  ;;  %v543_v16 = vmul.f32 %v542_v14, %v4054_v0  ;;  %v1084_v17 = vstv %s3225_s28  ;;  %s3248_s28 = sld [smem:[#allocation2 + $0xd]] }
  0xae   : > { %v989_v11 = vsel %vm687_vm0, %v987_v7, %v988_v8  ;;  %v460_v18 = vmul.f32 %v458_v52, %v4057_v1  ;;  %v557_v23 = vmul.f32 %v556_v22, %v4054_v0  ;;  %v474_v28 = vmul.f32 %v472_v63, %v4057_v1 }
  0xaf   : > { %v1074_v15 = vsel %vm687_vm0, %v1072_v12, %v1073_v13  ;;  %v1248_v31 = vstv %s3236_s14  ;;  %v795_v38 = vstv %s3208_s10  ;;  %s4266_s14 = sld [smem:[#allocation2 + $0x7e]] }
  0xb0   : > { %v1249_v34 = vmul.f32 %v1248_v31, %v4054_v0  ;;  %v796_v41 = vmul.f32 %v795_v38, %v4054_v0  ;;  %s3249_s10 = sld [smem:[#allocation2 + $0x26]] }
  0xb1   : > { %521 = vrot.lane.b32.xlu1 %v516_v20, %s3786_s8  ;;  %451 = vrot.lane.b32.xlu0 %v446_v21, %s6727_s24  ;;  %v1085_v20 = vmul.f32 %v1084_v17, %v4054_v0  ;;  %v1086_v21 = vmul.f32 %v1084_v17, %v4057_v1 }
  0xb2   : > { %v1253_v36 = vrot.slane %v1249_v34, 2  ;;  %v800_v48 = vrot.slane %v796_v41, 1  ;;  %v1367_v61 = vstv %s3243_s23  ;;  %v897_v7 = vstv %s4230_s13  ;;  %s3221_s23 = sld [smem:[#allocation2 + $0x53]]  ;;  %s3255_s13 = sld [smem:[#allocation2 + $0x27]] }
  0xb3   : > { %v1089_v24 = vrot.slane %v1085_v20, 1  ;;  %v1090_v25 = vrot.slane %v1086_v21, 1  ;;  %v1368_v2 = vmul.f32 %v1367_v61, %v4054_v0  ;;  %v4256_v5 = vmul.f32 %v1367_v61, %v4057_v1 }
  0xb5   : > { %535 = vrot.lane.b32.xlu1 %v530_v26, %s3786_s8  ;;  %617 = vrot.lane.b32.xlu0 %v613_v27, %s3787_s27  ;;  %v1091_v26 = vsel %vm687_vm0, %v1089_v24, %v1090_v25  ;;  %v626_v27 = vstv %s4179_s30  ;;  %s4238_s30 = sld [smem:[#allocation2 + $0x65]]  ;;  %v1372_v9 = vrot.slane %v1368_v2, 2  ;;  %v416_v24 = vstv %s4266_s14  ;;  %s4466_s14 = sld [smem:[#allocation2 + $0x68]] }
  0xb6   : > { %v627_v29 = vmul.f32 %v626_v27, %v4054_v0  ;;  %v628_v47 = vmul.f32 %v626_v27, %v4057_v1 }
  0xb8   : > { %v1016_v61 = vstv %s3221_s23  ;;  %s3267_s23 = sld [smem:[#allocation2 + $0x29]] }
  0xb9   : > { %769 = vrot.lane.b32.xlu1 %v768_v35, %s3785_s15  ;;  %605 = vrot.lane.b32.xlu0 %v600_v33, %s3787_s27  ;;  %v544_v33 = vmul.f32 %v542_v14, %v4057_v1  ;;  %v4201_v35 = vmul.f32 %v1248_v31, %v4057_v1  ;;  %v898_v14 = vmul.f32 %v897_v7, %v4054_v0 }
  0xbb   : > { %v902_v20 = vrot.slane %v898_v14, 1 }
  0xbd   : > { %786 = vrot.lane.b32.xlu1 %v785_v39, %s3785_s15  ;;  %619 = vrot.lane.b32.xlu0 %v614_v40, %s3787_s27  ;;  %v1265_v39 = vstv %s3237_s7  ;;  %v558_v40 = vmul.f32 %v556_v22, %v4057_v1  ;;  %s3220_s7 = sld [smem:[#allocation2 + $0x3a]] }
  0xbe   : > { %v1266_v44 = vmul.f32 %v1265_v39, %v4054_v0 }
  0xc0   : > { %v1270_v52 = vrot.slane %v1266_v44, 2 }
  0xc1   : > { %871 = vrot.lane.b32.xlu1 %v870_v45, %s6727_s24  ;;  %379 = vrot.lane.b32.xlu0 %v375_v46, %s3785_s15  ;;  %v4218_v45 = vmul.f32 %v1265_v39, %v4057_v1  ;;  %v1350_v46 = vstv %s3242_s11  ;;  %s4299_s11 = sld [smem:[#allocation2 + $0xe]] }
  0xc2   : > { %v1351_v50 = vmul.f32 %v1350_v46, %v4054_v0 }
  0xc3   : > { %v1271_v53 = vrot.slane %v4218_v45, 2 }
  0xc4   : > { %v1355_v56 = vrot.slane %v1351_v50, 2 }
  0xc5   : > { %771 = vrot.lane.b32.xlu1 %v767_v30, %s3785_s15  ;;  %393 = vrot.lane.b32.xlu0 %v389_v51, %s3785_s15  ;;  %v640_v30 = vstv %s4184_s12  ;;  %v4226_v51 = vmul.f32 %v1350_v46, %v4057_v1  ;;  %s3215_s12 = sld [smem:[#allocation2 + $0x52]] }
  0xc6   : > { %v641_v32 = vmul.f32 %v640_v30, %v4054_v0 }
  0xc7   : > { %v1554_v44 = vstv %s4299_s11  ;;  %s3266_s11 = sld [smem:[#allocation2 + $0x10]] }
  0xc9   : > { %463 = vrot.lane.b32.xlu1 %v459_v57, %s6727_s24  ;;  %888 = vrot.lane.b32.xlu0 %v887_v58, %s6727_s24  ;;  %v1356_v57 = vrot.slane %v4226_v51, 2  ;;  %v1272_v58 = vsel %vm1174_vm1, %v1270_v52, %v1271_v53  ;;  %v1555_v52 = vmul.f32 %v1554_v44, %v4054_v0 }
  0xcb   : > { %v1357_v63 = vsel %vm1174_vm1, %v1355_v56, %v1356_v57  ;;  %v914_v22 = vstv %s3215_s12  ;;  %s3226_s12 = sld [smem:[#allocation2 + $0x3b]] }
  0xcc   : > { %v4297_v27 = vmul.f32 %v914_v22, %v4057_v1 }
  0xcd   : > { %381 = vrot.lane.b32.xlu1 %v376_v62, %s3785_s15  ;;  %973 = vrot.lane.b32.xlu0 %v972_v4, %s3786_s8  ;;  %v642_v62 = vmul.f32 %v640_v30, %v4057_v1 }
  0xce   : > { %v920_v34 = vrot.slane %v4297_v27, 1 }
  0xd1   : > { %788 = vrot.lane.b32.xlu1 %v784_v37, %s3785_s15  ;;  %477 = vrot.lane.b32.xlu0 %v473_v6, %s6727_s24  ;;  %v1254_v37 = vrot.slane %v4201_v35, 2  ;;  %v1452_v6 = vstv %s3248_s28  ;;  %v999_v35 = vstv %s3220_s7  ;;  %s4349_s28 = sld [smem:[#allocation2 + $0x7f]]  ;;  %s3227_s7 = sld [smem:[#allocation2 + $0x54]] }
  0xd2   : > { %v1453_v10 = vmul.f32 %v1452_v6, %v4054_v0  ;;  %v1000_v39 = vmul.f32 %v999_v35, %v4054_v0 }
  0xd3   : > { %v1255_v43 = vsel %vm1174_vm1, %v1253_v36, %v1254_v37 }
  0xd4   : > { %v1457_v17 = vrot.slane %v1453_v10, 2 }
  0xd5   : > { %990 = vrot.lane.b32.xlu1 %v989_v11, %s3786_s8  ;;  %873 = vrot.lane.b32.xlu0 %v869_v42, %s6727_s24  ;;  %v4213_v42 = vmul.f32 %v795_v38, %v4057_v1  ;;  %v4264_v11 = vmul.f32 %v1452_v6, %v4057_v1 }
  0xd7   : > { %v801_v49 = vrot.slane %v4213_v42, 1  ;;  %v500_v6 = vstv %s4349_s28  ;;  %s3239_s28 = sld [smem:[#allocation2 + $0x56]] }
  0xd9   : > { %1075 = vrot.lane.b32.xlu1 %v1074_v15, %s3787_s27  ;;  %547 = vrot.lane.b32.xlu0 %v543_v16, %s3786_s8  ;;  %v802_v55 = vsel %vm687_vm0, %v800_v48, %v801_v49  ;;  %v4274_v15 = vmul.f32 %v897_v7, %v4057_v1 }
  0xdb   : > { %v903_v21 = vrot.slane %v4274_v15, 1 }
  0xdd   : > { %465 = vrot.lane.b32.xlu1 %v460_v18, %s6727_s24  ;;  %395 = vrot.lane.b32.xlu0 %v390_v19, %s3785_s15  ;;  %v1458_v18 = vrot.slane %v4264_v11, 2 }
  0xe1   : > { %890 = vrot.lane.b32.xlu1 %v886_v54, %s6727_s24  ;;  %561 = vrot.lane.b32.xlu0 %v557_v23, %s3786_s8  ;;  %v812_v54 = vstv %s4206_s26  ;;  %v1459_v23 = vsel %vm1174_vm1, %v1457_v17, %v1458_v18  ;;  %s4313_s26 = sld [smem:[#allocation2 + $0x66]] }
  0xe2   : > { %v813_v59 = vmul.f32 %v812_v54, %v4054_v0 }
  0xe4   : > { %v817_v3 = vrot.slane %v813_v59, 1 }
  0xe5   : > { %1092 = vrot.lane.b32.xlu1 %v1091_v26, %s3787_s27  ;;  %975 = vrot.lane.b32.xlu0 %v971_v60, %s3786_s8  ;;  %v4245_v60 = vmul.f32 %v812_v54, %v4057_v1  ;;  %v915_v26 = vmul.f32 %v914_v22, %v4054_v0  ;;  %v4347_v54 = vmul.f32 %v1554_v44, %v4057_v1 }
  0xe7   : > { %v818_v4 = vrot.slane %v4245_v60, 1  ;;  %v486_v50 = vstv %s4313_s26  ;;  %v1560_v59 = vrot.slane %v4347_v54, 2  ;;  %s4490_s26 = sld [smem:[#allocation2 + $0x81]] }
  0xe9   : > { %479 = vrot.lane.b32.xlu1 %v474_v28, %s6727_s24  ;;  %631 = vrot.lane.b32.xlu0 %v627_v29, %s3787_s27  ;;  %v819_v12 = vsel %vm687_vm0, %v817_v3, %v818_v4  ;;  %v1469_v28 = vstv %s3249_s10  ;;  %v417_v29 = vmul.f32 %v416_v24, %v4054_v0  ;;  %s4417_s10 = sld [smem:[#allocation2 + $0x80]] }
  0xea   : > { %v1470_v30 = vmul.f32 %v1469_v28, %v4054_v0  ;;  %v4308_v31 = vmul.f32 %v1469_v28, %v4057_v1 }
  0xec   : > { %v1475_v38 = vrot.slane %v4308_v31, 2  ;;  %v502_v31 = vmul.f32 %v500_v6, %v4057_v1 }
  0xed   : > { %645 = vrot.lane.b32.xlu1 %v641_v32, %s3787_s27  ;;  %549 = vrot.lane.b32.xlu0 %v544_v33, %s3786_s8  ;;  %v919_v33 = vrot.slane %v915_v26, 1 }
  0xf1   : > { %1077 = vrot.lane.b32.xlu1 %v1073_v13, %s3787_s27  ;;  %992 = vrot.lane.b32.xlu0 %v988_v8, %s3786_s8  ;;  %v402_v8 = vstv %s4238_s30  ;;  %v1373_v13 = vrot.slane %v4256_v5, 2  ;;  %s4391_s30 = sld [smem:[#allocation2 + $0x67]]  ;;  %v584_v5 = vstv %s4417_s10 }
  0xf2   : > { %v403_v16 = vmul.f32 %v402_v8, %v4054_v0  ;;  %v404_v51 = vmul.f32 %v402_v8, %v4057_v1  ;;  %v501_v8 = vmul.f32 %v500_v6, %v4054_v0  ;;  %s4640_s10 = sld [smem:[#allocation2 + $0x57]] }
  0xf3   : > { %v1374_v19 = vsel %vm1174_vm1, %v1372_v9, %v1373_v13 }
  0xf5   : > { %563 = vrot.lane.b32.xlu1 %v558_v40, %s3786_s8  ;;  %1256 = vrot.lane.b32.xlu0 %v1255_v43, %s3785_s15  ;;  %v4324_v40 = vmul.f32 %v999_v35, %v4057_v1  ;;  %v921_v43 = vsel %vm687_vm0, %v919_v33, %v920_v34 }
  0xf7   : > { %v1005_v48 = vrot.slane %v4324_v40, 1  ;;  %v570_v60 = vstv %s4391_s30  ;;  %s3273_s30 = sld [smem:[#allocation2 + $0x2a]] }
  0xf8   : > { %v571_v15 = vmul.f32 %v570_v60, %v4054_v0  ;;  %v572_v54 = vmul.f32 %v570_v60, %v4057_v1 }
  0xf9   : > { %1094 = vrot.lane.b32.xlu1 %v1090_v25, %s3787_s27  ;;  %633 = vrot.lane.b32.xlu0 %v628_v47, %s3787_s27  ;;  %v904_v25 = vsel %vm687_vm0, %v902_v20, %v903_v21  ;;  %v1004_v47 = vrot.slane %v1000_v39, 1 }
  0xfd   : > { %803 = vrot.lane.b32.xlu1 %v802_v55, %s3785_s15  ;;  %1273 = vrot.lane.b32.xlu0 %v1272_v58, %s3785_s15  ;;  %v487_v55 = vmul.f32 %v486_v50, %v4054_v0  ;;  %v1559_v58 = vrot.slane %v1555_v52, 2 }
  0xff   : > { %v1561_v3 = vsel %vm1174_vm1, %v1559_v58, %v1560_v59 }
 0x101   : > { %647 = vrot.lane.b32.xlu1 %v642_v62, %s3787_s27  ;;  %1358 = vrot.lane.b32.xlu0 %v1357_v63, %s6727_s24  ;;  %v4375_v63 = vmul.f32 %v1016_v61, %v4057_v1 }
 0x103   : > { %v1022_v10 = vrot.slane %v4375_v63, 1 }
 0x105   : > { %1258 = vrot.lane.b32.xlu1 %v1254_v37, %s3785_s15  ;;  %820 = vrot.lane.b32.xlu0 %v819_v12, %s3785_s15  ;;  %v1474_v37 = vrot.slane %v1470_v30, 2 }
 0x107   : > { %v1476_v46 = vsel %vm1174_vm1, %v1474_v37, %v1475_v38 }
 0x109   : > { %407 = vrot.lane.b32.xlu1 %v403_v16, %s3785_s15  ;;  %1375 = vrot.lane.b32.xlu0 %v1374_v19, %s6727_s24  ;;  %v1571_v16 = vstv %s3255_s13  ;;  %s3272_s13 = sld [smem:[#allocation2 + $0x11]] }
 0x10a   : > { %v1572_v20 = vmul.f32 %v1571_v16, %v4054_v0  ;;  %v4408_v22 = vmul.f32 %v1571_v16, %v4057_v1 }
 0x10c   : > { %v1576_v26 = vrot.slane %v1572_v20, 2  ;;  %v1577_v28 = vrot.slane %v4408_v22, 2 }
 0x10d   : > { %1460 = vrot.lane.b32.xlu1 %v1459_v23, %s3786_s8  ;;  %905 = vrot.lane.b32.xlu0 %v904_v25, %s6727_s24  ;;  %v1101_v25 = vstv %s3226_s12  ;;  %s3238_s12 = sld [smem:[#allocation2 + $0x3d]] }
 0x10e   : > { %v4424_v30 = vmul.f32 %v1101_v25, %v4057_v1  ;;  %v1578_v35 = vsel %vm1174_vm1, %v1576_v26, %v1577_v28 }
 0x10f   : > { %v4310_v32 = vpop.permute.xlu1 %435  ;;  %v4315_v36 = vpop.permute.xlu0 %351 }
 0x110   : > { %v1107_v39 = vrot.slane %v4424_v30, 1 }
 0x111   : > { %805 = vrot.lane.b32.xlu1 %v801_v49, %s3785_s15  ;;  %421 = vrot.lane.b32.xlu0 %v417_v29, %s3785_s15  ;;  %v1102_v29 = vmul.f32 %v1101_v25, %v4054_v0 }
 0x113   : > { %v4326_v41 = vpop.permute.xlu1 %353  ;;  %v4331_v42 = vpop.permute.xlu0 %365  ;;  %v1106_v37 = vrot.slane %v1102_v29, 1 }
 0x115   : > { %1275 = vrot.lane.b32.xlu1 %v1271_v53, %s3785_s15  ;;  %922 = vrot.lane.b32.xlu0 %v921_v43, %s6727_s24  ;;  %v1006_v53 = vsel %vm687_vm0, %v1004_v47, %v1005_v48  ;;  %v1108_v43 = vsel %vm687_vm0, %v1106_v37, %v1107_v39  ;;  %v585_v47 = vmul.f32 %v584_v5, %v4054_v0 }
 0x117   : > { %v4342_v49 = vpop.permute.xlu1 %519  ;;  %v4351_v45 = vpop.permute.xlu0 %449 }
 0x119   : > { %1477 = vrot.lane.b32.xlu1 %v1476_v46, %s3786_s8  ;;  %1360 = vrot.lane.b32.xlu0 %v1356_v57, %s6727_s24  ;;  %v1017_v57 = vmul.f32 %v1016_v61, %v4054_v0  ;;  %v1118_v46 = vstv %s3227_s7  ;;  %s4574_s7 = sld [smem:[#allocation2 + $0x3e]] }
 0x11b   : > { %v4363_v56 = vpop.permute.xlu1 %437  ;;  %v4366_v62 = vpop.permute.xlu0 %367  ;;  %v1021_v9 = vrot.slane %v1017_v57, 1 }
 0x11d   : > { %1007 = vrot.lane.b32.xlu1 %v1006_v53, %s3786_s8  ;;  %491 = vrot.lane.b32.xlu0 %v487_v55, %s6727_s24  ;;  %v1023_v17 = vsel %vm687_vm0, %v1021_v9, %v1022_v10  ;;  %v1119_v53 = vmul.f32 %v1118_v46, %v4054_v0  ;;  %v4472_v55 = vmul.f32 %v1118_v46, %v4057_v1  ;;  %v1837_v46 = vstv %s3272_s13  ;;  %s4654_s13 = sld [smem:[#allocation2 + $0x2b]] }
 0x11e   : > { %v1838_v60 = vmul.f32 %v1837_v46, %v4054_v0 }
 0x11f   : > { %v4377_v2 = vpop.permute.xlu1 %603  ;;  %v4383_v7 = vpop.permute.xlu0 %533 }
 0x121   : > { %409 = vrot.lane.b32.xlu1 %v404_v51, %s3785_s15  ;;  %1562 = vrot.lane.b32.xlu0 %v1561_v3, %s3787_s27  ;;  %v6695_v51 = vrot.slane %v4472_v55, 1  ;;  %v1735_v3 = vstv %s3266_s11  ;;  %s4578_s11 = sld [smem:[#allocation2 + $0x6a]] }
 0x122   : > { %v4499_v20 = vmul.f32 %v1735_v3, %v4057_v1 }
 0x123   : > { %v4393_v12 = vpop.permute.xlu1 %521  ;;  %v4395_v14 = vpop.permute.xlu0 %451 }
 0x124   : > { %v6694_v25 = vrot.slane %v4499_v20, 3 }
 0x125   : > { %822 = vrot.lane.b32.xlu1 %v818_v4, %s3785_s15  ;;  %505 = vrot.lane.b32.xlu0 %v501_v8, %s6727_s24  ;;  %v654_v8 = vstv %s4466_s14  ;;  %s4619_s14 = sld [smem:[#allocation2 + $0x83]] }
 0x126   : > { %v655_v27 = vmul.f32 %v654_v8, %v4054_v0 }
 0x127   : > { %v4404_v19 = vpop.permute.xlu1 %535  ;;  %v4410_v23 = vpop.permute.xlu0 %617 }
 0x129   : > { %1024 = vrot.lane.b32.xlu1 %v1023_v17, %s3786_s8  ;;  %907 = vrot.lane.b32.xlu0 %v903_v21, %s6727_s24  ;;  %v1736_v17 = vmul.f32 %v1735_v3, %v4054_v0  ;;  %v4551_v3 = vmul.f32 %v1837_v46, %v4057_v1  ;;  %v1299_v46 = vstv %s3239_s28  ;;  %s4681_s28 = sld [smem:[#allocation2 + $0x6b]] }
 0x12b   : > { %v4419_v4 = vpop.permute.xlu1 %769  ;;  %v4426_v33 = vpop.permute.xlu0 %605 }
 0x12d   : > { %1462 = vrot.lane.b32.xlu1 %v1458_v18, %s3786_s8  ;;  %1377 = vrot.lane.b32.xlu0 %v1373_v13, %s6727_s24  ;;  %v418_v18 = vmul.f32 %v416_v24, %v4057_v1  ;;  %v488_v24 = vmul.f32 %v486_v50, %v4057_v1  ;;  %v1123_v50 = vrot.slane %v1119_v53, 1 }
 0x12f   : > { %v4437_v21 = vpop.permute.xlu1 %786  ;;  %v4443_v11 = vpop.permute.xlu0 %619  ;;  %v1125_v16 = vsel %vm687_vm0, %v1123_v50, %v6695_v51 }
 0x131   : > { %575 = vrot.lane.b32.xlu1 %v571_v15, %s3786_s8  ;;  %1579 = vrot.lane.b32.xlu0 %v1578_v35, %s3787_s27  ;;  %v1752_v35 = vstv %s3267_s23  ;;  %s4596_s23 = sld [smem:[#allocation2 + $0x12]] }
 0x132   : > { %v4540_v6 = vmul.f32 %v1752_v35, %v4057_v1 }
 0x133   : > { %v4451_v13 = vpop.permute.xlu1 %871  ;;  %v4456_v44 = vpop.permute.xlu0 %379 }
 0x134   : > { %6767 = vst [vmem:[#allocation19_spill] sm:$0xff] %v4451_v13  ;;  %6768 = vst [vmem:[#allocation20_spill] sm:$0xff] %v4456_v44  ;;  %v6691_v50 = vrot.slane %v4540_v6, 3 }
 0x135   : > { %423 = vrot.lane.b32.xlu1 %v418_v18, %s3785_s15  ;;  %1109 = vrot.lane.b32.xlu0 %v1108_v43, %s3787_s27 }
 0x137   : > { %v4468_v52 = vpop.permute.xlu1 %771  ;;  %v4474_v58 = vpop.permute.xlu0 %393 }
 0x138   : > { %6769 = vst [vmem:[#allocation21_spill] sm:$0xff] %v4468_v52  ;;  %6770 = vst [vmem:[#allocation22_spill] sm:$0xff] %v4474_v58 }
 0x139   : > { %589 = vrot.lane.b32.xlu1 %v585_v47, %s3786_s8  ;;  %493 = vrot.lane.b32.xlu0 %v488_v24, %s6727_s24  ;;  %v1282_v24 = vstv %s3238_s12  ;;  %s4670_s12 = sld [smem:[#allocation2 + $0x3f]] }
 0x13b   : > { %v4478_v61 = vpop.permute.xlu1 %463  ;;  %v4481_v57 = vpop.permute.xlu0 %888 }
 0x13c   : > { %6771 = vst [vmem:[#allocation23_spill] sm:$0xff] %v4478_v61  ;;  %6772 = vst [vmem:[#allocation24_spill] sm:$0xff] %v4481_v57 }
 0x13d   : > { %1009 = vrot.lane.b32.xlu1 %v1005_v48, %s3786_s8  ;;  %924 = vrot.lane.b32.xlu0 %v920_v34, %s6727_s24  ;;  %v1740_v48 = vrot.slane %v1736_v17, 3  ;;  %v1283_v17 = vmul.f32 %v1282_v24, %v4054_v0 }
 0x13f   : > { %v4492_v9 = vpop.permute.xlu1 %381  ;;  %v4501_v40 = vpop.permute.xlu0 %973  ;;  %v1742_v15 = vsel %vm1661_vm2, %v1740_v48, %v6694_v25 }
 0x140   : > { %6773 = vst [vmem:[#allocation25_spill] sm:$0xff] %v4492_v9  ;;  %6774 = vst [vmem:[#allocation26_spill] sm:$0xff] %v4501_v40 }
 0x141   : > { %1479 = vrot.lane.b32.xlu1 %v1475_v38, %s3786_s8  ;;  %1126 = vrot.lane.b32.xlu0 %v1125_v16, %s3787_s27  ;;  %v6693_v38 = vstv %s4490_s26 }
 0x142   : > { %v669_v18 = vmul.f32 %v6693_v38, %v4054_v0 }
 0x143   : > { %v4510_v34 = vpop.permute.xlu1 %788  ;;  %v4513_v26 = vpop.permute.xlu0 %477 }
 0x144   : > { %6775 = vst [vmem:[#allocation27_spill] sm:$0xff] %v4510_v34  ;;  %6776 = vst [vmem:[#allocation28_spill] sm:$0xff] %v4513_v26 }
 0x145   : > { %659 = vrot.lane.b32.xlu1 %v655_v27, %s3787_s27  ;;  %1564 = vrot.lane.b32.xlu0 %v1560_v59, %s3787_s27  ;;  %v1753_v59 = vmul.f32 %v1752_v35, %v4054_v0  ;;  %v4557_v27 = vmul.f32 %v1282_v24, %v4057_v1  ;;  %v6690_v35 = vrot.slane %v4551_v3, 3  ;;  %v1854_v24 = vstv %s3273_s30  ;;  %s4722_s30 = sld [smem:[#allocation2 + $0x84]] }
 0x147   : > { %v4523_v29 = vpop.permute.xlu1 %990  ;;  %v4528_v37 = vpop.permute.xlu0 %873  ;;  %v1757_v53 = vrot.slane %v1753_v59, 3  ;;  %v6692_v59 = vrot.slane %v4557_v27, 2 }
 0x148   : > { %6777 = vst [vmem:[#allocation29_spill] sm:$0xff] %v4523_v29  ;;  %6778 = vst [vmem:[#allocation30_spill] sm:$0xff] %v4528_v37 }
 0x149   : > { %507 = vrot.lane.b32.xlu1 %v502_v31, %s6727_s24  ;;  %1743 = vrot.lane.b32.xlu0 %v1742_v15, %s3785_s15  ;;  %v1759_v31 = vsel %vm1661_vm2, %v1757_v53, %v6691_v50  ;;  %v1842_v15 = vrot.slane %v1838_v60, 3 }
 0x14b   : > { %v4542_v43 = vpop.permute.xlu1 %1075  ;;  %v4544_v47 = vpop.permute.xlu0 %547  ;;  %v1844_v63 = vsel %vm1661_vm2, %v1842_v15, %v6690_v35  ;;  %v586_v15 = vmul.f32 %v584_v5, %v4057_v1 }
 0x14c   : > { %6779 = vst [vmem:[#allocation31_spill] sm:$0xff] %v4542_v43  ;;  %6780 = vst [vmem:[#allocation32_spill] sm:$0xff] %v4544_v47 }
 0x14d   : > { %673 = vrot.lane.b32.xlu1 %v669_v18, %s3787_s27  ;;  %577 = vrot.lane.b32.xlu0 %v572_v54, %s3786_s8  ;;  %v1287_v54 = vrot.slane %v1283_v17, 2  ;;  %v1855_v17 = vmul.f32 %v1854_v24, %v4054_v0 }
 0x14f   : > { %v4553_v16 = vpop.permute.xlu1 %465  ;;  %v4559_v48 = vpop.permute.xlu0 %395  ;;  %v1289_v60 = vsel %vm1174_vm1, %v1287_v54, %v6692_v59 }
 0x150   : > { %6781 = vst [vmem:[#allocation33_spill] sm:$0xff] %v4553_v16  ;;  %6782 = vst [vmem:[#allocation34_spill] sm:$0xff] %v4559_v48 }
 0x151   : > { %1111 = vrot.lane.b32.xlu1 %v1107_v39, %s3787_s27  ;;  %1026 = vrot.lane.b32.xlu0 %v1022_v10, %s3786_s8  ;;  %v1300_v10 = vmul.f32 %v1299_v46, %v4054_v0  ;;  %v4589_v39 = vmul.f32 %v1299_v46, %v4057_v1 }
 0x153   : > { %v4571_v18 = vpop.permute.xlu1 %890  ;;  %v4576_v30 = vpop.permute.xlu0 %561  ;;  %v1304_v54 = vrot.slane %v1300_v10, 2  ;;  %v6696_v46 = vrot.slane %v4589_v39, 2 }
 0x154   : > { %6783 = vst [vmem:[#allocation35_spill] sm:$0xff] %v4571_v18  ;;  %6784 = vst [vmem:[#allocation36_spill] sm:$0xff] %v4576_v30 }
 0x155   : > { %1760 = vrot.lane.b32.xlu1 %v1759_v31, %s3785_s15  ;;  %1581 = vrot.lane.b32.xlu0 %v1577_v28, %s3787_s27  ;;  %v656_v28 = vmul.f32 %v654_v8, %v4057_v1  ;;  %v4606_v31 = vmul.f32 %v1854_v24, %v4057_v1  ;;  %v829_v8 = vstv %s4578_s11  ;;  %v1859_v24 = vrot.slane %v1855_v17, 3  ;;  %s3222_s11 = sld [smem:[#allocation2 + $0x6c]] }
 0x156   : > { %v1306_v5 = vsel %vm1174_vm1, %v1304_v54, %v6696_v46  ;;  %v830_v25 = vmul.f32 %v829_v8, %v4054_v0  ;;  %v1939_v17 = vstv %s4596_s23  ;;  %v6791_v54 = vrot.slane %v4472_v55, 1  ;;  %s3285_s23 = sld [smem:[#allocation2 + $0x2c]] }
 0x157   : > { %v4591_v53 = vpop.permute.xlu1 %1092  ;;  %v4598_v22 = vpop.permute.xlu0 %975  ;;  %v1940_v46 = vmul.f32 %v1939_v17, %v4054_v0  ;;  %v846_v55 = vstv %s4619_s14  ;;  %s3256_s14 = sld [smem:[#allocation2 + $0x40]] }
 0x158   : > { %6785 = vst [vmem:[#allocation37_spill] sm:$0xff] %v4591_v53  ;;  %6786 = vst [vmem:[#allocation38_spill] sm:$0xff] %v4598_v22 }
 0x159   : > { %1845 = vrot.lane.b32.xlu1 %v1844_v63, %s6727_s24  ;;  %1290 = vrot.lane.b32.xlu0 %v1289_v60, %s3785_s15  ;;  %v1384_v63 = vstv %s4574_s7  ;;  %v6697_v60 = vrot.slane %v4606_v31, 3  ;;  %s3251_s7 = sld [smem:[#allocation2 + $0x58]] }
 0x15a   : > { %v1385_v10 = vmul.f32 %v1384_v63, %v4054_v0  ;;  %v4629_v59 = vmul.f32 %v1384_v63, %v4057_v1 }
 0x15b   : > { %v4613_v35 = vpop.permute.xlu1 %479  ;;  %v4616_v50 = vpop.permute.xlu0 %631 }
 0x15c   : > { %6787 = vst [vmem:[#allocation39_spill] sm:$0xff] %v4613_v35  ;;  %6788 = vst [vmem:[#allocation40_spill] sm:$0xff] %v4616_v50  ;;  %v1389_v63 = vrot.slane %v1385_v10, 2  ;;  %v4652_v35 = vmul.f32 %v1939_v17, %v4057_v1  ;;  %v6794_v10 = vrot.slane %v4499_v20, 3  ;;  %v4679_v20 = vmul.f32 %v846_v55, %v4057_v1 }
 0x15d   : > { %661 = vrot.lane.b32.xlu1 %v656_v28, %s3787_s27  ;;  %591 = vrot.lane.b32.xlu0 %v586_v15, %s3786_s8  ;;  %v4635_v28 = vmul.f32 %v829_v8, %v4057_v1  ;;  %v1861_v15 = vsel %vm1661_vm2, %v1859_v24, %v6697_v60  ;;  %v6698_v8 = vrot.slane %v4629_v59, 2 }
 0x15f   : > { %v4631_v38 = vpop.permute.xlu1 %645  ;;  %v4638_v51 = vpop.permute.xlu0 %549  ;;  %v1391_v17 = vsel %vm1174_vm1, %v1389_v63, %v6698_v8  ;;  %v6798_v63 = vstv %s4490_s26  ;;  %s4702_s26 = sld [smem:[#allocation2 + $0x13]] }
 0x160   : > { %6789 = vst [vmem:[#allocation41_spill] sm:$0xff] %v4631_v38  ;;  %6790 = vst [vmem:[#allocation42_spill] sm:$0xff] %v4638_v51  ;;  %v670_v8 = vmul.f32 %v6798_v63, %v4057_v1 }
 0x161   : > { %1307 = vrot.lane.b32.xlu1 %v1306_v5, %s3785_s15  ;;  %1128 = vrot.lane.b32.xlu0 %v6791_v54, %s3787_s27  ;;  %v834_v5 = vrot.slane %v830_v25, 1  ;;  %v1944_v54 = vrot.slane %v1940_v46, 3  ;;  %v6699_v25 = vrot.slane %v4652_v35, 3  ;;  %v1401_v46 = vstv %s4640_s10  ;;  %s3223_s10 = sld [smem:[#allocation2 + $0x85]] }
 0x162   : > { %v1402_v18 = vmul.f32 %v1401_v46, %v4054_v0  ;;  %v4700_v63 = vmul.f32 %v1401_v46, %v4057_v1 }
 0x163   : > { %v4656_v51 = vpop.permute.xlu1 %1077  ;;  %v4659_v60 = vpop.permute.xlu0 %992 }
 0x164   : > { %6792 = vst [vmem:[#allocation43_spill] sm:$0xff] %v4656_v51  ;;  %6793 = vst [vmem:[#allocation44_spill] sm:$0xff] %v4659_v60  ;;  %v6796_v60 = vrot.slane %v4635_v28, 1  ;;  %v847_v51 = vmul.f32 %v846_v55, %v4054_v0 }
 0x165   : > { %1862 = vrot.lane.b32.xlu1 %v1861_v15, %s6727_s24  ;;  %1745 = vrot.lane.b32.xlu0 %v6794_v10, %s3785_s15 }
 0x166   : > { %v836_v15 = vsel %vm687_vm0, %v834_v5, %v6796_v60  ;;  %v1946_v60 = vsel %vm1661_vm2, %v1944_v54, %v6699_v25  ;;  %v1956_v5 = vstv %s4654_s13  ;;  %s3257_s13 = sld [smem:[#allocation2 + $0x59]] }
 0x167   : > { %v4672_v24 = vpop.permute.xlu1 %563  ;;  %v4683_v10 = vpop.permute.xlu0 %1256  ;;  %v1957_v54 = vmul.f32 %v1956_v5, %v4054_v0  ;;  %v6803_v0 = vrot.slane %v4557_v27, 2 }
 0x168   : > { %6795 = vst [vmem:[#allocation45_spill] sm:$0xff] %v4672_v24  ;;  %6797 = vst [vmem:[#allocation46_spill] sm:$0xff] %v4683_v10  ;;  %v851_v24 = vrot.slane %v847_v51, 1  ;;  %v6700_v10 = vrot.slane %v4679_v20, 1  ;;  %v1486_v51 = vstv %s4670_s12  ;;  %s3228_s12 = sld [smem:[#allocation2 + $0x6d]] }
 0x169   : > { %1392 = vrot.lane.b32.xlu1 %v1391_v17, %s6727_s24  ;;  %837 = vrot.lane.b32.xlu0 %v836_v15, %s3785_s15  ;;  %v4709_v15 = vmul.f32 %v1956_v5, %v4057_v1  ;;  %v1961_v1 = vrot.slane %v1957_v54, 3  ;;  %v4729_v5 = vld [vmem:[%s4043_s16] sm:$0xff]  ;;  %v6805_v54 = vrot.slane %v4700_v63, 2 }
 0x16a   : > { %v853_v46 = vsel %vm687_vm0, %v851_v24, %v6700_v10  ;;  %v1487_v24 = vmul.f32 %v4729_v5, %v1486_v51 }
 0x16b   : > { %v4695_v55 = vpop.permute.xlu1 %1094  ;;  %v4704_v17 = vpop.permute.xlu0 %633 }
 0x16c   : > { %6799 = vst [vmem:[#allocation47_spill] sm:$0xff] %v4695_v55  ;;  %6800 = vst [vmem:[#allocation48_spill] sm:$0xff] %v4704_v17  ;;  %v1406_v55 = vrot.slane %v1402_v18, 2  ;;  %v4734_v18 = vld [vmem:[%s4043_s16 + $0x8] sm:$0xff]  ;;  %v1491_v38 = vrot.slane %v1487_v24, 2 }
 0x16d   : > { %675 = vrot.lane.b32.xlu1 %v670_v8, %s3787_s27  ;;  %1947 = vrot.lane.b32.xlu0 %v1946_v60, %s3786_s8  ;;  %v931_v8 = vstv %s4681_s28  ;;  %v4737_v10 = vmul.f32 %v4734_v18, %v1486_v51  ;;  %v2041_v60 = vstv %s4702_s26  ;;  %v6807_v51 = vrot.slane %v4540_v6, 3  ;;  %s3296_s28 = sld [smem:[#allocation2 + $0x15]]  ;;  %s3229_s26 = sld [smem:[#allocation2 + $0x86]] }
 0x16e   : > { %v932_v17 = vmul.f32 %v4729_v5, %v931_v8 }
 0x16f   : > { %v4713_v25 = vpop.permute.xlu1 %803  ;;  %v4720_v22 = vpop.permute.xlu0 %1273 }
 0x170   : > { %6801 = vst [vmem:[#allocation49_spill] sm:$0xff] %v4713_v25  ;;  %6802 = vst [vmem:[#allocation50_spill] sm:$0xff] %v4720_v22  ;;  %v4741_v22 = vmul.f32 %v4734_v18, %v931_v8  ;;  %v6808_v25 = vrot.slane %v4709_v15, 3  ;;  %v936_v50 = vrot.slane %v932_v17, 1 }
 0x171   : > { %1292 = vrot.lane.b32.xlu1 %v6803_v0, %s3785_s15  ;;  %854 = vrot.lane.b32.xlu0 %v853_v46, %s3785_s15  ;;  %v1408_v0 = vsel %vm1174_vm1, %v1406_v55, %v6805_v54  ;;  %v2042_v54 = vmul.f32 %v4729_v5, %v2041_v60 }
 0x172   : > { %v1963_v8 = vsel %vm1661_vm2, %v1961_v1, %v6808_v25  ;;  %v6702_v55 = vrot.slane %v4741_v22, 1  ;;  %v6811_v25 = vrot.slane %v4551_v3, 3  ;;  %v1503_v3 = vstv %s3251_s7  ;;  %s3302_s7 = sld [smem:[#allocation2 + $0x16]] }
 0x173   : > { %v4743_v27 = vpop.permute.xlu1 %647  ;;  %v4749_v46 = vpop.permute.xlu0 %1358  ;;  %v2046_v24 = vrot.slane %v2042_v54, 3 }
 0x174   : > { %6804 = vst [vmem:[#allocation51_spill] sm:$0xff] %v4743_v27  ;;  %6806 = vst [vmem:[#allocation52_spill] sm:$0xff] %v4749_v46  ;;  %v6701_v27 = vrot.slane %v4737_v10, 2  ;;  %v4764_v46 = vmul.f32 %v4734_v18, %v2041_v60  ;;  %v938_v1 = vsel %vm687_vm0, %v936_v50, %v6702_v55  ;;  %v4792_v50 = vmul.f32 %v4734_v18, %v1503_v3 }
 0x175   : > { %1762 = vrot.lane.b32.xlu1 %v6807_v51, %s3785_s15  ;;  %1409 = vrot.lane.b32.xlu0 %v1408_v0, %s6727_s24  ;;  %v948_v51 = vstv %s4722_s30  ;;  %s3297_s30 = sld [smem:[#allocation2 + $0x2e]] }
 0x176   : > { %v1493_v17 = vsel %vm1174_vm1, %v1491_v38, %v6701_v27  ;;  %v6703_v0 = vrot.slane %v4764_v46, 3  ;;  %v1504_v38 = vmul.f32 %v4729_v5, %v1503_v3  ;;  %v6705_v3 = vrot.slane %v4792_v50, 2 }
 0x177   : > { %v4761_v48 = vpop.permute.xlu1 %1258  ;;  %v4766_v6 = vpop.permute.xlu0 %820 }
 0x178   : > { %6809 = vst [vmem:[#allocation53_spill] sm:$0xff] %v4761_v48  ;;  %6810 = vst [vmem:[#allocation54_spill] sm:$0xff] %v4766_v6  ;;  %v949_v6 = vmul.f32 %v4729_v5, %v948_v51 }
 0x179   : > { %1964 = vrot.lane.b32.xlu1 %v1963_v8, %s3786_s8  ;;  %1847 = vrot.lane.b32.xlu0 %v6811_v25, %s6727_s24  ;;  %v4784_v8 = vmul.f32 %v4734_v18, %v948_v51  ;;  %v2048_v51 = vsel %vm1661_vm2, %v2046_v24, %v6703_v0  ;;  %v1033_v24 = vstv %s3222_s11  ;;  %v2058_v0 = vstv %s3285_s23  ;;  %s3268_s11 = sld [smem:[#allocation2 + $0x42]]  ;;  %s3269_s23 = sld [smem:[#allocation2 + $0x5b]] }
 0x17a   : > { %v953_v27 = vrot.slane %v949_v6, 1 }
 0x17b   : > { %v4779_v60 = vpop.permute.xlu1 %407  ;;  %v4786_v25 = vpop.permute.xlu0 %1375  ;;  %v6704_v55 = vrot.slane %v4784_v8, 1 }
 0x17c   : > { %6812 = vst [vmem:[#allocation55_spill] sm:$0xff] %v4779_v60  ;;  %6813 = vst [vmem:[#allocation56_spill] sm:$0xff] %v4786_v25 }
 0x17d   : > { %1494 = vrot.lane.b32.xlu1 %v1493_v17, %s3786_s8  ;;  %939 = vrot.lane.b32.xlu0 %v938_v1, %s6727_s24  ;;  %v6816_v17 = vrot.slane %v4635_v28, 1  ;;  %v1508_v1 = vrot.slane %v1504_v38, 2  ;;  %v955_v6 = vsel %vm687_vm0, %v953_v27, %v6704_v55  ;;  %v6819_v28 = vrot.slane %v4589_v39, 2 }
 0x17e   : > { %v2059_v27 = vmul.f32 %v4729_v5, %v2058_v0 }
 0x17f   : > { %v4794_v54 = vpop.permute.xlu1 %1460  ;;  %v4800_v60 = vpop.permute.xlu0 %905  ;;  %v1510_v38 = vsel %vm1174_vm1, %v1508_v1, %v6705_v3  ;;  %v6822_v1 = vrot.slane %v4629_v59, 2  ;;  %v6825_v59 = vrot.slane %v4652_v35, 3 }
 0x180   : > { %6814 = vst [vmem:[#allocation57_spill] sm:$0xff] %v4794_v54  ;;  %6815 = vst [vmem:[#allocation58_spill] sm:$0xff] %v4800_v60  ;;  %v2063_v3 = vrot.slane %v2059_v27, 3 }
 0x181   : > { %839 = vrot.lane.b32.xlu1 %v6816_v17, %s3785_s15  ;;  %2049 = vrot.lane.b32.xlu0 %v2048_v51, %s3787_s27  ;;  %v1034_v51 = vmul.f32 %v4729_v5, %v1033_v24  ;;  %v4823_v17 = vmul.f32 %v4734_v18, %v1033_v24 }
 0x183   : > { %v4807_v54 = vpop.permute.xlu1 %805  ;;  %v4812_v25 = vpop.permute.xlu0 %421  ;;  %v6706_v24 = vrot.slane %v4823_v17, 1 }
 0x184   : > { %6817 = vst [vmem:[#allocation59_spill] sm:$0xff] %v4807_v54  ;;  %6818 = vst [vmem:[#allocation60_spill] sm:$0xff] %v4812_v25  ;;  %v4829_v25 = vmul.f32 %v4734_v18, %v2058_v0 }
 0x185   : > { %1309 = vrot.lane.b32.xlu1 %v6819_v28, %s3785_s15  ;;  %956 = vrot.lane.b32.xlu0 %v955_v6, %s6727_s24  ;;  %v1588_v28 = vstv %s3256_s14  ;;  %v1038_v6 = vrot.slane %v1034_v51, 1  ;;  %s3303_s14 = sld [smem:[#allocation2 + $0x2f]] }
 0x186   : > { %v1589_v0 = vmul.f32 %v4729_v5, %v1588_v28  ;;  %v4843_v60 = vmul.f32 %v4734_v18, %v1588_v28 }
 0x187   : > { %v4826_v55 = vpop.permute.xlu1 %1275  ;;  %v4831_v39 = vpop.permute.xlu0 %922  ;;  %v1040_v51 = vsel %vm687_vm0, %v1038_v6, %v6706_v24 }
 0x188   : > { %6820 = vst [vmem:[#allocation61_spill] sm:$0xff] %v4826_v55  ;;  %6821 = vst [vmem:[#allocation62_spill] sm:$0xff] %v4831_v39  ;;  %v6707_v55 = vrot.slane %v4829_v25, 3  ;;  %v1050_v39 = vstv %s3223_s10  ;;  %s3274_s10 = sld [smem:[#allocation2 + $0x43]] }
 0x189   : > { %1511 = vrot.lane.b32.xlu1 %v1510_v38, %s3786_s8  ;;  %1394 = vrot.lane.b32.xlu0 %v6822_v1, %s6727_s24  ;;  %v6826_v38 = vrot.slane %v4606_v31, 3  ;;  %v1051_v27 = vmul.f32 %v4729_v5, %v1050_v39  ;;  %v4858_v28 = vmul.f32 %v4734_v18, %v1050_v39 }
 0x18a   : > { %v2065_v35 = vsel %vm1661_vm2, %v2063_v3, %v6707_v55  ;;  %v6831_v55 = vrot.slane %v4679_v20, 1  ;;  %v6834_v20 = vrot.slane %v4741_v22, 1  ;;  %v6838_v22 = vrot.slane %v4700_v63, 2 }
 0x18b   : > { %v4838_v54 = vpop.permute.xlu1 %1477  ;;  %v4845_v48 = vpop.permute.xlu0 %1360  ;;  %v1055_v6 = vrot.slane %v1051_v27, 1  ;;  %v6709_v39 = vrot.slane %v4858_v28, 1  ;;  %v6841_v63 = vrot.slane %v4709_v15, 3  ;;  %v6844_v15 = vrot.slane %v4764_v46, 3 }
 0x18c   : > { %6823 = vst [vmem:[#allocation63_spill] sm:$0xff] %v4838_v54  ;;  %6824 = vst [vmem:[#allocation64_spill] sm:$0xff] %v4845_v48  ;;  %v6708_v48 = vrot.slane %v4843_v60, 2 }
 0x18d   : > { %1949 = vrot.lane.b32.xlu1 %v6825_v59, %s3786_s8  ;;  %1864 = vrot.lane.b32.xlu0 %v6826_v38, %s6727_s24  ;;  %v1593_v59 = vrot.slane %v1589_v0, 2  ;;  %v1605_v0 = vstv %s3257_s13  ;;  %s4999_s13 = sld [smem:[#allocation2 + $0x6f]] }
 0x18f   : > { %v4860_v1 = vpop.permute.xlu1 %1007  ;;  %v4866_v31 = vpop.permute.xlu0 %491  ;;  %v1595_v24 = vsel %vm1174_vm1, %v1593_v59, %v6708_v48  ;;  %v4889_v59 = vmul.f32 %v4734_v18, %v1605_v0  ;;  %v1135_v48 = vstv %s3228_s12  ;;  %s5017_s12 = sld [smem:[#allocation2 + $0x17]] }
 0x190   : > { %6827 = vst [vmem:[#allocation65_spill] sm:$0xff] %v4860_v1  ;;  %6828 = vst [vmem:[#allocation66_spill] sm:$0xff] %v4866_v31  ;;  %v1786_v31 = vstv %s3269_s23  ;;  %s5117_s23 = sld [smem:[#allocation2 + $0x18]] }
 0x191   : > { %1041 = vrot.lane.b32.xlu1 %v1040_v51, %s3786_s8  ;;  %2066 = vrot.lane.b32.xlu0 %v2065_v35, %s3787_s27  ;;  %v1057_v51 = vsel %vm687_vm0, %v1055_v6, %v6709_v39  ;;  %v1606_v35 = vmul.f32 %v4729_v5, %v1605_v0  ;;  %v6710_v0 = vrot.slane %v4889_v59, 2 }
 0x193   : > { %v4871_v38 = vpop.permute.xlu1 %409  ;;  %v4876_v3 = vpop.permute.xlu0 %1562  ;;  %v1610_v39 = vrot.slane %v1606_v35, 2 }
 0x194   : > { %6829 = vst [vmem:[#allocation67_spill] sm:$0xff] %v4871_v38  ;;  %6830 = vst [vmem:[#allocation68_spill] sm:$0xff] %v4876_v3  ;;  %v2222_v3 = vstv %s3296_s28  ;;  %s5033_s28 = sld [smem:[#allocation2 + $0x88]] }
 0x195   : > { %856 = vrot.lane.b32.xlu1 %v6831_v55, %s3785_s15  ;;  %1596 = vrot.lane.b32.xlu0 %v1595_v24, %s3787_s27  ;;  %v1136_v55 = vmul.f32 %v4729_v5, %v1135_v48  ;;  %v4899_v24 = vmul.f32 %v4734_v18, %v1135_v48  ;;  %v1612_v35 = vsel %vm1174_vm1, %v1610_v39, %v6710_v0 }
 0x197   : > { %v4885_v27 = vpop.permute.xlu1 %822  ;;  %v4891_v38 = vpop.permute.xlu0 %505  ;;  %v6711_v48 = vrot.slane %v4899_v24, 1 }
 0x198   : > { %6832 = vst [vmem:[#allocation69_spill] sm:$0xff] %v4885_v27  ;;  %6833 = vst [vmem:[#allocation70_spill] sm:$0xff] %v4891_v38 }
 0x199   : > { %1058 = vrot.lane.b32.xlu1 %v1057_v51, %s3786_s8  ;;  %941 = vrot.lane.b32.xlu0 %v6834_v20, %s6727_s24  ;;  %v6837_v51 = vrot.slane %v4737_v10, 2  ;;  %v1140_v20 = vrot.slane %v1136_v55, 1  ;;  %v1152_v10 = vstv %s3229_s26  ;;  %s5058_s26 = sld [smem:[#allocation2 + $0x5c]] }
 0x19a   : > { %v1153_v39 = vmul.f32 %v4729_v5, %v1152_v10 }
 0x19b   : > { %v4901_v6 = vpop.permute.xlu1 %1024  ;;  %v4904_v27 = vpop.permute.xlu0 %907  ;;  %v1142_v55 = vsel %vm687_vm0, %v1140_v20, %v6711_v48 }
 0x19c   : > { %6835 = vst [vmem:[#allocation71_spill] sm:$0xff] %v4901_v6  ;;  %6836 = vst [vmem:[#allocation72_spill] sm:$0xff] %v4904_v27  ;;  %v2223_v27 = vmul.f32 %v4729_v5, %v2222_v3  ;;  %v4920_v6 = vmul.f32 %v4734_v18, %v2222_v3  ;;  %v1157_v20 = vrot.slane %v1153_v39, 1 }
 0x19d   : > { %1496 = vrot.lane.b32.xlu1 %v6837_v51, %s3786_s8  ;;  %1411 = vrot.lane.b32.xlu0 %v6838_v22, %s6727_s24  ;;  %v4933_v22 = vmul.f32 %v4734_v18, %v1152_v10 }
 0x19e   : > { %v2227_v0 = vrot.slane %v2223_v27, 4 }
 0x19f   : > { %v4913_v38 = vpop.permute.xlu1 %1462  ;;  %v4922_v51 = vpop.permute.xlu0 %1377 }
 0x1a0   : > { %6839 = vst [vmem:[#allocation73_spill] sm:$0xff] %v4913_v38  ;;  %6840 = vst [vmem:[#allocation74_spill] sm:$0xff] %v4922_v51  ;;  %v6712_v51 = vrot.slane %v4920_v6, 4 }
 0x1a1   : > { %1966 = vrot.lane.b32.xlu1 %v6841_v63, %s3786_s8  ;;  %1613 = vrot.lane.b32.xlu0 %v1612_v35, %s3787_s27  ;;  %v6713_v35 = vrot.slane %v4933_v22, 1  ;;  %v2239_v63 = vstv %s3297_s30  ;;  %s5072_s30 = sld [smem:[#allocation2 + $0x30]] }
 0x1a2   : > { %v2229_v27 = vsel %vm2148_vm3, %v2227_v0, %v6712_v51  ;;  %v4961_v39 = vmul.f32 %v4734_v18, %v2239_v63  ;;  %v2324_v0 = vstv %s3302_s7  ;;  %s5088_s7 = sld [smem:[#allocation2 + $0x44]] }
 0x1a3   : > { %v4935_v3 = vpop.permute.xlu1 %575  ;;  %v4938_v38 = vpop.permute.xlu0 %1579  ;;  %v1159_v46 = vsel %vm687_vm0, %v1157_v20, %v6713_v35 }
 0x1a4   : > { %6842 = vst [vmem:[#allocation75_spill] sm:$0xff] %v4935_v3  ;;  %6843 = vst [vmem:[#allocation76_spill] sm:$0xff] %v4938_v38  ;;  %v6847_v38 = vrot.slane %v4784_v8, 1  ;;  %v6850_v8 = vrot.slane %v4823_v17, 1  ;;  %v6715_v20 = vrot.slane %v4961_v39, 4  ;;  %v6853_v17 = vrot.slane %v4843_v60, 2 }
 0x1a5   : > { %1143 = vrot.lane.b32.xlu1 %v1142_v55, %s3787_s27  ;;  %2051 = vrot.lane.b32.xlu0 %v6844_v15, %s3787_s27  ;;  %v2240_v55 = vmul.f32 %v4729_v5, %v2239_v63  ;;  %v4974_v63 = vmul.f32 %v4734_v18, %v2324_v0 }
 0x1a7   : > { %v4945_v10 = vpop.permute.xlu1 %423  ;;  %v4950_v48 = vpop.permute.xlu0 %1109 }
 0x1a8   : > { %6845 = vst [vmem:[#allocation77_spill] sm:$0xff] %v4945_v10  ;;  %6846 = vst [vmem:[#allocation78_spill] sm:$0xff] %v4950_v48  ;;  %v1769_v10 = vstv %s3268_s11  ;;  %s5099_s11 = sld [smem:[#allocation2 + $0x70]] }
 0x1a9   : > { %958 = vrot.lane.b32.xlu1 %v6847_v38, %s6727_s24  ;;  %2230 = vrot.lane.b32.xlu0 %v2229_v27, %s3785_s15  ;;  %v2244_v38 = vrot.slane %v2240_v55, 4  ;;  %v2325_v27 = vmul.f32 %v4729_v5, %v2324_v0  ;;  %v4980_v3 = vmul.f32 %v4734_v18, %v1769_v10  ;;  %v6854_v55 = vrot.slane %v4792_v50, 2 }
 0x1aa   : > { %v6857_v50 = vrot.slane %v4829_v25, 3 }
 0x1ab   : > { %v4963_v15 = vpop.permute.xlu1 %589  ;;  %v4965_v51 = vpop.permute.xlu0 %493  ;;  %v2246_v0 = vsel %vm2148_vm3, %v2244_v38, %v6715_v20 }
 0x1ac   : > { %6848 = vst [vmem:[#allocation79_spill] sm:$0xff] %v4963_v15  ;;  %6849 = vst [vmem:[#allocation80_spill] sm:$0xff] %v4965_v51  ;;  %v1770_v51 = vmul.f32 %v4729_v5, %v1769_v10 }
 0x1ad   : > { %1160 = vrot.lane.b32.xlu1 %v1159_v46, %s3787_s27  ;;  %1043 = vrot.lane.b32.xlu0 %v6850_v8, %s3786_s8  ;;  %v2329_v8 = vrot.slane %v2325_v27, 4  ;;  %v5010_v27 = vmul.f32 %v4734_v18, %v1786_v31 }
 0x1ae   : > { %v1774_v10 = vrot.slane %v1770_v51, 3  ;;  %v1787_v51 = vmul.f32 %v4729_v5, %v1786_v31 }
 0x1af   : > { %v4976_v35 = vpop.permute.xlu1 %1009  ;;  %v4982_v46 = vpop.permute.xlu0 %924 }
 0x1b0   : > { %6851 = vst [vmem:[#allocation81_spill] sm:$0xff] %v4976_v35  ;;  %6852 = vst [vmem:[#allocation82_spill] sm:$0xff] %v4982_v46  ;;  %v6714_v35 = vrot.slane %v4974_v63, 4  ;;  %v6716_v46 = vrot.slane %v4980_v3, 3  ;;  %v1791_v31 = vrot.slane %v1787_v51, 3  ;;  %v6863_v51 = vrot.slane %v4858_v28, 1 }
 0x1b1   : > { %1598 = vrot.lane.b32.xlu1 %v6853_v17, %s3787_s27  ;;  %1513 = vrot.lane.b32.xlu0 %v6854_v55, %s3786_s8  ;;  %v2341_v17 = vstv %s3303_s14  ;;  %s5139_s14 = sld [smem:[#allocation2 + $0x89]] }
 0x1b2   : > { %v2331_v38 = vsel %vm2148_vm3, %v2329_v8, %v6714_v35  ;;  %v2342_v8 = vmul.f32 %v4729_v5, %v2341_v17  ;;  %v6717_v35 = vrot.slane %v5010_v27, 3 }
 0x1b3   : > { %v4994_v15 = vpop.permute.xlu1 %1479  ;;  %v4997_v60 = vpop.permute.xlu0 %1126 }
 0x1b4   : > { %6855 = vst [vmem:[#allocation83_spill] sm:$0xff] %v4994_v15  ;;  %6856 = vst [vmem:[#allocation84_spill] sm:$0xff] %v4997_v60  ;;  %v1316_v15 = vstv %s4999_s13  ;;  %s3252_s13 = sld [smem:[#allocation2 + $0x71]] }
 0x1b5   : > { %2247 = vrot.lane.b32.xlu1 %v2246_v0, %s3785_s15  ;;  %2068 = vrot.lane.b32.xlu0 %v6857_v50, %s3787_s27  ;;  %v1776_v0 = vsel %vm1661_vm2, %v1774_v10, %v6716_v46  ;;  %v5024_v50 = vmul.f32 %v4734_v18, %v2341_v17  ;;  %v1871_v10 = vstv %s3274_s10  ;;  %v2346_v17 = vrot.slane %v2342_v8, 4  ;;  %s3281_s10 = sld [smem:[#allocation2 + $0x5d]] }
 0x1b6   : > { %v5053_v8 = vmul.f32 %v4734_v18, %v1316_v15 }
 0x1b7   : > { %v5012_v55 = vpop.permute.xlu1 %659  ;;  %v5019_v25 = vpop.permute.xlu0 %1564 }
 0x1b8   : > { %6858 = vst [vmem:[#allocation85_spill] sm:$0xff] %v5012_v55  ;;  %6859 = vst [vmem:[#allocation86_spill] sm:$0xff] %v5019_v25  ;;  %v6718_v25 = vrot.slane %v5024_v50, 4 }
 0x1b9   : > { %2332 = vrot.lane.b32.xlu1 %v2331_v38, %s6727_s24  ;;  %1777 = vrot.lane.b32.xlu0 %v1776_v0, %s3785_s15  ;;  %v6862_v38 = vrot.slane %v4899_v24, 1  ;;  %v1793_v0 = vsel %vm1661_vm2, %v1791_v31, %v6717_v35  ;;  %v1317_v24 = vmul.f32 %v4729_v5, %v1316_v15 }
 0x1ba   : > { %v2348_v31 = vsel %vm2148_vm3, %v2346_v17, %v6718_v25 }
 0x1bb   : > { %v5028_v20 = vpop.permute.xlu1 %507  ;;  %v5030_v46 = vpop.permute.xlu0 %1743 }
 0x1bc   : > { %6860 = vst [vmem:[#allocation87_spill] sm:$0xff] %v5028_v20  ;;  %6861 = vst [vmem:[#allocation88_spill] sm:$0xff] %v5030_v46  ;;  %v1872_v46 = vmul.f32 %v4729_v5, %v1871_v10  ;;  %v5047_v20 = vmul.f32 %v4734_v18, %v1871_v10  ;;  %v6866_v10 = vrot.slane %v4889_v59, 2  ;;  %v1333_v59 = vstv %s5033_s28  ;;  %s5215_s28 = sld [smem:[#allocation2 + $0x45]] }
 0x1bd   : > { %1145 = vrot.lane.b32.xlu1 %v6862_v38, %s3787_s27  ;;  %1060 = vrot.lane.b32.xlu0 %v6863_v51, %s3786_s8  ;;  %v2426_v38 = vstv %s5017_s12  ;;  %s5197_s12 = sld [smem:[#allocation2 + $0x31]] }
 0x1be   : > { %v1876_v51 = vrot.slane %v1872_v46, 3  ;;  %v6719_v15 = vrot.slane %v5047_v20, 3  ;;  %v2427_v35 = vmul.f32 %v4729_v5, %v2426_v38  ;;  %v5070_v60 = vmul.f32 %v4734_v18, %v2426_v38 }
 0x1bf   : > { %v5049_v55 = vpop.permute.xlu1 %673  ;;  %v5056_v28 = vpop.permute.xlu0 %577  ;;  %v6869_v46 = vrot.slane %v4920_v6, 4  ;;  %v5097_v6 = vmul.f32 %v4734_v18, %v1333_v59 }
 0x1c0   : > { %6864 = vst [vmem:[#allocation89_spill] sm:$0xff] %v5049_v55  ;;  %6865 = vst [vmem:[#allocation90_spill] sm:$0xff] %v5056_v28  ;;  %v1878_v38 = vsel %vm1661_vm2, %v1876_v51, %v6719_v15 }
 0x1c1   : > { %1794 = vrot.lane.b32.xlu1 %v1793_v0, %s3785_s15  ;;  %1615 = vrot.lane.b32.xlu0 %v6866_v10, %s3787_s27  ;;  %v1321_v0 = vrot.slane %v1317_v24, 2  ;;  %v2431_v10 = vrot.slane %v2427_v35, 4  ;;  %v6720_v24 = vrot.slane %v5070_v60, 4  ;;  %v1888_v35 = vstv %s5058_s26  ;;  %s5228_s26 = sld [smem:[#allocation2 + $0x8a]] }
 0x1c3   : > { %v5074_v28 = vpop.permute.xlu1 %1111  ;;  %v5077_v25 = vpop.permute.xlu0 %1026  ;;  %v2433_v51 = vsel %vm2148_vm3, %v2431_v10, %v6720_v24 }
 0x1c4   : > { %6867 = vst [vmem:[#allocation91_spill] sm:$0xff] %v5074_v28  ;;  %6868 = vst [vmem:[#allocation92_spill] sm:$0xff] %v5077_v25  ;;  %v6871_v25 = vrot.slane %v5053_v8, 2  ;;  %v1334_v28 = vmul.f32 %v4729_v5, %v1333_v59 }
 0x1c5   : > { %2349 = vrot.lane.b32.xlu1 %v2348_v31, %s6727_s24  ;;  %2232 = vrot.lane.b32.xlu0 %v6869_v46, %s3785_s15 }
 0x1c6   : > { %v1323_v31 = vsel %vm1174_vm1, %v1321_v0, %v6871_v25  ;;  %v2443_v25 = vstv %s5072_s30  ;;  %v1338_v59 = vrot.slane %v1334_v28, 2  ;;  %v1973_v28 = vstv %s5088_s7  ;;  %s5232_s30 = sld [smem:[#allocation2]]  ;;  %s5234_s7 = sld [smem:[#allocation2 + $0x5]] }
 0x1c7   : > { %v5090_v17 = vpop.permute.xlu1 %1760  ;;  %v5101_v46 = vpop.permute.xlu0 %1581  ;;  %v2444_v10 = vmul.f32 %v4729_v5, %v2443_v25  ;;  %v5126_v24 = vmul.f32 %v4734_v18, %v2443_v25  ;;  %v6879_v25 = vrot.slane %v4980_v3, 3  ;;  %v1974_v54 = vmul.f32 %v4729_v5, %v1973_v28 }
 0x1c8   : > { %6870 = vst [vmem:[#allocation93_spill] sm:$0xff] %v5090_v17  ;;  %6872 = vst [vmem:[#allocation94_spill] sm:$0xff] %v5101_v46  ;;  %v1889_v17 = vmul.f32 %v4729_v5, %v1888_v35  ;;  %v5115_v46 = vmul.f32 %v4734_v18, %v1888_v35  ;;  %v6877_v35 = vrot.slane %v5097_v6, 2 }
 0x1c9   : > { %1879 = vrot.lane.b32.xlu1 %v1878_v38, %s6727_s24  ;;  %1324 = vrot.lane.b32.xlu0 %v1323_v31, %s3785_s15  ;;  %v6875_v31 = vrot.slane %v4933_v22, 1  ;;  %v1418_v22 = vstv %s5099_s11  ;;  %s5239_s11 = sld [smem:[#allocation2 + $0x19]] }
 0x1ca   : > { %v1893_v55 = vrot.slane %v1889_v17, 3  ;;  %v5148_v17 = vmul.f32 %v4734_v18, %v1973_v28  ;;  %v6881_v3 = vrot.slane %v5115_v46, 3  ;;  %v6884_v28 = vrot.slane %v5126_v24, 4 }
 0x1cb   : > { %v5110_v0 = vpop.permute.xlu1 %1845  ;;  %v5119_v38 = vpop.permute.xlu0 %1290 }
 0x1cc   : > { %6873 = vst [vmem:[#allocation95_spill] sm:$0xff] %v5110_v0  ;;  %6874 = vst [vmem:[#allocation96_spill] sm:$0xff] %v5119_v38  ;;  %v1340_v0 = vsel %vm1174_vm1, %v1338_v59, %v6877_v35  ;;  %v1419_v59 = vmul.f32 %v4729_v5, %v1418_v22  ;;  %v5152_v35 = vmul.f32 %v4734_v18, %v1418_v22 }
 0x1cd   : > { %1162 = vrot.lane.b32.xlu1 %v6875_v31, %s3787_s27  ;;  %2434 = vrot.lane.b32.xlu0 %v2433_v51, %s3786_s8  ;;  %v2448_v51 = vrot.slane %v2444_v10, 4  ;;  %v1895_v10 = vsel %vm1661_vm2, %v1893_v55, %v6881_v3 }
 0x1ce   : > { %v1423_v48 = vrot.slane %v1419_v59, 2  ;;  %v6722_v55 = vrot.slane %v5152_v35, 2 }
 0x1cf   : > { %v5130_v15 = vpop.permute.xlu1 %661  ;;  %v5137_v31 = vpop.permute.xlu0 %591  ;;  %v2450_v22 = vsel %vm2148_vm3, %v2448_v51, %v6884_v28 }
 0x1d0   : > { %6876 = vst [vmem:[#allocation97_spill] sm:$0xff] %v5130_v15  ;;  %6878 = vst [vmem:[#allocation98_spill] sm:$0xff] %v5137_v31  ;;  %v1978_v31 = vrot.slane %v1974_v54, 3  ;;  %v6887_v54 = vrot.slane %v4974_v63, 4  ;;  %v1425_v59 = vsel %vm1174_vm1, %v1423_v48, %v6722_v55  ;;  %v1990_v63 = vstv %s3281_s10  ;;  %s5262_s10 = sld [smem:[#allocation7 + $0x1]] }
 0x1d1   : > { %1779 = vrot.lane.b32.xlu1 %v6879_v25, %s3785_s15  ;;  %1341 = vrot.lane.b32.xlu0 %v1340_v0, %s3785_s15  ;;  %v2528_v25 = vstv %s5117_s23  ;;  %v6883_v0 = vrot.slane %v4961_v39, 4  ;;  %v1991_v48 = vmul.f32 %v4729_v5, %v1990_v63  ;;  %s5250_s23 = sld [smem:[#allocation2 + $0x1e]] }
 0x1d2   : > { %v2529_v3 = vmul.f32 %v4729_v5, %v2528_v25 }
 0x1d3   : > { %v5154_v38 = vpop.permute.xlu1 %1307  ;;  %v5160_v15 = vpop.permute.xlu0 %1128 }
 0x1d4   : > { %6880 = vst [vmem:[#allocation99_spill] sm:$0xff] %v5154_v38  ;;  %6882 = vst [vmem:[#allocation100_spill] sm:$0xff] %v5160_v15  ;;  %v6721_v38 = vrot.slane %v5148_v17, 3  ;;  %v5175_v15 = vmul.f32 %v4734_v18, %v2528_v25 }
 0x1d5   : > { %2249 = vrot.lane.b32.xlu1 %v6883_v0, %s3785_s15  ;;  %1896 = vrot.lane.b32.xlu0 %v1895_v10, %s6727_s24  ;;  %v1435_v0 = vstv %s5139_s14  ;;  %v2533_v10 = vrot.slane %v2529_v3, 4  ;;  %s5257_s14 = sld [smem:[#allocation7]] }
 0x1d6   : > { %v1980_v51 = vsel %vm1661_vm2, %v1978_v31, %v6721_v38  ;;  %v6723_v28 = vrot.slane %v5175_v15, 4  ;;  %v5205_v31 = vmul.f32 %v4734_v18, %v1990_v63 }
 0x1d7   : > { %v5172_v1 = vpop.permute.xlu1 %1862  ;;  %v5177_v39 = vpop.permute.xlu0 %1745 }
 0x1d8   : > { %6885 = vst [vmem:[#allocation101_spill] sm:$0xff] %v5172_v1  ;;  %6886 = vst [vmem:[#allocation102_spill] sm:$0xff] %v5177_v39  ;;  %v1436_v39 = vmul.f32 %v4729_v5, %v1435_v0  ;;  %v6724_v63 = vrot.slane %v5205_v31, 3 }
 0x1d9   : > { %2451 = vrot.lane.b32.xlu1 %v2450_v22, %s3786_s8  ;;  %2334 = vrot.lane.b32.xlu0 %v6887_v54, %s6727_s24  ;;  %v5195_v22 = vmul.f32 %v4734_v18, %v1435_v0  ;;  %v2535_v0 = vsel %vm2148_vm3, %v2533_v10, %v6723_v28  ;;  %v1520_v10 = vstv %s3252_s13  ;;  %v2545_v28 = vstv %s5197_s12  ;;  %s5279_s13 = sld [smem:[#allocation2 + $0x5e]]  ;;  %s5283_s12 = sld [smem:[#allocation2 + $0x32]] }
 0x1da   : > { %v1440_v38 = vrot.slane %v1436_v39, 2 }
 0x1db   : > { %v5190_v25 = vpop.permute.xlu1 %1392  ;;  %v5199_v54 = vpop.permute.xlu0 %837  ;;  %v6725_v55 = vrot.slane %v5195_v22, 2 }
 0x1dc   : > { %6888 = vst [vmem:[#allocation103_spill] sm:$0xff] %v5190_v25  ;;  %6889 = vst [vmem:[#allocation104_spill] sm:$0xff] %v5199_v54  ;;  %v696_v25 = vstv %s5250_s23  ;;  %s5327_s23 = sld [smem:[#allocation7 + $0x3]] }
 0x1dd   : > { %1981 = vrot.lane.b32.xlu1 %v1980_v51, %s3786_s8  ;;  %1426 = vrot.lane.b32.xlu0 %v1425_v59, %s6727_s24  ;;  %v6892_v51 = vrot.slane %v5053_v8, 2  ;;  %v1995_v59 = vrot.slane %v1991_v48, 3  ;;  %v1442_v39 = vsel %vm1174_vm1, %v1440_v38, %v6725_v55  ;;  %v6895_v8 = vrot.slane %v5010_v27, 3 }
 0x1de   : > { %v1521_v48 = vmul.f32 %v4729_v5, %v1520_v10  ;;  %v697_v16 = vmul.f32 %v4729_v5, %v696_v25  ;;  %v5345_v47 = vmul.f32 %v4734_v18, %v696_v25 }
 0x1df   : > { %v5207_v3 = vpop.permute.xlu1 %675  ;;  %v5213_v1 = vpop.permute.xlu0 %1947  ;;  %v1997_v38 = vsel %vm1661_vm2, %v1995_v59, %v6724_v63  ;;  %v2075_v59 = vstv %s5215_s28  ;;  %s5289_s28 = sld [smem:[#allocation2 + $0x4b]]  ;;  %v322_v26 = vstv %s5283_s12  ;;  %s5393_s12 = sld [smem:[#allocation2 + $0x7d]] }
 0x1e0   : > { %6890 = vst [vmem:[#allocation105_spill] sm:$0xff] %v5207_v3  ;;  %6891 = vst [vmem:[#allocation106_spill] sm:$0xff] %v5213_v1  ;;  %v1525_v63 = vrot.slane %v1521_v48, 2  ;;  %v682_v48 = vstv %s5234_s7  ;;  %s5317_s7 = sld [smem:[#allocation7 + $0x2]]  ;;  %v701_v25 = vrot.slane %v697_v16, 1 }
 0x1e1   : > { %1326 = vrot.lane.b32.xlu1 %v6892_v51, %s3785_s15  ;;  %2536 = vrot.lane.b32.xlu0 %v2535_v0, %s3787_s27  ;;  %v5247_v0 = vmul.f32 %v4734_v18, %v1520_v10  ;;  %v2546_v51 = vmul.f32 %v4729_v5, %v2545_v28  ;;  %v6898_v10 = vrot.slane %v5047_v20, 3  ;;  %v310_v20 = vstv %s5232_s30  ;;  %s5310_s30 = sld [smem:[#allocation2 + $0x72]]  ;;  %6908 = vst [vmem:[#allocation116_spill] sm:$0xff] %v5345_v47 }
 0x1e2   : > { %v311_v53 = vmul.f32 %v4729_v5, %v310_v20 }
 0x1e3   : > { %v5222_v3 = vpop.permute.xlu1 %1292  ;;  %v5230_v1 = vpop.permute.xlu0 %854  ;;  %v2550_v55 = vrot.slane %v2546_v51, 4  ;;  %v6901_v51 = vrot.slane %v5070_v60, 4 }
 0x1e4   : > { %6893 = vst [vmem:[#allocation107_spill] sm:$0xff] %v5222_v3  ;;  %6894 = vst [vmem:[#allocation108_spill] sm:$0xff] %v5230_v1  ;;  %v2076_v3 = vmul.f32 %v4729_v5, %v2075_v59 }
 0x1e5   : > { %1796 = vrot.lane.b32.xlu1 %v6895_v8, %s3785_s15  ;;  %1443 = vrot.lane.b32.xlu0 %v1442_v39, %s6727_s24  ;;  %v5255_v8 = vmul.f32 %v4734_v18, %v2545_v28  ;;  %v6726_v28 = vrot.slane %v5247_v0, 2 }
 0x1e7   : > { %v5252_v27 = vpop.permute.xlu1 %1762  ;;  %v5259_v39 = vpop.permute.xlu0 %1409  ;;  %v1527_v54 = vsel %vm1174_vm1, %v1525_v63, %v6726_v28  ;;  %v298_v63 = vstv %s5257_s14  ;;  %v683_v28 = vmul.f32 %v4729_v5, %v682_v48  ;;  %s5329_s14 = sld [smem:[#allocation2 + $0x23]]  ;;  %v1622_v16 = vstv %s5310_s30  ;;  %s5437_s30 = sld [smem:[#allocation7 + $0x5]] }
 0x1e8   : > { %6896 = vst [vmem:[#allocation109_spill] sm:$0xff] %v5252_v27  ;;  %6897 = vst [vmem:[#allocation110_spill] sm:$0xff] %v5259_v39  ;;  %v5274_v39 = vmul.f32 %v4734_v18, %v2075_v59  ;;  %v6902_v59 = vrot.slane %v5024_v50, 4  ;;  %v5403_v40 = vmul.f32 %v4734_v18, %v1622_v16 }
 0x1e9   : > { %1998 = vrot.lane.b32.xlu1 %v1997_v38, %s3786_s8  ;;  %1881 = vrot.lane.b32.xlu0 %v6898_v10, %s6727_s24  ;;  %v1537_v38 = vstv %s5228_s26  ;;  %v316_v10 = vstv %s5239_s11  ;;  %s5302_s26 = sld [smem:[#allocation2 + $0xa]]  ;;  %s5319_s11 = sld [smem:[#allocation2 + $0x37]] }
 0x1ea   : > { %v6907_v37 = vrot.slane %v5274_v39, 3 }
 0x1eb   : > { %v5269_v27 = vpop.permute.xlu1 %1964  ;;  %v5277_v1 = vpop.permute.xlu0 %1847 }
 0x1ec   : > { %6899 = vst [vmem:[#allocation111_spill] sm:$0xff] %v5269_v27  ;;  %6900 = vst [vmem:[#allocation112_spill] sm:$0xff] %v5277_v1  ;;  %v1538_v1 = vmul.f32 %v4729_v5, %v1537_v38  ;;  %v5299_v27 = vmul.f32 %v4734_v18, %v1537_v38  ;;  %v5315_v38 = vmul.f32 %v4734_v18, %v682_v48 }
 0x1ed   : > { %2436 = vrot.lane.b32.xlu1 %v6901_v51, %s3786_s8  ;;  %2351 = vrot.lane.b32.xlu0 %v6902_v59, %s6727_s24  ;;  %v6904_v51 = vrot.slane %v5255_v8, 4  ;;  %v2080_v59 = vrot.slane %v2076_v3, 3  ;;  %v300_v3 = vstv %s5262_s10  ;;  %v318_v48 = vmul.f32 %v4734_v18, %v316_v10  ;;  %s5334_s24 = sld [smem:[#allocation2 + $0x50]]  ;;  %s5383_s10 = sld [smem:[#allocation2 + $0x64]] }
 0x1ee   : > { %v1183_v34 = vstv %s5329_s14  ;;  %s5526_s14 = sld [smem:[#allocation2 + $0x74]] }
 0x1ef   : > { %v5304_v60 = vpop.permute.xlu1 %1494  ;;  %v2552_v50 = vsel %vm2148_vm3, %v2550_v55, %v6904_v51  ;;  %v312_v55 = vmul.f32 %v4734_v18, %v310_v20  ;;  %v317_v51 = vmul.f32 %v4729_v5, %v316_v10  ;;  %v1542_v20 = vrot.slane %v1538_v1, 2 }
 0x1f0   : > { %6903 = vst [vmem:[#allocation113_spill] sm:$0xff] %v5304_v60  ;;  %v5321_v60 = vpop.permute.xlu0 %939  ;;  %v2082_v30 = vsel %vm1661_vm2, %v2080_v59, %v6907_v37  ;;  %v2092_v1 = vstv %s5279_s13  ;;  %v6910_v37 = vrot.slane %v5097_v6, 2  ;;  %v328_v59 = vstv %s5289_s28  ;;  %s5387_s13 = sld [smem:[#allocation2 + $0x8b]]  ;;  %s6915_s28 = smov 126  }
 0x1f1   : > { %6905 = vst [vmem:[#allocation114_spill] sm:$0xff] %v5321_v60  ;;  %1528 = vrot.lane.b32.xlu1 %v1527_v54, %s3786_s8  ;;  %2553 = vrot.lane.b32.xlu0 %v2552_v50, %s3787_s27  ;;  %v688_v54 = vrot.slane %v683_v28, 1  ;;  %v5350_v50 = vadd.f32 %v311_v53, %v298_v63  ;;  %v5352_v60 = vadd.f32 %v312_v55, %v298_v63  ;;  %v6911_v53 = vrot.slane %v5299_v27, 2 }
 0x1f2   : > { %v5360_v28 = vadd.f32 %v318_v48, %v300_v3  ;;  %v1169_v55 = vstv %s5302_s26  ;;  %v2093_v10 = vmul.f32 %v4729_v5, %v2092_v1  ;;  %v5372_v6 = vmul.f32 %v4734_v18, %v2092_v1  ;;  %s5409_s26 = sld [smem:[#allocation2 + $0xf]] }
 0x1f3   : > { %v5338_v43 = vpop.permute.xlu1 %839  ;;  %v1544_v63 = vsel %vm1174_vm1, %v1542_v20, %v6911_v53  ;;  %v323_v20 = vmul.f32 %v4729_v5, %v322_v26  ;;  %v302_v1 = vstv %s5317_s7  ;;  %v5406_v9 = vmul.f32 %v4734_v18, %v1169_v55  ;;  %s5445_s7 = sld [smem:[#allocation2 + $0x28]] }
 0x1f4   : > { %6906 = vst [vmem:[#allocation115_spill] sm:$0xff] %v5338_v43  ;;  %v5347_v29 = vpop.permute.xlu0 %2049  ;;  %v5354_v43 = vadd.f32 %v317_v51, %v300_v3  ;;  %v6913_v3 = vrot.slane %v5315_v38, 1  ;;  %v2097_v57 = vrot.slane %v2093_v10, 3  ;;  %v324_v10 = vmul.f32 %v4734_v18, %v322_v26 }
 0x1f5   : > { %6909 = vst [vmem:[#allocation117_spill] sm:$0xff] %v5347_v29  ;;  %1343 = vrot.lane.b32.xlu1 %v6910_v37, %s3785_s15  ;;  %2083 = vrot.lane.b32.xlu0 %v2082_v30, %s3787_s27  ;;  %v709_v37 = vstv %s5319_s11  ;;  %v304_v29 = vstv %s5327_s23  ;;  %v6916_v30 = vrot.slane %v5152_v35, 2  ;;  %v6918_v35 = vrot.slane %v5345_v47, 1  ;;  %s5462_s11 = sld [smem:[#allocation2 + $0x47]]  ;;  %s5467_s23 = sld [smem:[#allocation2 + $0x3c]] }
 0x1f6   : > { %v5378_v48 = vsel %vm687_vm0, %v688_v54, %v6913_v3  ;;  %v1170_v54 = vmul.f32 %v4729_v5, %v1169_v55  ;;  %v722_v3 = vstv %s5334_s24  ;;  %v710_v61 = vmul.f32 %v4729_v5, %v709_v37  ;;  %s5425_s24 = sld [smem:[#allocation7 + $0x4]] }
 0x1f7   : > { %v5368_v51 = vpop.permute.xlu1 %1309  ;;  %v5419_v52 = vadd.f32 %v323_v20, %v302_v1  ;;  %v1184_v55 = vmul.f32 %v4729_v5, %v1183_v34  ;;  %v5431_v58 = vmul.f32 %v4734_v18, %v1183_v34  ;;  %v6921_v20 = vrot.slane %v5148_v17, 3 }
 0x1f8   : > { %6912 = vst [vmem:[#allocation118_spill] sm:$0xff] %v5368_v51  ;;  %v5385_v53 = vpop.permute.xlu0 %956  ;;  %v329_v51 = vmul.f32 %v4729_v5, %v328_v59  ;;  %v330_v26 = vmul.f32 %v4734_v18, %v328_v59  ;;  %v6923_v34 = vrot.slane %v5115_v46, 3  ;;  %v714_v17 = vrot.slane %v710_v61, 1 }
 0x1f9   : > { %6914 = vst [vmem:[#allocation119_spill] sm:$0xff] %v5385_v53  ;;  %1545 = vrot.lane.b32.xlu1 %v1544_v63, %s3786_s8  ;;  %1428 = vrot.lane.b32.xlu0 %v6916_v30, %s6915_s28  ;;  %v1623_v53 = vmul.f32 %v4729_v5, %v1622_v16  ;;  %v5417_v30 = vsel %vm687_vm0, %v701_v25, %v6918_v35  ;;  %6919 = vst [vmem:[#allocation121_spill] sm:$0xff] %v5419_v52  ;;  %v6730_v35 = vrot.slane %v5403_v40, 2 }
 0x1fa   : > { %v5422_v16 = vmul.f32 %v4734_v18, %v709_v37  ;;  %v5435_v25 = vmul.f32 %v4734_v18, %v722_v3  ;;  %v5442_v37 = vadd.f32 %v329_v51, %v304_v29  ;;  %v6925_v51 = vrot.slane %v5372_v6, 3 }
 0x1fb   : > { %v5411_v63 = vpop.permute.xlu1 %1511  ;;  %v1188_v13 = vrot.slane %v1184_v55, 2  ;;  %v334_v47 = vstv %s5383_s10  ;;  %v340_v52 = vstv %s5393_s12  ;;  %v357_v55 = vadd.f32 %v4315_v36, %v5350_v50  ;;  %s5535_s10 = sld [smem:[#allocation2 + $0x60]]  ;;  %s5560_s12 = sld [smem:[#allocation2 + $0x69]] }
 0x1fc   : > { %6917 = vst [vmem:[#allocation120_spill] sm:$0xff] %v5411_v63  ;;  %v5427_v44 = vpop.permute.xlu0 %1394  ;;  %v723_v63 = vmul.f32 %v4729_v5, %v722_v3  ;;  %6922 = vst [vmem:[#allocation123_spill] sm:$0xff] %v5442_v37  ;;  %v1627_v3 = vrot.slane %v1623_v53, 2  ;;  %v2099_v59 = vsel %vm1661_vm2, %v2097_v57, %v6925_v51  ;;  %v1639_v53 = vstv %s5387_s13  ;;  %s5551_s13 = sld [smem:[#allocation2 + $0x55]] }
 0x1fd   : > { %6920 = vst [vmem:[#allocation122_spill] sm:$0xff] %v5427_v44  ;;  %1983 = vrot.lane.b32.xlu1 %v6921_v20, %s3786_s8  ;;  %1898 = vrot.lane.b32.xlu0 %v6923_v34, %s6915_s28  ;;  %v1175_v44 = vrot.slane %v1170_v54, 2  ;;  %v6927_v57 = vrot.slane %v5126_v24, 4  ;;  %v5474_v51 = vadd.f32 %v324_v10, %v302_v1  ;;  %v5476_v37 = vadd.f32 %v330_v26, %v304_v29 }
 0x1fe   : > { %v727_v34 = vrot.slane %v723_v63, 1  ;;  %v1629_v63 = vsel %vm1174_vm1, %v1627_v3, %v6730_v35  ;;  %v335_v61 = vmul.f32 %v4729_v5, %v334_v47  ;;  %v1656_v54 = vstv %s5409_s26  ;;  %s5581_s26 = sld [smem:[#allocation2 + $0x48]] }
 0x1ff   : > { %v5452_v20 = vpop.permute.xlu1 %1949  ;;  %v1640_v24 = vmul.f32 %v4729_v5, %v1639_v53  ;;  %v5488_v36 = vmul.f32 %v4734_v18, %v1639_v53  ;;  %v6929_v29 = vrot.slane %v5406_v9, 2  ;;  %v6930_v1 = vrot.slane %v5422_v16, 1 }
 0x200   : > { %6924 = vst [vmem:[#allocation124_spill] sm:$0xff] %v5452_v20  ;;  %v5459_v46 = vpop.permute.xlu0 %1864  ;;  %v306_v26 = vstv %s5425_s24  ;;  %v341_v3 = vmul.f32 %v4729_v5, %v340_v52  ;;  %v6933_v35 = vrot.slane %v5435_v25, 1  ;;  %v336_v20 = vmul.f32 %v4734_v18, %v334_v47  ;;  %s5595_s24 = sld [smem:[#allocation2 + $0x82]] }
 0x201   : > { %6926 = vst [vmem:[#allocation125_spill] sm:$0xff] %v5459_v46  ;;  %2453 = vrot.lane.b32.xlu1 %v6927_v57, %s3786_s8  ;;  %2100 = vrot.lane.b32.xlu0 %v2099_v59, %s3787_s27  ;;  %v5493_v50 = vsel %vm1174_vm1, %v1175_v44, %v6929_v29  ;;  %v5498_v10 = vsel %vm687_vm0, %v714_v17, %v6930_v1  ;;  %v6932_v57 = vrot.slane %v5431_v58, 2  ;;  %v308_v29 = vstv %s5437_s30  ;;  %s5620_s30 = sld [smem:[#allocation2 + $0x8d]] }
 0x202   : > { %v5512_v44 = vsel %vm687_vm0, %v727_v34, %v6933_v35  ;;  %v441_v17 = vadd.f32 %v4310_v32, %v357_v55  ;;  %v1657_v1 = vmul.f32 %v4729_v5, %v1656_v54  ;;  %v371_v47 = vadd.f32 %v4331_v42, %v5354_v43 }
 0x203   : > { %v5484_v46 = vpop.permute.xlu1 %1041  ;;  %v5507_v53 = vsel %vm1174_vm1, %v1188_v13, %v6932_v57  ;;  %v1670_v13 = vstv %s5445_s7  ;;  %v6935_v57 = vrot.slane %v5175_v15, 4  ;;  %v5530_v35 = vadd.f32 %v335_v61, %v306_v26  ;;  %s5644_s7 = sld [smem:[#allocation2 + $0x75]] }
 0x204   : > { %6928 = vst [vmem:[#allocation126_spill] sm:$0xff] %v5484_v46  ;;  %v5502_v59 = vpop.permute.xlu0 %2066  ;;  %v1644_v34 = vrot.slane %v1640_v24, 2  ;;  %v6735_v55 = vrot.slane %v5488_v36, 2  ;;  %v525_v15 = vadd.f32 %v4342_v49, %v441_v17  ;;  %v2256_v46 = vstv %s5462_s11  ;;  %s5654_s11 = sld [smem:[#allocation2 + $0x61]] }
 0x205   : > { %6931 = vst [vmem:[#allocation127_spill] sm:$0xff] %v5502_v59  ;;  %1630 = vrot.lane.b32.xlu1 %v1629_v63, %s3787_s27  ;;  %v5520_v59 = vmul.f32 %v4734_v18, %v1656_v54  ;;  %2538 = vrot.lane.b32.xlu0 %v6935_v57, %s3787_s27  ;;  %v358_v54 = vadd.f32 %v4326_v41, %v5352_v60  ;;  %v1196_v24 = vstv %s5467_s23  ;;  %v6938_v41 = vrot.slane %v5247_v0, 2  ;;  %s5690_s23 = sld [smem:[#allocation2 + $0x49]] }
 0x206   : > { %v5540_v63 = vadd.f32 %v341_v3, %v308_v29  ;;  %v455_v42 = vadd.f32 %v4351_v45, %v371_v47  ;;  %v1671_v43 = vmul.f32 %v4729_v5, %v1670_v13  ;;  %v5548_v61 = vmul.f32 %v4734_v18, %v1670_v13 }
 0x207   : > { %6934 = vst [vmem:[#allocation128_spill] sm:$0xff] %v5520_v59  ;;  %v5532_v32 = vpop.permute.xlu1 %856  ;;  %v609_v49 = vadd.f32 %v4377_v2, %v525_v15  ;;  %v5557_v60 = vadd.f32 %v336_v20, %v306_v26  ;;  %v1662_v3 = vrot.slane %v1657_v1, 3  ;;  %v6732_v45 = vrot.slane %v5520_v59, 3  ;;  %v5572_v2 = vld [vmem:[%s4043_s16] sm:$0xff]  ;;  %v5576_v26 = vld [vmem:[%s4043_s16 + $0x8] sm:$0xff] }
 0x208   : > { %6936 = vst [vmem:[#allocation129_spill] sm:$0xff] %v5532_v32  ;;  %v5542_v57 = vpop.permute.xlu0 %1596  ;;  %6937 = vst [vmem:[#allocation130_spill] sm:$0xff] %v5548_v61  ;;  %v6939_v5 = vrot.slane %v5195_v22, 2  ;;  %v539_v18 = vadd.f32 %v4383_v7, %v455_v42  ;;  %v1646_v0 = vsel %vm1174_vm1, %v1644_v34, %v6735_v55  ;;  %v2257_v20 = vmul.f32 %v5572_v2, %v2256_v46  ;;  %v6975_v59 = vld [vmem:[#allocation29_spill] sm:$0xff] }
 0x209   : > { %1530 = vrot.lane.b32.xlu1 %v6938_v41, %s3786_s8  ;;  %v5579_v1 = vmul.f32 %v5576_v26, %v2256_v46  ;;  %v372_v7 = vadd.f32 %v4366_v62, %v5360_v28  ;;  %v342_v22 = vmul.f32 %v5576_v26, %v340_v52  ;;  %v1197_v13 = vmul.f32 %v5572_v2, %v1196_v24 }
 0x20a   : > { %1445 = vrot.lane.b32.xlu0 %v6939_v5, %s6915_s28  ;;  %v5588_v47 = vmul.f32 %v5576_v26, %v1196_v24  ;;  %v442_v15 = vadd.f32 %v4363_v56, %v358_v54  ;;  %v623_v46 = vadd.f32 %v4410_v23, %v539_v18  ;;  %v1675_v42 = vrot.slane %v1671_v43, 3 }
 0x20b   : > { %v5566_v17 = vpop.permute.xlu1 %1058  ;;  %v6731_v41 = vrot.slane %v5548_v61, 3  ;;  %v6941_v62 = vrot.slane %v5205_v31, 3  ;;  %v456_v52 = vadd.f32 %v4395_v14, %v372_v7  ;;  %v693_v28 = vadd.f32 %v5378_v48, %v609_v49 }
 0x20c   : > { %v5590_v34 = vpop.permute.xlu0 %941  ;;  %v5605_v24 = vsel %vm1661_vm2, %v1662_v3, %v6732_v45  ;;  %v1803_v56 = vstv %s5526_s14  ;;  %v526_v23 = vadd.f32 %v4393_v12, %v442_v15  ;;  %v2261_v31 = vrot.slane %v2257_v20, 4  ;;  %s5729_s14 = sld [smem:[#allocation2 + $0x8e]] }
 0x20d   : > { %6940 = vst [vmem:[#allocation131_spill] sm:$0xff] %v5590_v34  ;;  %2000 = vrot.lane.b32.xlu1 %v6941_v62, %s3786_s8  ;;  %v6734_v43 = vrot.slane %v5579_v1, 4  ;;  %v2273_v14 = vstv %s5535_s10  ;;  %v540_v48 = vadd.f32 %v4404_v19, %v456_v52  ;;  %v5615_v49 = vadd.f32 %v342_v22, %v308_v29  ;;  %s5761_s10 = sld [smem:[#allocation2 + $0x62]]  ;;  %v6970_v34 = vld [vmem:[#allocation26_spill] sm:$0xff] }
 0x20e   : > { %1647 = vrot.lane.b32.xlu0 %v1646_v0, %s3787_s27  ;;  %v1201_v5 = vrot.slane %v1197_v13, 2  ;;  %v6733_v3 = vrot.slane %v5588_v47, 2  ;;  %v706_v12 = vadd.f32 %v5417_v30, %v623_v46  ;;  %v5626_v0 = vsel %vm1661_vm2, %v1675_v42, %v6731_v41 }
 0x20f   : > { %v5610_v54 = vpop.permute.xlu1 %1496  ;;  %6943 = vst [vmem:[#allocation133_spill] sm:$0xff] %v5626_v0  ;;  %v1209_v20 = vstv %s5551_s13  ;;  %v6944_v19 = vrot.slane %v5255_v8, 4  ;;  %v1804_v29 = vmul.f32 %v5572_v2, %v1803_v56  ;;  %v735_v7 = vstv %s5560_s12  ;;  %s5780_s13 = sld [smem:[#allocation2 + $0x14]]  ;;  %s5796_s12 = sld [smem:[#allocation2 + $0x4a]] }
 0x210   : > { %v5618_v18 = vpop.permute.xlu0 %1411  ;;  %v6945_v22 = vrot.slane %v5274_v39, 3  ;;  %v5638_v13 = vmul.f32 %v5576_v26, %v1803_v56  ;;  %v2274_v30 = vmul.f32 %v5572_v2, %v2273_v14  ;;  %v5642_v15 = vmul.f32 %v5576_v26, %v2273_v14 }
 0x211   : > { %6942 = vst [vmem:[#allocation132_spill] sm:$0xff] %v5618_v18  ;;  %2555 = vrot.lane.b32.xlu1 %v6944_v19, %s3787_s27  ;;  %v610_v8 = vadd.f32 %v4426_v33, %v526_v23  ;;  %v624_v46 = vadd.f32 %v4443_v11, %v540_v48  ;;  %v2263_v39 = vsel %vm2148_vm3, %v2261_v31, %v6734_v43  ;;  %v2358_v62 = vstv %s5581_s26  ;;  %s5804_s26 = sld [smem:[#allocation2 + $0x76]] }
 0x212   : > { %2085 = vrot.lane.b32.xlu0 %v6945_v22, %s3787_s27  ;;  %v775_v52 = vadd.f32 %v4419_v4, %v693_v28  ;;  %v5660_v56 = vsel %vm1174_vm1, %v1201_v5, %v6733_v3  ;;  %v1210_v33 = vmul.f32 %v5572_v2, %v1209_v20  ;;  %v5664_v11 = vmul.f32 %v5576_v26, %v1209_v20  ;;  %v6951_v3 = vld [vmem:[#allocation116_spill] sm:$0xff] }
 0x213   : > { %v5648_v42 = vpop.permute.xlu1 %1966  ;;  %v736_v14 = vmul.f32 %v5572_v2, %v735_v7  ;;  %v5670_v31 = vmul.f32 %v5576_v26, %v735_v7  ;;  %v748_v48 = vstv %s5595_s24  ;;  %v6949_v4 = vrot.slane %v5299_v27, 2  ;;  %s5814_s24 = sld [smem:[#allocation2 + $0x2d]] }
 0x214   : > { %6946 = vst [vmem:[#allocation134_spill] sm:$0xff] %v5648_v42  ;;  %6947 = vst [vmem:[#allocation135_spill] sm:$0xff] %v5664_v11  ;;  %v5666_v23 = vpop.permute.xlu0 %1613  ;;  %v1808_v28 = vrot.slane %v1804_v29, 3  ;;  %v6736_v5 = vrot.slane %v5638_v13, 3  ;;  %v2278_v20 = vrot.slane %v2274_v30, 4  ;;  %v6738_v19 = vrot.slane %v5642_v15, 4 }
 0x215   : > { %6948 = vst [vmem:[#allocation136_spill] sm:$0xff] %v5670_v31  ;;  %1547 = vrot.lane.b32.xlu1 %v6949_v4, %s3786_s8  ;;  %v2359_v22 = vmul.f32 %v5572_v2, %v2358_v62  ;;  %v792_v41 = vadd.f32 %v4437_v21, %v706_v12  ;;  %v6950_v7 = vrot.slane %v5315_v38, 1  ;;  %v6952_v43 = vrot.slane %v6951_v3, 1  ;;  %v6953_v30 = vld [vmem:[#allocation19_spill] sm:$0xff]  ;;  %v6959_v12 = vld [vmem:[#allocation20_spill] sm:$0xff] }
 0x216   : > { %2264 = vrot.lane.b32.xlu0 %v2263_v39, %s3785_s15  ;;  %v5688_v29 = vmul.f32 %v5576_v26, %v2358_v62  ;;  %v877_v39 = vadd.f32 %v6953_v30, %v775_v52  ;;  %v749_v55 = vmul.f32 %v5572_v2, %v748_v48  ;;  %v5695_v21 = vmul.f32 %v5576_v26, %v748_v48 }
 0x217   : > { %v694_v45 = vadd.f32 %v6950_v7, %v610_v8  ;;  %v707_v27 = vadd.f32 %v6952_v43, %v624_v46  ;;  %v5685_v4 = vpop.permute.xlu1 %1143  ;;  %v1820_v3 = vstv %s5620_s30  ;;  %v1214_v43 = vrot.slane %v1210_v33, 2  ;;  %v6963_v46 = vld [vmem:[#allocation22_spill] sm:$0xff]  ;;  %s5845_s30 = sld [smem:[#allocation2 + $0x41]] }
 0x218   : > { %v5697_v38 = vpop.permute.xlu0 %2051  ;;  %v740_v8 = vrot.slane %v736_v14, 1  ;;  %v6955_v62 = vrot.slane %v5372_v6, 3  ;;  %v6956_v52 = vrot.slane %v5403_v40, 2  ;;  %v1810_v48 = vsel %vm1661_vm2, %v1808_v28, %v6736_v5  ;;  %v6960_v28 = vld [vmem:[#allocation21_spill] sm:$0xff] }
 0x219   : > { %6954 = vst [vmem:[#allocation116_spill] sm:$0xff] %v5697_v38  ;;  %v2280_v33 = vsel %vm2148_vm3, %v2278_v20, %v6738_v19  ;;  %v2363_v7 = vrot.slane %v2359_v22, 4  ;;  %v1905_v14 = vstv %s5644_s7  ;;  %v1821_v6 = vmul.f32 %v5572_v2, %v1820_v3  ;;  %v6962_v19 = vld [vmem:[#allocation123_spill] sm:$0xff]  ;;  %s5868_s7 = sld [smem:[#allocation2 + $0x8f]] }
 0x21a   : > { %2102 = vrot.lane.b32.xlu1 %v6955_v62, %s3787_s27  ;;  %1632 = vrot.lane.b32.xlu0 %v6956_v52, %s3787_s27  ;;  %v5720_v62 = vmul.f32 %v5576_v26, %v1820_v3  ;;  %v2375_v40 = vstv %s5654_s11  ;;  %v6958_v52 = vld [vmem:[#allocation121_spill] sm:$0xff]  ;;  %v776_v5 = vadd.f32 %v6960_v28, %v694_v45  ;;  %v753_v61 = vrot.slane %v749_v55, 1  ;;  %s5895_s11 = sld [smem:[#allocation2 + $0x63]] }
 0x21b   : > { %v5715_v30 = vpop.permute.xlu1 %958  ;;  %v385_v42 = vadd.f32 %v6959_v12, %v6958_v52  ;;  %v399_v38 = vadd.f32 %v6963_v46, %v6962_v19  ;;  %v6964_v3 = vrot.slane %v5664_v11, 2  ;;  %v6965_v12 = vrot.slane %v5670_v31, 1  ;;  %v6966_v52 = vld [vmem:[#allocation24_spill] sm:$0xff] }
 0x21c   : > { %6957 = vst [vmem:[#allocation19_spill] sm:$0xff] %v5715_v30  ;;  %v5727_v22 = vpop.permute.xlu0 %2230  ;;  %v1906_v55 = vmul.f32 %v5572_v2, %v1905_v14  ;;  %v894_v28 = vadd.f32 %v6966_v52, %v792_v41  ;;  %v5748_v19 = vmul.f32 %v5576_v26, %v1905_v14  ;;  %v2376_v46 = vmul.f32 %v5572_v2, %v2375_v40  ;;  %v6969_v52 = vld [vmem:[#allocation25_spill] sm:$0xff] }
 0x21d   : > { %6961 = vst [vmem:[#allocation121_spill] sm:$0xff] %v5727_v22  ;;  %v5736_v18 = vsel %vm1174_vm1, %v1214_v43, %v6964_v3  ;;  %v5741_v45 = vsel %vm687_vm0, %v740_v8, %v6965_v12  ;;  %v5752_v43 = vmul.f32 %v5576_v26, %v2375_v40  ;;  %v6967_v8 = vrot.slane %v5688_v29, 4 }
 0x21e   : > { %1811 = vrot.lane.b32.xlu1 %v1810_v48, %s3785_s15  ;;  %2281 = vrot.lane.b32.xlu0 %v2280_v33, %s3785_s15  ;;  %v1825_v12 = vrot.slane %v1821_v6, 3  ;;  %v2460_v41 = vstv %s5690_s23  ;;  %v6968_v33 = vld [vmem:[#allocation23_spill] sm:$0xff]  ;;  %v386_v22 = vadd.f32 %v6969_v52, %v5474_v51  ;;  %v979_v40 = vadd.f32 %v6970_v34, %v877_v39  ;;  %v6977_v39 = vld [vmem:[#allocation32_spill] sm:$0xff]  ;;  %s5911_s23 = sld [smem:[#allocation2 + $0x5a]] }
 0x21f   : > { %v5754_v3 = vpop.permute.xlu1 %1160  ;;  %v2365_v48 = vsel %vm2148_vm3, %v2363_v7, %v6967_v8  ;;  %v469_v14 = vadd.f32 %v6968_v33, %v385_v42  ;;  %v6971_v11 = vrot.slane %v5695_v21, 1  ;;  %v6973_v7 = vld [vmem:[#allocation27_spill] sm:$0xff]  ;;  %v6974_v8 = vld [vmem:[#allocation28_spill] sm:$0xff]  ;;  %v996_v0 = vadd.f32 %v6975_v59, %v894_v28 }
 0x220   : > { %v5772_v31 = vpop.permute.xlu0 %1043  ;;  %v793_v6 = vadd.f32 %v6973_v7, %v707_v27  ;;  %v483_v20 = vadd.f32 %v6974_v8, %v399_v38  ;;  %v6976_v42 = vrot.slane %v5488_v36, 2  ;;  %v1910_v51 = vrot.slane %v1906_v55, 3  ;;  %v6978_v59 = vld [vmem:[#allocation36_spill] sm:$0xff]  ;;  %v6981_v7 = vld [vmem:[#allocation31_spill] sm:$0xff] }
 0x221   : > { %v5770_v30 = vsel %vm687_vm0, %v753_v61, %v6971_v11  ;;  %6972 = vst [vmem:[#allocation20_spill] sm:$0xff] %v5772_v31  ;;  %v2380_v34 = vrot.slane %v2376_v46, 4  ;;  %v2461_v27 = vmul.f32 %v5572_v2, %v2460_v41  ;;  %v553_v38 = vadd.f32 %v6977_v39, %v469_v14  ;;  %v6980_v46 = vld [vmem:[#allocation30_spill] sm:$0xff]  ;;  %v6984_v39 = vld [vmem:[#allocation33_spill] sm:$0xff] }
 0x222   : > { %1649 = vrot.lane.b32.xlu1 %v6976_v42, %s3787_s27  ;;  %2366 = vrot.lane.b32.xlu0 %v2365_v48, %s6915_s28  ;;  %v567_v28 = vadd.f32 %v6978_v59, %v483_v20  ;;  %v6979_v36 = vrot.slane %v5720_v62, 3  ;;  %v5794_v52 = vmul.f32 %v5576_v26, %v2460_v41  ;;  %v878_v48 = vadd.f32 %v6980_v46, %v776_v5  ;;  %v6982_v42 = vld [vmem:[#allocation37_spill] sm:$0xff] }
 0x223   : > { %v5788_v33 = vpop.permute.xlu1 %1598  ;;  %v1081_v8 = vadd.f32 %v6981_v7, %v979_v40  ;;  %v1098_v11 = vadd.f32 %v6982_v42, %v996_v0  ;;  %v1922_v20 = vstv %s5729_s14  ;;  %v470_v59 = vadd.f32 %v6984_v39, %v386_v22  ;;  %v6987_v31 = vld [vmem:[#allocation41_spill] sm:$0xff]  ;;  %v6989_v0 = vld [vmem:[#allocation38_spill] sm:$0xff]  ;;  %v6993_v42 = vld [vmem:[#allocation35_spill] sm:$0xff]  ;;  %s5937_s14 = sld [smem:[#allocation2 + $0x77]] }
 0x224   : > { %v1827_v55 = vsel %vm1661_vm2, %v1825_v12, %v6979_v36  ;;  %v5801_v14 = vpop.permute.xlu0 %1513  ;;  %v6985_v12 = vld [vmem:[#allocation34_spill] sm:$0xff]  ;;  %v6986_v36 = vld [vmem:[#allocation40_spill] sm:$0xff]  ;;  %v651_v32 = vadd.f32 %v6987_v31, %v567_v28  ;;  %v6988_v5 = vrot.slane %v5579_v1, 4  ;;  %v980_v40 = vadd.f32 %v6989_v0, %v878_v48 }
 0x225   : > { %6983 = vst [vmem:[#allocation21_spill] sm:$0xff] %v5801_v14  ;;  %v400_v41 = vadd.f32 %v6985_v12, %v5476_v37  ;;  %v637_v61 = vadd.f32 %v6986_v36, %v553_v38  ;;  %v6990_v46 = vrot.slane %v5748_v19, 3  ;;  %v6991_v37 = vrot.slane %v5752_v43, 4  ;;  %v6994_v12 = vld [vmem:[#allocation43_spill] sm:$0xff] }
 0x226   : > { %2266 = vrot.lane.b32.xlu1 %v6988_v5, %s3785_s15  ;;  %1828 = vrot.lane.b32.xlu0 %v1827_v55, %s3785_s15  ;;  %v2465_v7 = vrot.slane %v2461_v27, 4  ;;  %v1923_v28 = vmul.f32 %v5572_v2, %v1922_v20  ;;  %v5829_v48 = vmul.f32 %v5576_v26, %v1922_v20  ;;  %v2477_v55 = vstv %s5761_s10  ;;  %v6996_v5 = vld [vmem:[#allocation39_spill] sm:$0xff]  ;;  %s5950_s10 = sld [smem:[#allocation2 + $0x6e]] }
 0x227   : > { %v1912_v22 = vsel %vm1661_vm2, %v1910_v51, %v6990_v46  ;;  %v2382_v38 = vsel %vm2148_vm3, %v2380_v34, %v6991_v37  ;;  %v5824_v31 = vpop.permute.xlu1 %2247  ;;  %v895_v39 = vadd.f32 %v6993_v42, %v793_v6  ;;  %v1082_v51 = vadd.f32 %v6994_v12, %v980_v40  ;;  %v6997_v46 = vld [vmem:[#allocation42_spill] sm:$0xff]  ;;  %v7001_v40 = vld [vmem:[#allocation47_spill] sm:$0xff]  ;;  %v7002_v42 = vld [vmem:[#allocation48_spill] sm:$0xff] }
 0x228   : > { %6992 = vst [vmem:[#allocation123_spill] sm:$0xff] %v5824_v31  ;;  %v1180_v36 = vadd.f32 %v5493_v50, %v1081_v8  ;;  %v1193_v34 = vadd.f32 %v5507_v53, %v1098_v11  ;;  %v5836_v27 = vpop.permute.xlu0 %2068  ;;  %v484_v0 = vadd.f32 %v6996_v5, %v400_v41  ;;  %v554_v37 = vadd.f32 %v6997_v46, %v470_v59  ;;  %v6998_v50 = vld [vmem:[#allocation44_spill] sm:$0xff]  ;;  %v7004_v46 = vld [vmem:[#allocation45_spill] sm:$0xff] }
 0x229   : > { %6995 = vst [vmem:[#allocation22_spill] sm:$0xff] %v5836_v27  ;;  %v719_v1 = vadd.f32 %v5498_v10, %v637_v61  ;;  %v5842_v20 = vadd.f32 %v5512_v44, %v651_v32  ;;  %v997_v6 = vadd.f32 %v6998_v50, %v895_v39  ;;  %v2143_v53 = vstv %s5780_s13  ;;  %s5960_s13 = sld [smem:[#allocation2 + $0x87]] }
 0x22a   : > { %1913 = vrot.lane.b32.xlu1 %v1912_v22, %s6915_s28  ;;  %2383 = vrot.lane.b32.xlu0 %v2382_v38, %s6915_s28  ;;  %v2478_v11 = vmul.f32 %v5572_v2, %v2477_v55  ;;  %v5852_v8 = vmul.f32 %v5576_v26, %v2477_v55  ;;  %v7000_v44 = vrot.slane %v5794_v52, 4  ;;  %v1927_v61 = vrot.slane %v1923_v28, 3 }
 0x22b   : > { %v5854_v10 = vpop.permute.xlu1 %2332  ;;  %v6742_v59 = vrot.slane %v5829_v48, 3  ;;  %v2562_v41 = vstv %s5796_s12  ;;  %v1099_v22 = vadd.f32 %v7001_v40, %v997_v6  ;;  %v638_v38 = vadd.f32 %v7002_v42, %v554_v37  ;;  %v7007_v40 = vld [vmem:[#allocation46_spill] sm:$0xff]  ;;  %s5972_s12 = sld [smem:[#allocation2 + $0x90]] }
 0x22c   : > { %6999 = vst [vmem:[#allocation24_spill] sm:$0xff] %v5854_v10  ;;  %v2467_v32 = vsel %vm2148_vm3, %v2465_v7, %v7000_v44  ;;  %v7003_v39 = vrot.slane %v5406_v9, 2  ;;  %v5865_v5 = vpop.permute.xlu0 %1777  ;;  %v2007_v55 = vstv %s5804_s26  ;;  %v568_v50 = vadd.f32 %v7004_v46, %v484_v0  ;;  %s6049_s26 = sld [smem:[#allocation2 + $0x79]] }
 0x22d   : > { %v2144_v7 = vmul.f32 %v5572_v2, %v2143_v53  ;;  %v5873_v28 = vmul.f32 %v5576_v26, %v2143_v53  ;;  %v2157_v44 = vstv %s5814_s24  ;;  %v7006_v6 = vrot.slane %v5638_v13, 3  ;;  %s6089_s24 = sld [smem:[#allocation2 + $0x92]] }
 0x22e   : > { %v1181_v12 = vadd.f32 %v7003_v39, %v1082_v51  ;;  %2468 = vrot.lane.b32.xlu0 %v2467_v32, %s3786_s8  ;;  %v2482_v9 = vrot.slane %v2478_v11, 4  ;;  %v2563_v37 = vmul.f32 %v5572_v2, %v2562_v41  ;;  %v5883_v0 = vmul.f32 %v5576_v26, %v2562_v41  ;;  %v7009_v32 = vld [vmem:[#allocation49_spill] sm:$0xff] }
 0x22f   : > { %7005 = vst [vmem:[#allocation23_spill] sm:$0xff] %v5873_v28  ;;  %1813 = vrot.lane.b32.xlu1 %v7006_v6, %s3785_s15  ;;  %v1262_v42 = vadd.f32 %v7007_v40, %v1180_v36  ;;  %v5886_v53 = vpop.permute.xlu1 %1145  ;;  %v1929_v13 = vsel %vm1661_vm2, %v1927_v61, %v6742_v59  ;;  %v2008_v39 = vmul.f32 %v5572_v2, %v2007_v55  ;;  %v7010_v6 = vld [vmem:[#allocation51_spill] sm:$0xff]  ;;  %v7011_v51 = vrot.slane %v5422_v16, 1 }
 0x230   : > { %7008 = vst [vmem:[#allocation25_spill] sm:$0xff] %v5886_v53  ;;  %v5893_v11 = vmul.f32 %v5576_v26, %v2007_v55  ;;  %v809_v46 = vadd.f32 %v7009_v32, %v719_v1  ;;  %v652_v41 = vadd.f32 %v7010_v6, %v568_v50  ;;  %v7012_v40 = vrot.slane %v5431_v58, 2  ;;  %v5903_v10 = vpop.permute.xlu0 %1060  ;;  %v7017_v50 = vld [vmem:[#allocation50_spill] sm:$0xff] }
 0x231   : > { %v720_v36 = vadd.f32 %v7011_v51, %v638_v38  ;;  %7013 = vst [vmem:[#allocation26_spill] sm:$0xff] %v5903_v10  ;;  %v2149_v61 = vrot.slane %v2144_v7, 4  ;;  %v6743_v59 = vrot.slane %v5873_v28, 4  ;;  %v2158_v55 = vmul.f32 %v5572_v2, %v2157_v44  ;;  %v7018_v51 = vld [vmem:[#allocation52_spill] sm:$0xff] }
 0x232   : > { %v1194_v27 = vadd.f32 %v7012_v40, %v1099_v22  ;;  %v1683_v31 = vstv %s5845_s30  ;;  %v7014_v14 = vrot.slane %v5642_v15, 4  ;;  %v5914_v16 = vmul.f32 %v5576_v26, %v2157_v44  ;;  %1930 = vrot.lane.b32.xlu0 %v1929_v13, %s6915_s28  ;;  %v7034_v28 = vld [vmem:[#allocation60_spill] sm:$0xff]  ;;  %s6146_s30 = sld [smem:[#allocation2 + $0x7a]] }
 0x233   : > { %v7016_v58 = vrot.slane %v5852_v8, 4  ;;  %v2567_v22 = vrot.slane %v2563_v37, 4  ;;  %v6744_v38 = vrot.slane %v5883_v0, 4  ;;  %v1279_v7 = vadd.f32 %v7017_v50, %v1193_v34  ;;  %v7021_v34 = vld [vmem:[#allocation53_spill] sm:$0xff] }
 0x234   : > { %2283 = vrot.lane.b32.xlu1 %v7014_v14, %s3785_s15  ;;  %7015 = vst [vmem:[#allocation27_spill] sm:$0xff] %v5914_v16  ;;  %v1364_v15 = vadd.f32 %v7018_v51, %v1262_v42  ;;  %v5923_v14 = vpop.permute.xlu1 %1794  ;;  %v2012_v32 = vrot.slane %v2008_v39, 3  ;;  %v7019_v44 = vrot.slane %v5435_v25, 1  ;;  %v1684_v13 = vmul.f32 %v5572_v2, %v1683_v31  ;;  %v5934_v37 = vpop.permute.xlu0 %1615  ;;  %v7022_v39 = vld [vmem:[#allocation54_spill] sm:$0xff]  ;;  %v7023_v25 = vld [vmem:[#allocation55_spill] sm:$0xff] }
 0x235   : > { %v2484_v1 = vsel %vm2148_vm3, %v2482_v9, %v7016_v58  ;;  %v5932_v9 = vmul.f32 %v5576_v26, %v1683_v31  ;;  %7020 = vst [vmem:[#allocation28_spill] sm:$0xff] %v5934_v37  ;;  %v2024_v58 = vstv %s5868_s7  ;;  %v1263_v42 = vadd.f32 %v7021_v34, %v1181_v12  ;;  %v7025_v31 = vld [vmem:[#allocation58_spill] sm:$0xff]  ;;  %v7032_v12 = vld [vmem:[#allocation57_spill] sm:$0xff]  ;;  %s6157_s7 = sld [smem:[#allocation2 + $0x7b]] }
 0x236   : > { %v5928_v40 = vadd.f32 %v7019_v44, %v652_v41  ;;  %v826_v50 = vadd.f32 %v7022_v39, %v5842_v20  ;;  %v413_v41 = vadd.f32 %v7023_v25, %v5530_v35  ;;  %v5947_v51 = vsel %vm2148_vm3, %v2149_v61, %v6743_v59  ;;  %v7029_v39 = vld [vmem:[#allocation56_spill] sm:$0xff]  ;;  %v7035_v37 = vld [vmem:[#allocation78_spill] sm:$0xff] }
 0x237   : > { %7024 = vst [vmem:[#allocation29_spill] sm:$0xff] %v5947_v51  ;;  %v911_v44 = vadd.f32 %v7025_v31, %v809_v46  ;;  %v2162_v6 = vrot.slane %v2158_v55, 4  ;;  %v7026_v20 = vrot.slane %v5688_v29, 4  ;;  %v2569_v35 = vsel %vm2148_vm3, %v2567_v22, %v6744_v38  ;;  %v7030_v22 = vld [vmem:[#allocation65_spill] sm:$0xff] }
 0x238   : > { %2485 = vrot.lane.b32.xlu1 %v2484_v1, %s3786_s8  ;;  %v5962_v61 = vpop.permute.xlu1 %2349  ;;  %v7028_v1 = vrot.slane %v5893_v11, 3  ;;  %v2025_v55 = vmul.f32 %v5572_v2, %v2024_v58  ;;  %v5969_v34 = vmul.f32 %v5576_v26, %v2024_v58  ;;  %v2579_v29 = vstv %s5895_s11  ;;  %v5977_v38 = vpop.permute.xlu0 %2232  ;;  %s6165_s11 = sld [smem:[#allocation2 + $0x93]] }
 0x239   : > { %2368 = vrot.lane.b32.xlu0 %v7026_v20, %s6915_s28  ;;  %7027 = vst [vmem:[#allocation32_spill] sm:$0xff] %v5962_v61  ;;  %v1381_v25 = vadd.f32 %v7029_v39, %v1279_v7  ;;  %v1013_v31 = vadd.f32 %v7030_v22, %v911_v44  ;;  %v1688_v20 = vrot.slane %v1684_v13, 3  ;;  %v6746_v59 = vrot.slane %v5932_v9, 3  ;;  %7031 = vst [vmem:[#allocation36_spill] sm:$0xff] %v5977_v38  ;;  %v7041_v22 = vld [vmem:[#allocation63_spill] sm:$0xff]  ;;  %v7051_v38 = vld [vmem:[#allocation68_spill] sm:$0xff] }
 0x23a   : > { %v2014_v46 = vsel %vm1661_vm2, %v2012_v32, %v7028_v1  ;;  %v1466_v61 = vadd.f32 %v7032_v12, %v1364_v15  ;;  %v7033_v32 = vld [vmem:[#allocation59_spill] sm:$0xff]  ;;  %v427_v58 = vadd.f32 %v7034_v28, %v5540_v63  ;;  %v1696_v51 = vstv %s5911_s23  ;;  %v7039_v63 = vld [vmem:[#allocation61_spill] sm:$0xff]  ;;  %v7040_v12 = vld [vmem:[#allocation62_spill] sm:$0xff]  ;;  %s6226_s23 = sld [smem:[#allocation2 + $0x7c]] }
 0x23b   : > { %v810_v1 = vadd.f32 %v7033_v32, %v720_v36  ;;  %v1115_v7 = vadd.f32 %v7035_v37, %v1013_v31  ;;  %v7036_v44 = vrot.slane %v5914_v16, 4  ;;  %v2580_v15 = vmul.f32 %v5572_v2, %v2579_v29  ;;  %v7043_v32 = vld [vmem:[#allocation64_spill] sm:$0xff] }
 0x23c   : > { %2570 = vrot.lane.b32.xlu1 %v2569_v35, %s3787_s27  ;;  %v5994_v36 = vmul.f32 %v5576_v26, %v2579_v29  ;;  %v5997_v28 = vadd.f32 %v7039_v63, %v1194_v27  ;;  %v928_v35 = vadd.f32 %v7040_v12, %v826_v50  ;;  %v6000_v37 = vpop.permute.xlu1 %1879  ;;  %v2029_v39 = vrot.slane %v2025_v55, 3  ;;  %v6012_v27 = vpop.permute.xlu0 %1324  ;;  %v7044_v63 = vld [vmem:[#allocation66_spill] sm:$0xff] }
 0x23d   : > { %v5989_v13 = vsel %vm2148_vm3, %v2162_v6, %v7036_v44  ;;  %2015 = vrot.lane.b32.xlu0 %v2014_v46, %s3786_s8  ;;  %v6004_v31 = vadd.f32 %v7041_v22, %v1381_v25  ;;  %v6009_v46 = vsel %vm1661_vm2, %v1688_v20, %v6746_v59  ;;  %v1697_v29 = vmul.f32 %v5572_v2, %v1696_v51 }
 0x23e   : > { %7037 = vst [vmem:[#allocation30_spill] sm:$0xff] %v5989_v13  ;;  %7038 = vst [vmem:[#allocation31_spill] sm:$0xff] %v5994_v36  ;;  %v2109_v50 = vstv %s5937_s14  ;;  %v1365_v44 = vadd.f32 %v7043_v32, %v1263_v42  ;;  %v6017_v55 = vadd.f32 %v7044_v63, %v413_v41  ;;  %v6020_v12 = vmul.f32 %v5576_v26, %v1696_v51  ;;  %s6228_s14 = sld [smem:[#allocation2 + $0x94]] }
 0x23f   : > { %7042 = vst [vmem:[#allocation37_spill] sm:$0xff] %v6012_v27  ;;  %v1222_v25 = vstv %s5950_s10  ;;  %v7045_v22 = vrot.slane %v5748_v19, 3  ;;  %v1206_v20 = vadd.f32 %v5660_v56, %v1115_v7  ;;  %v7046_v59 = vrot.slane %v5720_v62, 3  ;;  %v7049_v7 = vld [vmem:[#allocation96_spill] sm:$0xff]  ;;  %s6304_s10 = sld [smem:[#allocation2 + $0x95]] }
 0x240   : > { %v1235_v6 = vstv %s5960_s13  ;;  %v2584_v16 = vrot.slane %v2580_v15, 4  ;;  %v6032_v41 = vpop.permute.xlu1 %1162  ;;  %v7048_v51 = vrot.slane %v5969_v34, 3  ;;  %v2110_v63 = vmul.f32 %v5572_v2, %v2109_v50  ;;  %v6047_v42 = vpop.permute.xlu0 %2434  ;;  %s3294_s13 = sld [smem:[#allocation2 + $0x78]] }
 0x241   : > { %1915 = vrot.lane.b32.xlu1 %v7045_v22, %s6915_s28  ;;  %1830 = vrot.lane.b32.xlu0 %v7046_v59, %s3785_s15  ;;  %7047 = vst [vmem:[#allocation33_spill] sm:$0xff] %v6032_v41  ;;  %v6039_v19 = vmul.f32 %v5576_v26, %v2109_v50  ;;  %v2126_v56 = vstv %s5972_s12  ;;  %v1296_v22 = vadd.f32 %v7049_v7, %v1206_v20  ;;  %v1701_v62 = vrot.slane %v1697_v29, 3  ;;  %v7054_v20 = vld [vmem:[#allocation103_spill] sm:$0xff]  ;;  %v7059_v41 = vld [vmem:[#allocation113_spill] sm:$0xff]  ;;  %s3295_s12 = sld [smem:[#allocation2 + $0x91]] }
 0x242   : > { %v2031_v32 = vsel %vm1661_vm2, %v2029_v39, %v7048_v51  ;;  %v1223_v59 = vmul.f32 %v5572_v2, %v1222_v25  ;;  %v6045_v15 = vmul.f32 %v5576_v26, %v1222_v25  ;;  %7050 = vst [vmem:[#allocation34_spill] sm:$0xff] %v6047_v42  ;;  %v1568_v39 = vadd.f32 %v7051_v38, %v1466_v61  ;;  %v7052_v51 = vld [vmem:[#allocation70_spill] sm:$0xff] }
 0x243   : > { %v511_v13 = vadd.f32 %v7052_v51, %v427_v58  ;;  %v7053_v53 = vrot.slane %v5752_v43, 4  ;;  %v1236_v29 = vmul.f32 %v5572_v2, %v1235_v6  ;;  %v1398_v7 = vadd.f32 %v7054_v20, %v1296_v22  ;;  %v7056_v58 = vld [vmem:[#allocation79_spill] sm:$0xff] }
 0x244   : > { %v7055_v25 = vrot.slane %v5994_v36, 4  ;;  %v2127_v38 = vmul.f32 %v5572_v2, %v2126_v56  ;;  %v6065_v61 = vmul.f32 %v5576_v26, %v2126_v56  ;;  %v6068_v50 = vpop.permute.xlu1 %1779  ;;  %v6071_v43 = vmul.f32 %v5576_v26, %v1235_v6  ;;  %v6077_v10 = vpop.permute.xlu0 %1341  ;;  %v7060_v56 = vld [vmem:[#allocation67_spill] sm:$0xff]  ;;  %v7062_v36 = vld [vmem:[#allocation89_spill] sm:$0xff] }
 0x245   : > { %2385 = vrot.lane.b32.xlu1 %v7053_v53, %s6915_s28  ;;  %2032 = vrot.lane.b32.xlu0 %v2031_v32, %s3786_s8  ;;  %v595_v51 = vadd.f32 %v7056_v58, %v511_v13  ;;  %7057 = vst [vmem:[#allocation40_spill] sm:$0xff] %v6068_v50  ;;  %v2114_v53 = vrot.slane %v2110_v63, 3  ;;  %v7058_v32 = vld [vmem:[#allocation71_spill] sm:$0xff]  ;;  %v1500_v27 = vadd.f32 %v7059_v41, %v1398_v7  ;;  %v7061_v58 = vld [vmem:[#allocation72_spill] sm:$0xff]  ;;  %v7063_v63 = vrot.slane %v6020_v12, 3  ;;  %v7066_v7 = vld [vmem:[#allocation81_spill] sm:$0xff] }
 0x246   : > { %v2586_v42 = vsel %vm2148_vm3, %v2584_v16, %v7055_v25  ;;  %v1030_v20 = vadd.f32 %v7058_v32, %v928_v35  ;;  %v1227_v16 = vrot.slane %v1223_v59, 2  ;;  %v1228_v25 = vrot.slane %v6045_v15, 2  ;;  %v7064_v35 = vld [vmem:[#allocation84_spill] sm:$0xff] }
 0x247   : > { %v414_v13 = vadd.f32 %v7060_v56, %v5557_v60  ;;  %v912_v50 = vadd.f32 %v7061_v58, %v810_v1  ;;  %v679_v6 = vadd.f32 %v7062_v36, %v595_v51  ;;  %v6086_v22 = vsel %vm1661_vm2, %v1701_v62, %v7063_v63  ;;  %v7069_v58 = vld [vmem:[#allocation73_spill] sm:$0xff] }
 0x248   : > { %v1132_v41 = vadd.f32 %v7064_v35, %v1030_v20  ;;  %v1602_v59 = vadd.f32 %v5542_v57, %v1500_v27  ;;  %v7065_v60 = vrot.slane %v5794_v52, 4  ;;  %v2131_v1 = vrot.slane %v2127_v38, 3  ;;  %v7068_v57 = vld [vmem:[#allocation69_spill] sm:$0xff]  ;;  %v7070_v35 = vld [vmem:[#allocation74_spill] sm:$0xff] }
 0x249   : > { %2587 = vrot.lane.b32.xlu1 %v2586_v42, %s3787_s27  ;;  %v2132_v36 = vrot.slane %v6065_v61, 3  ;;  %v1014_v51 = vadd.f32 %v7066_v7, %v912_v50  ;;  %v1240_v62 = vrot.slane %v1236_v29, 2  ;;  %v1241_v32 = vrot.slane %v6071_v43, 2  ;;  %v6099_v42 = vpop.permute.xlu1 %2249  ;;  %v6114_v50 = vpop.permute.xlu0 %1896 }
 0x24a   : > { %2470 = vrot.lane.b32.xlu0 %v7065_v60, %s3786_s8  ;;  %v7067_v56 = vrot.slane %v6039_v19, 3  ;;  %v827_v27 = vadd.f32 %v7068_v57, %v5928_v40  ;;  %v6107_v52 = vadd.f32 %v5605_v24, %v1568_v39  ;;  %v6112_v38 = vsel %vm1174_vm1, %v1227_v16, %v1228_v25  ;;  %v7073_v39 = vld [vmem:[#allocation75_spill] sm:$0xff] }
 0x24b   : > { %v2290_v29 = vstv %s6049_s26  ;;  %v1467_v63 = vadd.f32 %v7069_v58, %v1365_v44  ;;  %v6120_v60 = vadd.f32 %v7070_v35, %v5997_v28  ;;  %v758_v40 = vadd.f32 %v5770_v30, %v679_v6  ;;  %v7074_v44 = vld [vmem:[#allocation76_spill] sm:$0xff] }
 0x24c   : > { %v2116_v20 = vsel %vm1661_vm2, %v2114_v53, %v7067_v56  ;;  %v7071_v53 = vld [vmem:[#allocation91_spill] sm:$0xff]  ;;  %v7072_v24 = vrot.slane %v5829_v48, 3  ;;  %v581_v16 = vadd.f32 %v7073_v39, %v6017_v55  ;;  %v1219_v56 = vadd.f32 %v5736_v18, %v1132_v41  ;;  %v7075_v6 = vld [vmem:[#allocation108_spill] sm:$0xff]  ;;  %v7076_v41 = vld [vmem:[#allocation77_spill] sm:$0xff] }
 0x24d   : > { %v1116_v7 = vadd.f32 %v7071_v53, %v1014_v51  ;;  %v1693_v57 = vadd.f32 %v6009_v46, %v1602_v59  ;;  %v2133_v28 = vsel %vm1661_vm2, %v2131_v1, %v2132_v36  ;;  %v6137_v30 = vadd.f32 %v7074_v44, %v6004_v31  ;;  %v6143_v18 = vpop.permute.xlu1 %2451  ;;  %v7077_v1 = vld [vmem:[#allocation99_spill] sm:$0xff] }
 0x24e   : > { %1932 = vrot.lane.b32.xlu1 %v7072_v24, %s6915_s28  ;;  %2117 = vrot.lane.b32.xlu0 %v2116_v20, %s3787_s27  ;;  %v860_v48 = vadd.f32 %v7075_v6, %v758_v40  ;;  %v1242_v55 = vsel %vm1174_vm1, %v1240_v62, %v1241_v32  ;;  %v2291_v46 = vmul.f32 %v5572_v2, %v2290_v29  ;;  %v6152_v20 = vpop.permute.xlu0 %2334  ;;  %v7078_v62 = vld [vmem:[#allocation80_spill] sm:$0xff]  ;;  %v7079_v53 = vrot.slane %v5588_v47, 2  ;;  %v7080_v24 = vld [vmem:[#allocation119_spill] sm:$0xff] }
 0x24f   : > { %v428_v59 = vadd.f32 %v7076_v41, %v5615_v49  ;;  %v1313_v51 = vadd.f32 %v7077_v1, %v1219_v56  ;;  %v1783_v31 = vadd.f32 %v5865_v5, %v1693_v57  ;;  %v6155_v58 = vmul.f32 %v5576_v26, %v2290_v29  ;;  %v7081_v5 = vld [vmem:[#allocation82_spill] sm:$0xff]  ;;  %v7082_v57 = vld [vmem:[#allocation85_spill] sm:$0xff]  ;;  %v7085_v47 = vld [vmem:[#allocation87_spill] sm:$0xff] }
 0x250   : > { %v498_v35 = vadd.f32 %v7078_v62, %v414_v13  ;;  %v1207_v40 = vadd.f32 %v7079_v53, %v1116_v7  ;;  %v962_v39 = vadd.f32 %v7080_v24, %v860_v48  ;;  %v2307_v49 = vstv %s6089_s24  ;;  %v7083_v29 = vld [vmem:[#allocation110_spill] sm:$0xff]  ;;  %v7086_v48 = vld [vmem:[#allocation107_spill] sm:$0xff]  ;;  %v7087_v24 = vld [vmem:[#allocation120_spill] sm:$0xff] }
 0x251   : > { %v929_v56 = vadd.f32 %v7081_v5, %v827_v27  ;;  %v665_v44 = vadd.f32 %v7082_v57, %v581_v16  ;;  %v1415_v6 = vadd.f32 %v7083_v29, %v1313_v51  ;;  %v1885_v41 = vadd.f32 %v6000_v37, %v1783_v31  ;;  %v1982_v62 = vpop.permute.xlu1 %1981  ;;  %v7088_v51 = vld [vmem:[#allocation90_spill] sm:$0xff] }
 0x252   : > { %2134 = vrot.lane.b32.xlu1 %v2133_v28, %s3787_s27  ;;  %v7084_v13 = vrot.slane %v5893_v11, 3  ;;  %v512_v7 = vadd.f32 %v7085_v47, %v428_v59  ;;  %v1297_v1 = vadd.f32 %v7086_v48, %v1207_v40  ;;  %v1064_v28 = vadd.f32 %v5566_v17, %v962_v39  ;;  %v6180_v16 = vpop.permute.xlu0 %1426  ;;  %v7089_v59 = vld [vmem:[#allocation122_spill] sm:$0xff] }
 0x253   : > { %v2295_v53 = vrot.slane %v2291_v46, 4  ;;  %v1517_v27 = vadd.f32 %v7087_v24, %v1415_v6  ;;  %v6178_v5 = vadd.f32 %v1982_v62, %v1885_v41  ;;  %v2296_v37 = vrot.slane %v6155_v58, 4  ;;  %v7091_v39 = vld [vmem:[#allocation86_spill] sm:$0xff]  ;;  %v7092_v6 = vld [vmem:[#allocation92_spill] sm:$0xff] }
 0x254   : > { %2017 = vrot.lane.b32.xlu0 %v7084_v13, %s3786_s8  ;;  %v2308_v11 = vmul.f32 %v5572_v2, %v2307_v49  ;;  %v582_v31 = vadd.f32 %v7088_v51, %v498_v35  ;;  %v1399_v57 = vadd.f32 %v7089_v59, %v1297_v1  ;;  %v1166_v40 = vadd.f32 %v5754_v3, %v1064_v28  ;;  %v7094_v3 = vld [vmem:[#allocation97_spill] sm:$0xff]  ;;  %v7095_v48 = vld [vmem:[#allocation98_spill] sm:$0xff]  ;;  %v7096_v62 = vld [vmem:[#allocation104_spill] sm:$0xff] }
 0x255   : > { %v7090_v17 = vrot.slane %v5883_v0, 4  ;;  %v6191_v46 = vmul.f32 %v5576_v26, %v2307_v49  ;;  %v1569_v29 = vadd.f32 %v7091_v39, %v1467_v63  ;;  %v1031_v41 = vadd.f32 %v7092_v6, %v929_v56  ;;  %v6203_v28 = vpop.permute.xlu1 %1326  ;;  %v7124_v58 = vld [vmem:[#allocation20_spill] sm:$0xff] }
 0x256   : > { %v745_v13 = vadd.f32 %v5741_v45, %v665_v44  ;;  %v1619_v35 = vadd.f32 %v5666_v23, %v1517_v27  ;;  %v7093_v47 = vrot.slane %v5852_v8, 4  ;;  %v666_v0 = vadd.f32 %v7094_v3, %v582_v31  ;;  %v6207_v24 = vpop.permute.xlu0 %2536  ;;  %v7098_v31 = vld [vmem:[#allocation105_spill] sm:$0xff] }
 0x257   : > { %2572 = vrot.lane.b32.xlu1 %v7090_v17, %s3787_s27  ;;  %v596_v1 = vadd.f32 %v7095_v48, %v512_v7  ;;  %v1501_v49 = vadd.f32 %v5610_v54, %v1399_v57  ;;  %v2392_v63 = vstv %s6146_s30  ;;  %v2297_v23 = vsel %vm2148_vm3, %v2295_v53, %v2296_v37  ;;  %v7099_v57 = vld [vmem:[#allocation114_spill] sm:$0xff]  ;;  %s3473_s30 = smul.u32 640, %s3846_s22  ;;  %s3792_s22 = smov [#allocation12]  }
 0x258   : > { %2487 = vrot.lane.b32.xlu0 %v7093_v47, %s3786_s8  ;;  %v843_v56 = vadd.f32 %v7096_v62, %v745_v13  ;;  %v2312_v45 = vrot.slane %v2308_v11, 4  ;;  %v2494_v8 = vstv %s6157_s7  ;;  %v1245_v27 = vadd.f32 %v1242_v55, %v1166_v40 }
 0x259   : > { %v1603_v44 = vadd.f32 %v5788_v33, %v1501_v49  ;;  %v7097_v7 = vrot.slane %v6039_v19, 3  ;;  %v2313_v54 = vrot.slane %v6191_v46, 4  ;;  %v2409_v51 = vstv %s6165_s11  ;;  %v6231_v55 = vpop.permute.xlu1 %1796 }
 0x25a   : > { %v680_v59 = vadd.f32 %v7098_v31, %v596_v1  ;;  %v945_v17 = vadd.f32 %v7099_v57, %v843_v56  ;;  %v1706_v39 = vadd.f32 %v6086_v22, %v1619_v35  ;;  %v7100_v53 = vrot.slane %v5969_v34, 3  ;;  %v7101_v34 = vld [vmem:[#allocation126_spill] sm:$0xff]  ;;  %v1444_v35 = vpop.permute.xlu0 %1443 }
 0x25b   : > { %2119 = vrot.lane.b32.xlu1 %v7097_v7, %s3787_s27  ;;  %v2393_v33 = vmul.f32 %v5572_v2, %v2392_v63  ;;  %v1347_v19 = vadd.f32 %v6077_v10, %v1245_v27  ;;  %v6234_v11 = vmul.f32 %v5576_v26, %v2392_v63  ;;  %v2495_v40 = vmul.f32 %v5572_v2, %v2494_v8  ;;  %v7102_v10 = vld [vmem:[#allocation100_spill] sm:$0xff] }
 0x25c   : > { %2034 = vrot.lane.b32.xlu0 %v7100_v53, %s3786_s8  ;;  %v6238_v22 = vmul.f32 %v5576_v26, %v2494_v8  ;;  %v1047_v6 = vadd.f32 %v7101_v34, %v945_v17  ;;  %v1800_v13 = vadd.f32 %v5923_v14, %v1706_v39  ;;  %v2410_v47 = vmul.f32 %v5572_v2, %v2409_v51  ;;  %v7109_v53 = vld [vmem:[#allocation133_spill] sm:$0xff] }
 0x25d   : > { %v6244_v3 = vmul.f32 %v5576_v26, %v2409_v51  ;;  %v1133_v48 = vadd.f32 %v7102_v10, %v1031_v41  ;;  %v7103_v1 = vrot.slane %v5932_v9, 3  ;;  %v6249_v63 = vadd.f32 %v1444_v35, %v1347_v19  ;;  %v7105_v41 = vld [vmem:[#allocation31_spill] sm:$0xff]  ;;  %v1999_v31 = vpop.permute.xlu1 %1998  ;;  %v7110_v19 = vld [vmem:[#allocation128_spill] sm:$0xff] }
 0x25e   : > { %v2314_v62 = vsel %vm2148_vm3, %v2312_v45, %v2313_v54  ;;  %v7104_v14 = vrot.slane %v5695_v21, 1  ;;  %v1149_v8 = vadd.f32 %v5685_v4, %v1047_v6  ;;  %v1902_v27 = vadd.f32 %v6114_v50, %v1800_v13  ;;  %v7108_v45 = vld [vmem:[#allocation129_spill] sm:$0xff]  ;;  %v1882_v50 = vpop.permute.xlu0 %1881  ;;  %v7112_v13 = vld [vmem:[#allocation136_spill] sm:$0xff] }
 0x25f   : > { %v1694_v49 = vadd.f32 %v7103_v1, %v1603_v44  ;;  %2298 = vrot.lane.b32.xlu1 %v2297_v23, %s3785_s15  ;;  %v7106_v7 = vrot.slane %v7105_v41, 4  ;;  %v2397_v9 = vrot.slane %v2393_v33, 4  ;;  %v7107_v44 = vld [vmem:[#allocation40_spill] sm:$0xff]  ;;  %v2398_v23 = vrot.slane %v6234_v11, 4  ;;  %v7114_v1 = vld [vmem:[#allocation19_spill] sm:$0xff] }
 0x260   : > { %v759_v56 = vadd.f32 %v7104_v14, %v680_v59  ;;  %v2499_v57 = vrot.slane %v2495_v40, 4  ;;  %v2500_v21 = vrot.slane %v6238_v22, 4  ;;  %v6266_v4 = vadd.f32 %v1999_v31, %v1902_v27  ;;  %v7120_v31 = vld [vmem:[#allocation37_spill] sm:$0xff] }
 0x261   : > { %2589 = vrot.lane.b32.xlu0 %v7106_v7, %s3787_s27  ;;  %v1784_v51 = vadd.f32 %v7107_v44, %v1694_v49  ;;  %v2414_v17 = vrot.slane %v2410_v47, 4  ;;  %v2415_v39 = vrot.slane %v6244_v3, 4  ;;  %v1680_v33 = vadd.f32 %v7109_v53, %v6137_v30  ;;  %v7117_v7 = vld [vmem:[#allocation135_spill] sm:$0xff] }
 0x262   : > { %v861_v59 = vadd.f32 %v7108_v45, %v759_v56  ;;  %v7111_v34 = vrot.slane %v7110_v19, 3  ;;  %v7113_v35 = vrot.slane %v7112_v13, 1  ;;  %v1232_v14 = vadd.f32 %v6112_v38, %v1149_v8  ;;  %v7115_v56 = vld [vmem:[#allocation93_spill] sm:$0xff]  ;;  %v7119_v38 = vld [vmem:[#allocation26_spill] sm:$0xff] }
 0x263   : > { %v6275_v10 = vadd.f32 %v1882_v50, %v1784_v51  ;;  %2315 = vrot.lane.b32.xlu1 %v2314_v62, %s3785_s15  ;;  %v2596_v47 = vstv %s6226_s23  ;;  %v2511_v30 = vstv %s6228_s14  ;;  %v1766_v27 = vadd.f32 %v7115_v56, %v1680_v33  ;;  %v6289_v51 = vpop.permute.xlu1 %2436  ;;  %v2708_v19 = vld [vmem:[#allocation8 + $0x8] sm:$0xff]  ;;  %s6637_s23 = scalar_lea.hbm %s6686_s5, %s3473_s30  ;;  %s3021_s14 = scalar_lea.sflag [#allocation4], %s4040_s17 }
 0x264   : > { %v1668_v6 = vadd.f32 %v7111_v34, %v1569_v29  ;;  %v746_v40 = vadd.f32 %v7113_v35, %v666_v0  ;;  %v963_v49 = vadd.f32 %v7114_v1, %v861_v59  ;;  %v7116_v29 = vld [vmem:[#allocation115_spill] sm:$0xff]  ;;  %v7118_v0 = vrot.slane %v7117_v7, 2  ;;  %v7122_v34 = vld [vmem:[#allocation33_spill] sm:$0xff] }
 0x265   : > { %2136 = vrot.lane.b32.xlu0 %v2132_v36, %s3787_s27  ;;  %v2399_v62 = vsel %vm2148_vm3, %v2397_v9, %v2398_v23  ;;  %v1330_v61 = vadd.f32 %v7120_v31, %v1232_v14  ;;  %v6296_v36 = vpop.permute.xlu0 %2351  ;;  %v2501_v45 = vsel %vm2148_vm3, %v2499_v57, %v2500_v21  ;;  %v7121_v59 = vld [vmem:[#allocation131_spill] sm:$0xff]  ;;  %v2597_v9 = vmul.f32 %v5572_v2, %v2596_v47  ;;  %v2707_v57 = vld [vmem:[#allocation8] sm:$0xff] }
 0x266   : > { %v844_v41 = vadd.f32 %v7116_v29, %v746_v40  ;;  %v1220_v44 = vadd.f32 %v7118_v0, %v1133_v48  ;;  %v1065_v8 = vadd.f32 %v7119_v38, %v963_v49  ;;  %v2416_v48 = vsel %vm2148_vm3, %v2414_v17, %v2415_v39  ;;  %v7123_v40 = vld [vmem:[#allocation118_spill] sm:$0xff] }
 0x267   : > { %2300 = vrot.lane.b32.xlu1 %v2296_v37, %s3785_s15  ;;  %v6312_v53 = vmul.f32 %v5576_v26, %v2596_v47  ;;  %v2512_v33 = vmul.f32 %v5572_v2, %v2511_v30  ;;  %v1432_v17 = vadd.f32 %v6180_v16, %v1330_v61  ;;  %v3448_v35 = vpack.c.bf16 %v2708_v19, %v2707_v57  ;;  %v1529_v49 = vpop.permute.xlu1 %1528  ;;  %v7125_v2 = vld [vmem:[#allocation83_spill] sm:$0xff]  ;;  %v7126_v16 = vld [vmem:[#allocation88_spill] sm:$0xff]  ;;  %v7132_v19 = vld [vmem:[#allocation21_spill] sm:$0xff] }
 0x268   : > { %v946_v50 = vadd.f32 %v7121_v59, %v844_v41  ;;  %v1167_v13 = vadd.f32 %v7122_v34, %v1065_v8  ;;  %v1314_v1 = vadd.f32 %v7123_v40, %v1220_v44  ;;  %v6321_v14 = vmul.f32 %v5576_v26, %v2511_v30  ;;  %v7127_v41 = vld [vmem:[#allocation101_spill] sm:$0xff]  ;;  %v7128_v26 = vld [vmem:[#allocation102_spill] sm:$0xff]  ;;  %v7133_v40 = vld [vmem:[#allocation95_spill] sm:$0xff] }
 0x269   : > { %2400 = vrot.lane.b32.xlu0 %v2399_v62, %s6915_s28  ;;  %v3788_v47 = vmov 0.0|0.0   ;;  %v1484_v56 = vadd.f32 %v7125_v2, %v6120_v60  ;;  %v1749_v29 = vadd.f32 %v7126_v16, %v6107_v52  ;;  %v1868_v7 = vadd.f32 %v7127_v41, %v1766_v27  ;;  %v6332_v44 = vpop.permute.xlu0 %2553  ;;  %v7129_v62 = vld [vmem:[#allocation132_spill] sm:$0xff]  ;;  %v7130_v8 = vld [vmem:[#allocation25_spill] sm:$0xff]  ;;  %v2709_v60 = vld [vmem:[#allocation8 + $0x10] sm:$0xff] }
 0x26a   : > { %v1048_v37 = vadd.f32 %v7124_v58, %v946_v50  ;;  %3447 = vmatprep.subr.bf16.mxu0 %v3788_v47  ;;  %3460 = vmatprep.subr.bf16.mxu1 %v3788_v47  ;;  %v6330_v0 = vadd.f32 %v1529_v49, %v1432_v17  ;;  %v1750_v30 = vadd.f32 %v7128_v26, %v1668_v6  ;;  %v2710_v52 = vld [vmem:[#allocation8 + $0x18] sm:$0xff]  ;;  %v2601_v61 = vrot.slane %v2597_v9, 4  ;;  %v7134_v58 = vld [vmem:[#allocation112_spill] sm:$0xff]  ;;  %v7137_v41 = vld [vmem:[#allocation106_spill] sm:$0xff] }
 0x26b   : > { %3449 = vmatpush3.bf16.msra.mxu0 %v3448_v35  ;;  %v1416_v38 = vadd.f32 %v7129_v62, %v1314_v1  ;;  %2502 = vrot.lane.b32.xlu1 %v2501_v45, %s3786_s8  ;;  %v1246_v27 = vadd.f32 %v1241_v32, %v1167_v13  ;;  %v2602_v59 = vrot.slane %v6312_v53, 4  ;;  %v3451_v6 = vpack.c.bf16 %v2710_v52, %v2709_v60  ;;  %v7131_v50 = vld [vmem:[#allocation111_spill] sm:$0xff]  ;;  %v1344_v17 = vpop.permute.xlu1 %1343  ;;  %v7136_v49 = vld [vmem:[#allocation28_spill] sm:$0xff]  ;;  %v7140_v52 = vld [vmem:[#allocation117_spill] sm:$0xff] }
 0x26c   : > { %v1150_v31 = vadd.f32 %v7130_v8, %v1048_v37  ;;  %3450 = vmatprep.subr.bf16.mxu0 %v3788_v47  ;;  %v1970_v57 = vadd.f32 %v7131_v50, %v1868_v7  ;;  %v2516_v45 = vrot.slane %v2512_v33, 4  ;;  %v2517_v35 = vrot.slane %v6321_v14, 4  ;;  %v7135_v9 = vld [vmem:[#allocation127_spill] sm:$0xff]  ;;  %v2711_v16 = vld [vmem:[#allocation8 + $0x20] sm:$0xff] }
 0x26d   : > { %2417 = vrot.lane.b32.xlu0 %v2416_v48, %s6915_s28  ;;  %v1518_v34 = vadd.f32 %v7132_v19, %v1416_v38  ;;  %v1851_v1 = vadd.f32 %v7133_v40, %v1749_v29  ;;  %v1852_v37 = vadd.f32 %v7134_v58, %v1750_v30  ;;  %v6348_v48 = vadd.f32 %v1344_v17, %v1246_v27  ;;  %v6350_v43 = vpop.permute.xlu0 %2083  ;;  %v2712_v29 = vld [vmem:[#allocation8 + $0x28] sm:$0xff]  ;;  %v7138_v26 = vld [vmem:[#allocation124_spill] sm:$0xff]  ;;  %v2714_v40 = vld [vmem:[#allocation8 + $0x38] sm:$0x7] }
 0x26e   : > { %v2613_v32 = vstv %s6304_s10  ;;  %v2072_v13 = vadd.f32 %v7135_v9, %v1970_v57  ;;  %v1233_v33 = vadd.f32 %v1228_v25, %v1150_v31  ;;  %v2603_v15 = vsel %vm2148_vm3, %v2601_v61, %v2602_v59  ;;  %v6374_v38 = vld [vmem:[%s4043_s16] sm:$0xff]  ;;  %v6378_v31 = vld [vmem:[%s4043_s16 + $0x8] sm:$0xff]  ;;  %s3264_s16 = sld [smem:[#allocation2 + $0x73]] }
 0x26f   : > { %3452 = vmatpush3.bf16.msra.mxu0 %v3451_v6  ;;  %v1620_v2 = vadd.f32 %v7136_v49, %v1518_v34  ;;  %2402 = vrot.lane.b32.xlu1 %v2398_v23, %s6915_s28  ;;  %v1953_v7 = vadd.f32 %v7137_v41, %v1851_v1  ;;  %v1954_v30 = vadd.f32 %v7138_v26, %v1852_v37  ;;  %v1546_v23 = vpop.permute.xlu1 %1545  ;;  %v7141_v61 = vld [vmem:[#allocation116_spill] sm:$0xff]  ;;  %v7142_v57 = vld [vmem:[#allocation30_spill] sm:$0xff]  ;;  %v7143_v34 = vrot.slane %v6020_v12, 3 }
 0x270   : > { %3453 = vmatprep.subr.bf16.mxu0 %v3788_v47  ;;  %v3454_v25 = vpack.c.bf16 %v2712_v29, %v2711_v16  ;;  %v1331_v11 = vadd.f32 %v6203_v28, %v1233_v33  ;;  %v2518_v62 = vsel %vm2148_vm3, %v2516_v45, %v2517_v35  ;;  %v2614_v8 = vmul.f32 %v6374_v38, %v2613_v32  ;;  %v7147_v33 = vld [vmem:[#allocation29_spill] sm:$0xff]  ;;  %v7148_v29 = vld [vmem:[#allocation23_spill] sm:$0xff] }
 0x271   : > { %2317 = vrot.lane.b32.xlu0 %v2313_v54, %s3785_s15  ;;  %v6381_v46 = vmul.f32 %v6378_v31, %v2613_v32  ;;  %v7139_v54 = vld [vmem:[#allocation94_spill] sm:$0xff]  ;;  %v2055_v27 = vadd.f32 %v7140_v52, %v1953_v7  ;;  %v2056_v28 = vadd.f32 %v7141_v61, %v1954_v30  ;;  %v6387_v6 = vadd.f32 %v1546_v23, %v6249_v63  ;;  %v1429_v50 = vpop.permute.xlu0 %1428  ;;  %v7144_v63 = vld [vmem:[#allocation123_spill] sm:$0xff]  ;;  %v7155_v61 = vld [vmem:[#allocation24_spill] sm:$0xff] }
 0x272   : > { %v1586_v60 = vadd.f32 %v7139_v54, %v1484_v56  ;;  %v2167_v19 = vadd.f32 %v7142_v57, %v2072_v13  ;;  %v1707_v17 = vadd.f32 %v7143_v34, %v1620_v2  ;;  %v1433_v45 = vadd.f32 %v1429_v50, %v1331_v11  ;;  %v2713_v56 = vld [vmem:[#allocation8 + $0x30] sm:$0xff]  ;;  %v7151_v11 = vld [vmem:[#allocation109_spill] sm:$0xff] }
 0x273   : > { %3455 = vmatpush3.bf16.msra.mxu0 %v3454_v25  ;;  %2604 = vrot.lane.b32.xlu1 %v2603_v15, %s3787_s27  ;;  %v3457_v1 = vpack.c.bf16 %v2714_v40, %v2713_v56  ;;  %v1984_v32 = vpop.permute.xlu1 %1983  ;;  %v2618_v9 = vrot.slane %v2614_v8, 4  ;;  %v2619_v12 = vrot.slane %v6381_v46, 4  ;;  %v7145_v13 = vld [vmem:[#allocation130_spill] sm:$0xff]  ;;  %v2154_v16 = vadd.f32 %v7147_v33, %v2055_v27  ;;  %v7153_v46 = vld [vmem:[#allocation36_spill] sm:$0xff] }
 0x274   : > { %3456 = vmatprep.subr.bf16.mxu0 %v3788_v47  ;;  %v2253_v58 = vadd.f32 %v7144_v63, %v2167_v19  ;;  %v1801_v37 = vadd.f32 %v6231_v55, %v1707_v17  ;;  %v7146_v49 = vrot.slane %v7145_v13, 3  ;;  %v7149_v41 = vrot.slane %v7148_v29, 4  ;;  %v7150_v55 = vld [vmem:[#allocation32_spill] sm:$0xff]  ;;  %v7157_v34 = vld [vmem:[#allocation34_spill] sm:$0xff] }
 0x275   : > { %2519 = vrot.lane.b32.xlu0 %v2518_v62, %s3786_s8  ;;  %v6404_v26 = vadd.f32 %v1984_v32, %v6275_v10  ;;  %v1899_v30 = vpop.permute.xlu0 %1898  ;;  %v7152_v62 = vld [vmem:[#allocation121_spill] sm:$0xff]  ;;  %v3791_v10 = vmov 0.0   ;;  %v2620_v22 = vsel %vm2148_vm3, %v2618_v9, %v2619_v12 }
 0x276   : > { %v1681_v2 = vadd.f32 %v7146_v49, %v1586_v60  ;;  %v2155_v7 = vadd.f32 %v7149_v41, %v2056_v28  ;;  %v2355_v15 = vadd.f32 %v7150_v55, %v2253_v58  ;;  %v1903_v25 = vadd.f32 %v1899_v30, %v1801_v37  ;;  %3387 = vmatprep.mubr.msk.f32.mxu0 %vm3790_vm7, %v3791_v10  ;;  %v7159_v37 = vld [vmem:[#allocation27_spill] sm:$0xff] }
 0x277   : > { %3459 = vmatpush3.bf16.msk.msra.mxu0 %vm3458_vm6, %v3457_v1  ;;  %2504 = vrot.lane.b32.xlu1 %v2500_v21, %s3786_s8  ;;  %v2236_v8 = vadd.f32 %v7152_v62, %v2154_v16  ;;  %v2454_v52 = vpop.permute.xlu1 %2453  ;;  %v7154_v21 = vld [vmem:[#allocation125_spill] sm:$0xff]  ;;  %v7158_v1 = vld [vmem:[#allocation22_spill] sm:$0xff]  ;;  %v7160_v32 = vrot.slane %v7159_v37, 4 }
 0x278   : > { %v1767_v23 = vadd.f32 %v7151_v11, %v1681_v2  ;;  %v2237_v54 = vadd.f32 %v7153_v46, %v2155_v7  ;;  %v2457_v60 = vadd.f32 %v6143_v18, %v2355_v15  ;;  %3432 = vmatprep.mubr.msk.f32.mxu1 %vm3790_vm7, %v3791_v10  ;;  %v7156_v18 = vld [vmem:[#allocation134_spill] sm:$0xff] }
 0x279   : > { %2419 = vrot.lane.b32.xlu0 %v2415_v39, %s6915_s28  ;;  %v2338_v3 = vadd.f32 %v7155_v61, %v2236_v8  ;;  %v2101_v39 = vpop.permute.xlu0 %2100  ;;  %s3293_s28 = sld [smem:[#allocation2 + $0x5f]] }
 0x27a   : > { %v1869_v27 = vadd.f32 %v7154_v21, %v1767_v23  ;;  %v2339_v28 = vadd.f32 %v6152_v20, %v2237_v54  ;;  %v2559_v50 = vadd.f32 %v6332_v44, %v2457_v60  ;;  %v6427_v57 = vadd.f32 %v2101_v39, %v6266_v4 }
 0x27b   : > { %2521 = vrot.lane.b32.xlu1 %v2517_v35, %s3786_s8  ;;  %v2440_v17 = vadd.f32 %v7157_v34, %v2338_v3  ;;  %v1631_v40 = vpop.permute.xlu1 %1630  ;;  %s3265_s8 = sld [smem:[#allocation2 + $0x8c]] }
 0x27c   : > { %v1971_v19 = vadd.f32 %v7156_v18, %v1869_v27  ;;  %v2441_v56 = vadd.f32 %v6289_v51, %v2339_v28  ;;  %v1636_v4 = vadd.f32 %v1631_v40, %v6330_v0  ;;  %v2631_v14 = vrot.slane %v2559_v50, 4 }
 0x27d   : > { %2621 = vrot.lane.b32.xlu0 %v2620_v22, %s3787_s27  ;;  %v6438_v44 = vadd.f32 %v6207_v24, %v2440_v17  ;;  %v2539_v63 = vpop.permute.xlu0 %2538 }
 0x27e   : > { %v2073_v20 = vadd.f32 %v7158_v1, %v1971_v19  ;;  %v2543_v35 = vadd.f32 %v2539_v63, %v2441_v56 }
 0x27f   : > { %2623 = vrot.lane.b32.xlu1 %v2619_v12, %s3787_s27  ;;  %v1531_v58 = vpop.permute.xlu1 %1530  ;;  %v2653_v9 = vmax.f32 %v6438_v44, 0.0 }
 0x280   : > { %v6446_v51 = vsel %vm2148_vm3, %v2543_v35, %v2631_v14  ;;  %v2168_v24 = vadd.f32 %v7160_v32, %v2073_v20  ;;  %v1535_v13 = vadd.f32 %v1531_v58, %v1433_v45  ;;  %v1709_v45 = vstv %s3264_s16  ;;  %s3697_s16 = sshll.u32 %s3792_s22, 4  ;;  %s3698_s16 = int_to_ptr.vmem [resolvable:$false] %s3697_s16 }
 0x281   : > { %2606 = vrot.lane.b32.xlu0 %v2602_v59, %s3787_s27  ;;  %v2654_v0 = vmax.f32 %v6446_v51, 0.0  ;;  %v1446_v49 = vpop.permute.xlu0 %1445  ;;  %v1710_v41 = vmul.f32 %v6374_v38, %v1709_v45  ;;  %v6466_v7 = vmul.f32 %v6378_v31, %v1709_v45  ;;  %v1722_v46 = vstv %s3265_s8  ;;  %s3292_s27 = sld [smem:[#allocation2 + $0x46]]  ;;  %s3699_s8 = scalar_lea.vmem %s3698_s16, 1280 }
 0x282   : > { %v1450_v2 = vadd.f32 %v1446_v49, %v6348_v48  ;;  %v2254_v12 = vadd.f32 %v6099_v42, %v2168_v24  ;;  %v1723_v22 = vmul.f32 %v6374_v38, %v1722_v46  ;;  %v6485_v21 = vmul.f32 %v6378_v31, %v1722_v46 }
 0x283   : > { %2673 = vrot.lane.b32.xlu1 %v2654_v0, %s3785_s15  ;;  %v2001_v53 = vpop.permute.xlu1 %2000  ;;  %v2089_v49 = vadd.f32 %v6350_v43, %v6178_v5 }
 0x284   : > { %v2356_v59 = vadd.f32 %v6296_v36, %v2254_v12  ;;  %v6461_v33 = vadd.f32 %v2001_v53, %v1903_v25  ;;  %v1714_v36 = vrot.slane %v1710_v41, 3  ;;  %v1715_v25 = vrot.slane %v6466_v7, 3 }
 0x285   : > { %2671 = vrot.lane.b32.xlu0 %v2653_v9, %s3785_s15  ;;  %v1648_v16 = vpop.permute.xlu0 %1647  ;;  %v1727_v50 = vrot.slane %v1723_v22, 3  ;;  %v1728_v18 = vrot.slane %v6485_v21, 3  ;;  %v2183_v41 = vstv %s3293_s28 }
 0x286   : > { %v1653_v29 = vadd.f32 %v1648_v16, %v6387_v6  ;;  %v2458_v48 = vadd.f32 %v2454_v52, %v2356_v59  ;;  %v1716_v60 = vsel %vm1661_vm2, %v1714_v36, %v1715_v25  ;;  %v2184_v5 = vmul.f32 %v6374_v38, %v2183_v41 }
 0x287   : > { %v2556_v42 = vpop.permute.xlu1 %2555  ;;  %v1719_v61 = vadd.f32 %v1716_v60, %v1636_v4  ;;  %v1729_v56 = vsel %vm1661_vm2, %v1727_v50, %v1728_v18  ;;  %v2170_v40 = vstv %s3292_s27  ;;  %v2185_v43 = vmul.f32 %v6378_v31, %v2183_v41 }
 0x288   : > { %v2560_v30 = vadd.f32 %v2556_v42, %v2458_v48  ;;  %v1732_v20 = vadd.f32 %v1729_v56, %v1653_v29  ;;  %v2171_v4 = vmul.f32 %v6374_v38, %v2170_v40 }
 0x289   : > { %v6468_v55 = vpop.permute.xlu0 %2085 }
 0x28a   : > { %v2632_v15 = vrot.slane %v2560_v30, 4  ;;  %v2175_v32 = vrot.slane %v2171_v4, 4 }
 0x28b   : > { %v1548_v11 = vpop.permute.xlu1 %1547 }
 0x28c   : > { %v6472_v23 = vsel %vm2148_vm3, %v2631_v14, %v2632_v15  ;;  %v1552_v6 = vadd.f32 %v1548_v11, %v1450_v2  ;;  %v2172_v14 = vmul.f32 %v6378_v31, %v2170_v40 }
 0x28d   : > { %v2265_v62 = vpop.permute.xlu0 %2264  ;;  %v2655_v8 = vmax.f32 %v6472_v23, 0.0 }
 0x28e   : > { %v2176_v24 = vrot.slane %v2172_v14, 4 }
 0x28f   : > { %v6475_v54 = vpop.permute.xlu1 %2102  ;;  %2675 = vrot.lane.b32.xlu0 %v2655_v8, %s3785_s15 }
 0x290   : > { %v2177_v12 = vsel %vm2148_vm3, %v2175_v32, %v2176_v24 }
 0x291   : > { %v1633_v52 = vpop.permute.xlu0 %1632  ;;  %v2180_v59 = vadd.f32 %v2177_v12, %v2089_v49 }
 0x292   : > { %v6487_v27 = vadd.f32 %v1633_v52, %v1535_v13  ;;  %v2189_v52 = vrot.slane %v2185_v43, 4 }
 0x293   : > { %v1812_v3 = vpop.permute.xlu1 %1811  ;;  %v2270_v45 = vadd.f32 %v2265_v62, %v2180_v59  ;;  %v2188_v62 = vrot.slane %v2184_v5, 4 }
 0x294   : > { %v6489_v39 = vadd.f32 %v1812_v3, %v1719_v61 }
 0x295   : > { %v2282_v28 = vpop.permute.xlu0 %2281  ;;  %v2190_v3 = vsel %vm2148_vm3, %v2188_v62, %v2189_v52 }
 0x297   : > { %v1650_v19 = vpop.permute.xlu1 %1649 }
 0x298   : > { %v6492_v34 = vadd.f32 %v1650_v19, %v1552_v6  ;;  %v2090_v19 = vadd.f32 %v6468_v55, %v6404_v26 }
 0x299   : > { %v2367_v17 = vpop.permute.xlu0 %2366 }
 0x29a   : > { %v2372_v48 = vadd.f32 %v2367_v17, %v2270_v45  ;;  %v2193_v17 = vadd.f32 %v2190_v3, %v6427_v57 }
 0x29b   : > { %v2267_v1 = vpop.permute.xlu1 %2266 }
 0x29c   : > { %v2287_v40 = vadd.f32 %v2282_v28, %v2193_v17 }
 0x29d   : > { %v1829_v63 = vpop.permute.xlu0 %1828 }
 0x29e   : > { %v6499_v35 = vadd.f32 %v1829_v63, %v1732_v20  ;;  %v2181_v63 = vadd.f32 %v2176_v24, %v2090_v19 }
 0x29f   : > { %v6501_v58 = vpop.permute.xlu1 %1913 }
 0x2a0   : > { %v2271_v32 = vadd.f32 %v2267_v1, %v2181_v63  ;;  %v1919_v19 = vadd.f32 %v6501_v58, %v6489_v39 }
 0x2a1   : > { %v2384_v37 = vpop.permute.xlu0 %2383 }
 0x2a2   : > { %v2389_v4 = vadd.f32 %v2384_v37, %v2287_v40 }
 0x2a3   : > { %v6503_v13 = vpop.permute.xlu1 %1813 }
 0x2a5   : > { %v2469_v2 = vpop.permute.xlu0 %2468 }
 0x2a6   : > { %v2474_v30 = vadd.f32 %v2469_v2, %v2372_v48  ;;  %v2107_v48 = vadd.f32 %v6475_v54, %v6461_v33  ;;  %v2196_v33 = vstv %s3294_s13 }
 0x2a7   : > { %v2284_v53 = vpop.permute.xlu1 %2283  ;;  %v2197_v62 = vmul.f32 %v6374_v38, %v2196_v33 }
 0x2a9   : > { %v6508_v16 = vpop.permute.xlu0 %1930  ;;  %v2201_v17 = vrot.slane %v2197_v62, 4 }
 0x2ab   : > { %v2486_v29 = vpop.permute.xlu1 %2485 }
 0x2ac   : > { %v2491_v49 = vadd.f32 %v2486_v29, %v2389_v4 }
 0x2ad   : > { %v2369_v42 = vpop.permute.xlu0 %2368 }
 0x2ae   : > { %v2373_v12 = vadd.f32 %v2369_v42, %v2271_v32  ;;  %v2209_v32 = vstv %s3295_s12 }
 0x2af   : > { %v2571_v15 = vpop.permute.xlu1 %2570  ;;  %v2210_v39 = vmul.f32 %v6374_v38, %v2209_v32  ;;  %v2211_v58 = vmul.f32 %v6378_v31, %v2209_v32 }
 0x2b0   : > { %v6510_v11 = vadd.f32 %v2571_v15, %v2474_v30  ;;  %v2194_v30 = vadd.f32 %v2189_v52, %v2107_v48  ;;  %v2198_v52 = vmul.f32 %v6378_v31, %v2196_v33 }
 0x2b1   : > { %v2016_v36 = vpop.permute.xlu0 %2015  ;;  %v2214_v38 = vrot.slane %v2210_v39, 4 }
 0x2b2   : > { %v2656_v6 = vmax.f32 %v6510_v11, 0.0  ;;  %v2288_v37 = vadd.f32 %v2284_v53, %v2194_v30  ;;  %v2021_v63 = vadd.f32 %v2016_v36, %v1919_v19  ;;  %v1733_v36 = vadd.f32 %v1728_v18, %v6492_v34 }
 0x2b3   : > { %v6515_v46 = vpop.permute.xlu1 %1915 }
 0x2b4   : > { %2677 = vrot.lane.b32.xlu1 %v2656_v6, %s3785_s15 }
 0x2b5   : > { %v6517_v60 = vpop.permute.xlu0 %1830 }
 0x2b7   : > { %v2386_v22 = vpop.permute.xlu1 %2385 }
 0x2b8   : > { %v2390_v15 = vadd.f32 %v2386_v22, %v2288_v37  ;;  %v2215_v37 = vrot.slane %v2211_v58, 4 }
 0x2b9   : > { %v6522_v61 = vpop.permute.xlu0 %2032 }
 0x2bb   : > { %v2588_v50 = vpop.permute.xlu1 %2587 }
 0x2bc   : > { %v2593_v59 = vadd.f32 %v2588_v50, %v2491_v49 }
 0x2bd   : > { %v2471_v56 = vpop.permute.xlu0 %2470 }
 0x2be   : > { %v2475_v41 = vadd.f32 %v2471_v56, %v2373_v12  ;;  %v2638_v57 = vrot.slane %v2593_v59, 4  ;;  %v2202_v56 = vrot.slane %v2198_v52, 4 }
 0x2c0   : > { %v6528_v20 = vpop.permute.xlu1 %1932  ;;  %v2203_v48 = vsel %vm2148_vm3, %v2201_v17, %v2202_v56 }
 0x2c1   : > { %v2118_v14 = vpop.permute.xlu0 %2117 }
 0x2c2   : > { %v2123_v12 = vadd.f32 %v2118_v14, %v2021_v63  ;;  %v1720_v14 = vadd.f32 %v1715_v25, %v6487_v27 }
 0x2c4   : > { %v2135_v2 = vpop.permute.xlu1 %2134  ;;  %v1818_v31 = vadd.f32 %v6503_v13, %v1720_v14 }
 0x2c6   : > { %v2018_v45 = vpop.permute.xlu0 %2017  ;;  %v1920_v7 = vadd.f32 %v6515_v46, %v1818_v31 }
 0x2c9   : > { %v2573_v26 = vpop.permute.xlu1 %2572 }
 0x2ca   : > { %v2577_v55 = vadd.f32 %v2573_v26, %v2475_v41  ;;  %v2488_v28 = vpop.permute.xlu0 %2487  ;;  %v2206_v26 = vadd.f32 %v2203_v48, %v2123_v12 }
 0x2cb   : > { %v2492_v54 = vadd.f32 %v2488_v28, %v2390_v15  ;;  %v1835_v28 = vadd.f32 %v6517_v60, %v1733_v36  ;;  %v2022_v60 = vadd.f32 %v2018_v45, %v1920_v7 }
 0x2cc   : > { %v6533_v24 = vsel %vm2148_vm3, %v2577_v55, %v2638_v57  ;;  %v1936_v55 = vadd.f32 %v6508_v16, %v6499_v35  ;;  %v2216_v35 = vsel %vm2148_vm3, %v2214_v38, %v2215_v37 }
 0x2cd   : > { %v2657_v1 = vmax.f32 %v6533_v24, 0.0  ;;  %v2120_v29 = vpop.permute.xlu1 %2119  ;;  %v1937_v18 = vadd.f32 %v6528_v20, %v1835_v28 }
 0x2ce   : > { %v2035_v42 = vpop.permute.xlu0 %2034  ;;  %v2038_v15 = vadd.f32 %v6522_v61, %v1936_v55  ;;  %v2124_v13 = vadd.f32 %v2120_v29, %v2022_v60 }
 0x2cf   : > { %2679 = vrot.lane.b32.xlu0 %v2657_v1, %s3785_s15  ;;  %v2039_v27 = vadd.f32 %v2035_v42, %v1937_v18 }
 0x2d0   : > { %v2140_v25 = vadd.f32 %v2135_v2, %v2038_v15  ;;  %v2207_v46 = vadd.f32 %v2202_v56, %v2124_v13 }
 0x2d1   : > { %v2299_v5 = vpop.permute.xlu1 %2298 }
 0x2d2   : > { %v2304_v30 = vadd.f32 %v2299_v5, %v2206_v26  ;;  %v2219_v52 = vadd.f32 %v2216_v35, %v2140_v25 }
 0x2d3   : > { %v2590_v43 = vpop.permute.xlu0 %2589 }
 0x2d4   : > { %v2594_v3 = vadd.f32 %v2590_v43, %v2492_v54 }
 0x2d5   : > { %v2316_v50 = vpop.permute.xlu1 %2315 }
 0x2d6   : > { %v2639_v53 = vrot.slane %v2594_v3, 4  ;;  %v2321_v3 = vadd.f32 %v2316_v50, %v2219_v52 }
 0x2d7   : > { %v2137_v22 = vpop.permute.xlu0 %2136 }
 0x2d8   : > { %v6544_v40 = vsel %vm2148_vm3, %v2638_v57, %v2639_v53  ;;  %v2141_v5 = vadd.f32 %v2137_v22, %v2039_v27 }
 0x2d9   : > { %v2658_v4 = vmax.f32 %v6544_v40, 0.0  ;;  %v2301_v49 = vpop.permute.xlu1 %2300 }
 0x2da   : > { %v2220_v20 = vadd.f32 %v2215_v37, %v2141_v5  ;;  %v2305_v17 = vadd.f32 %v2301_v49, %v2207_v46 }
 0x2db   : > { %v2401_v59 = vpop.permute.xlu0 %2400  ;;  %2681 = vrot.lane.b32.xlu1 %v2658_v4, %s3785_s15 }
 0x2dc   : > { %v2406_v34 = vadd.f32 %v2401_v59, %v2304_v30 }
 0x2dd   : > { %v2503_v41 = vpop.permute.xlu1 %2502 }
 0x2de   : > { %v2508_v16 = vadd.f32 %v2503_v41, %v2406_v34 }
 0x2df   : > { %v2418_v57 = vpop.permute.xlu0 %2417 }
 0x2e0   : > { %v2423_v2 = vadd.f32 %v2418_v57, %v2321_v3 }
 0x2e1   : > { %v2403_v21 = vpop.permute.xlu1 %2402 }
 0x2e2   : > { %v2407_v22 = vadd.f32 %v2403_v21, %v2305_v17 }
 0x2e3   : > { %v2318_v33 = vpop.permute.xlu0 %2317 }
 0x2e4   : > { %v2322_v42 = vadd.f32 %v2318_v33, %v2220_v20 }
 0x2e5   : > { %v2605_v54 = vpop.permute.xlu1 %2604 }
 0x2e6   : > { %v2610_v43 = vadd.f32 %v2605_v54, %v2508_v16 }
 0x2e7   : > { %v2520_v62 = vpop.permute.xlu0 %2519 }
 0x2e8   : > { %v2659_v61 = vmax.f32 %v2610_v43, 0.0  ;;  %v2525_v63 = vadd.f32 %v2520_v62, %v2423_v2 }
 0x2e9   : > { %v2505_v53 = vpop.permute.xlu1 %2504 }
 0x2ea   : > { %2683 = vrot.lane.b32.xlu0 %v2659_v61, %s3785_s15  ;;  %v2509_v29 = vadd.f32 %v2505_v53, %v2407_v22 }
 0x2eb   : > { %v2420_v19 = vpop.permute.xlu0 %2419 }
 0x2ec   : > { %v2424_v45 = vadd.f32 %v2420_v19, %v2322_v42 }
 0x2ed   : > { %v2522_v32 = vpop.permute.xlu1 %2521 }
 0x2ee   : > { %v2526_v48 = vadd.f32 %v2522_v32, %v2424_v45 }
 0x2ef   : > { %v2622_v12 = vpop.permute.xlu0 %2621 }
 0x2f0   : > { %v2627_v59 = vadd.f32 %v2622_v12, %v2525_v63 }
 0x2f1   : > { %v2624_v39 = vpop.permute.xlu1 %2623 }
 0x2f2   : > { %v2628_v58 = vadd.f32 %v2624_v39, %v2526_v48  ;;  %v2645_v41 = vrot.slane %v2627_v59, 4 }
 0x2f3   : > { %v2607_v50 = vpop.permute.xlu0 %2606 }
 0x2f4   : > { %v2611_v36 = vadd.f32 %v2607_v50, %v2509_v29  ;;  %v2646_v26 = vrot.slane %v2628_v58, 4 }
 0x2f5   : > { %v2674_v30 = vpop.permute.xlu1 %2673 }
 0x2f6   : > { %v2652_v14 = vsel %vm2148_vm3, %v2611_v36, %v2645_v41  ;;  %v2647_v56 = vsel %vm2148_vm3, %v2645_v41, %v2646_v26  ;;  %v2699_v38 = vmax.f32 %v2654_v0, %v2674_v30 }
 0x2f7   : > { %v2660_v57 = vmax.f32 %v2652_v14, 0.0  ;;  %v2672_v49 = vpop.permute.xlu0 %2671  ;;  %v2661_v55 = vmax.f32 %v2647_v56, 0.0 }
 0x2f8   : > { %v2698_v28 = vmax.f32 %v2653_v9, %v2672_v49 }
 0x2f9   : > { %2685 = vrot.lane.b32.xlu1 %v2660_v57, %s3785_s15  ;;  %2687 = vrot.lane.b32.xlu0 %v2661_v55, %s3785_s15  ;;  %s3472_s15 = smul.u32 40, %s4040_s17 }
 0x2fa   : > { %3388 = vmatmul.mubr.msk.f32.vlgmr.msra.gmra.mrb[0].mxu0 %vm2715_vm8, %v2698_v28 }
 0x2fb   : > { %3390 = vmatprep.mubr.msk.f32.mxu0 %vm3790_vm7, %v3791_v10  ;;  %s294_s26 = scalar_lea.vmem [#allocation12], %s3472_s15 }
 0x2fc   : > { %s3034_s24 = sshll.u32 %s294_s26, 4  ;;  %s6632_s24 = int_to_ptr.vmem [resolvable:$true] %s3034_s24 }
 0x2fd   : > { %s3693_s10 = scalar_lea.vmem %s6632_s24, 640  ;;  %p3700_p0 = scmp.lt.s32.totalorder %s6632_s24, %s3698_s16 }
 0x2fe   : > { %3391 = vmatmul.mubr.msk.f32.gmra.mrb[2].mxu0 %vm2715_vm8, %v2699_v38  ;;  %p3694_p7 = scmp.ne.s32.totalorder %s6632_s24, %s3693_s10  ;;  %p3701_p5 = scmp.lt.s32.totalorder %s3699_s8, %s3693_s10 }
 0x2ff   : > { %3393 = vmatprep.mubr.msk.f32.mxu0 %vm3790_vm7, %v3791_v10 }
 0x300   : > { %p3695_p9 = pnand %p3694_p7, %p3967_p6  ;;  %p3702_p1 = por %p3701_p5, %p3700_p0 }
 0x301   : > { %v2676_v44 = vpop.permute.xlu0 %2675 }
 0x302   : > { %v2700_v9 = vmax.f32 %v2655_v8, %v2676_v44  ;;  %v2901_v44 = vld [vmem:[#allocation9] sm:$0xff]  ;;  %p3696_p13 = pneg %p3695_p9 }
 0x304   : > { %3394 = vmatmul.mubr.msk.f32.gmra.mrb[4].mxu0 %vm2715_vm8, %v2700_v9  ;;  %v2903_v9 = vld [vmem:[#allocation9 + $0x10] sm:$0xff]  ;;  %p3703_p2 = pnand %p3702_p1, %p3696_p13 }
 0x305   : > { %3396 = vmatprep.mubr.msk.f32.mxu0 %vm3790_vm7, %v3791_v10 }
 0x326   : > { %v2678_v37 = vpop.permute.xlu1 %2677 }
 0x327   : > { %v2701_v31 = vmax.f32 %v2656_v6, %v2678_v37  ;;  %v2904_v37 = vld [vmem:[#allocation9 + $0x18] sm:$0xff] }
 0x329   : > { %3397 = vmatmul.mubr.msk.f32.gmra.mrb[6].mxu0 %vm2715_vm8, %v2701_v31  ;;  %v2905_v31 = vld [vmem:[#allocation9 + $0x20] sm:$0xff] }
 0x32a   : > { %3399 = vmatprep.mubr.msk.f32.mxu0 %vm3790_vm7, %v3791_v10 }
 0x341   : > { %v2680_v51 = vpop.permute.xlu0 %2679 }
 0x342   : > { %v2702_v0 = vmax.f32 %v2657_v1, %v2680_v51 }
 0x344   : > { %3400 = vmatmul.mubr.msk.f32.gmra.mrb[8].mxu0 %vm2715_vm8, %v2702_v0 }
 0x345   : > { %3402 = vmatprep.mubr.msk.f32.mxu0 %vm3790_vm7, %v3791_v10 }
 0x34d   : > { %v2682_v23 = vpop.permute.xlu1 %2681 }
 0x34e   : > { %v2703_v8 = vmax.f32 %v2658_v4, %v2682_v23 }
 0x350   : > { %3403 = vmatmul.mubr.msk.f32.gmra.mrb[10].mxu0 %vm2715_vm8, %v2703_v8 }
 0x351   : > { %3405 = vmatprep.mubr.msk.f32.mxu0 %vm3790_vm7, %v3791_v10 }
 0x35c   : > { %v2684_v11 = vpop.permute.xlu0 %2683 }
 0x35d   : > { %v2704_v6 = vmax.f32 %v2659_v61, %v2684_v11 }
 0x35f   : > { %3406 = vmatmul.mubr.msk.f32.gmra.mrb[12].mxu0 %vm2715_vm8, %v2704_v6 }
 0x360   : > { %3408 = vmatprep.mubr.msk.f32.mxu0 %vm3790_vm7, %v3791_v10 }
 0x36b   : > { %v2686_v24 = vpop.permute.xlu1 %2685  ;;  %v2688_v15 = vpop.permute.xlu0 %2687 }
 0x36c   : > { %v2705_v1 = vmax.f32 %v2660_v57, %v2686_v24  ;;  %v2706_v40 = vmax.f32 %v2661_v55, %v2688_v15 }
 0x36e   : > { %3409 = vmatmul.mubr.msk.f32.gmra.mrb[14].mxu0 %vm2715_vm8, %v2705_v1 }
 0x36f   : > { %3411 = vmatprep.mubr.msk.f32.mxu0 %vm3790_vm7, %v3791_v10 }
 0x372   : > { %3412 = vmatmul.mubr.msk.f32.gmra.mrb[16].mxu0 %vm2715_vm8, %v2706_v40 }
 0x3cd   : > { %v2813_v4 = vpop.f32.mrb[0].mxu0 }
 0x3ce   : > { %v3389_v21 = vpop.f32.mrb[1].mxu0  ;;  %v2866_v34 = vrot.slane %v2813_v4, 1 }
 0x3d1   : > { %v2818_v18 = vpop.f32.mrb[2].mxu0 }
 0x3d2   : > { %v2867_v33 = vrot.slane %v2818_v18, 1  ;;  %v3392_v7 = vpop.f32.mrb[3].mxu0 }
 0x3d4   : > { %v2868_v25 = vsel %vm687_vm0, %v2866_v34, %v2867_v33 }
 0x3d5   : > { %v2892_v27 = vmax.f32 %v2813_v4, %v2868_v25 }
 0x3d7   : > { %v2823_v35 = vpop.f32.mrb[4].mxu0 }
 0x3d8   : > { %v2869_v16 = vrot.slane %v2823_v35, 1  ;;  %v3395_v60 = vpop.f32.mrb[5].mxu0 }
 0x3da   : > { %v2870_v54 = vsel %vm687_vm0, %v2867_v33, %v2869_v16 }
 0x3db   : > { %v2893_v5 = vmax.f32 %v2818_v18, %v2870_v54 }
 0x3dd   : > { %v3461_v43 = vpack.c.bf16 %v2893_v5, %v2892_v27 }
 0x3df   : > { %3462 = vmatpush3.bf16.msra.mxu1 %v3461_v43 }
 0x3e0   : > { %3463 = vmatprep.subr.bf16.mxu1 %v3788_v47 }
 0x3fc   : > { %v2828_v62 = vpop.f32.mrb[6].mxu0 }
 0x3fd   : > { %v2871_v13 = vrot.slane %v2828_v62, 1  ;;  %v3398_v52 = vpop.f32.mrb[7].mxu0 }
 0x3ff   : > { %v2872_v61 = vsel %vm687_vm0, %v2869_v16, %v2871_v13 }
 0x400   : > { %v2894_v3 = vmax.f32 %v2823_v35, %v2872_v61 }
 0x417   : > { %v2833_v53 = vpop.f32.mrb[8].mxu0 }
 0x418   : > { %v2873_v20 = vrot.slane %v2833_v53, 1  ;;  %v3401_v19 = vpop.f32.mrb[9].mxu0 }
 0x41a   : > { %v2874_v46 = vsel %vm687_vm0, %v2871_v13, %v2873_v20 }
 0x41b   : > { %v2895_v2 = vmax.f32 %v2828_v62, %v2874_v46 }
 0x41d   : > { %v3464_v42 = vpack.c.bf16 %v2895_v2, %v2894_v3 }
 0x41f   : > { %3465 = vmatpush3.bf16.msra.mxu1 %v3464_v42 }
 0x420   : > { %3466 = vmatprep.subr.bf16.mxu1 %v3788_v47 }
 0x423   : > { %v2838_v17 = vpop.f32.mrb[10].mxu0 }
 0x424   : > { %v2875_v63 = vrot.slane %v2838_v17, 1  ;;  %v3404_v32 = vpop.f32.mrb[11].mxu0 }
 0x426   : > { %v2876_v45 = vsel %vm687_vm0, %v2873_v20, %v2875_v63 }
 0x427   : > { %v2896_v12 = vmax.f32 %v2833_v53, %v2876_v45 }
 0x432   : > { %v2843_v22 = vpop.f32.mrb[12].mxu0 }
 0x433   : > { %v2877_v59 = vrot.slane %v2843_v22, 1  ;;  %v3407_v48 = vpop.f32.mrb[13].mxu0 }
 0x435   : > { %v2878_v29 = vsel %vm687_vm0, %v2875_v63, %v2877_v59 }
 0x436   : > { %v2897_v39 = vmax.f32 %v2838_v17, %v2878_v29 }
 0x438   : > { %v3467_v58 = vpack.c.bf16 %v2897_v39, %v2896_v12 }
 0x43a   : > { %3468 = vmatpush3.bf16.msra.mxu1 %v3467_v58 }
 0x43b   : > { %3469 = vmatprep.subr.bf16.mxu1 %v3788_v47  ;;  %v2902_v47 = vld [vmem:[#allocation9 + $0x8] sm:$0xff] }
 0x441   : > { %v2848_v50 = vpop.f32.mrb[14].mxu0 }
 0x442   : > { %v2879_v41 = vrot.slane %v2848_v50, 1  ;;  %v3410_v36 = vpop.f32.mrb[15].mxu0 }
 0x444   : > { %v2880_v26 = vsel %vm687_vm0, %v2877_v59, %v2879_v41 }
 0x445   : > { %v2853_v14 = vpop.f32.mrb[16].mxu0  ;;  %v2898_v56 = vmax.f32 %v2843_v22, %v2880_v26 }
 0x446   : > { %v2881_v57 = vrot.slane %v2853_v14, 1  ;;  %v3413_v49 = vpop.f32.mrb[17].mxu0 }
 0x448   : > { %v2882_v55 = vsel %vm687_vm0, %v2879_v41, %v2881_v57  ;;  %v2900_v38 = vmax.f32 %v2853_v14, %v2881_v57 }
 0x449   : > { %v2899_v28 = vmax.f32 %v2848_v50, %v2882_v55 }
 0x44b   : > { %v3470_v30 = vpack.c.bf16 %v2899_v28, %v2898_v56 }
 0x44d   : > { %3471 = vmatpush3.bf16.msra.mxu1 %v3470_v30 }
 0x44e   : > { %3430 = vmatprep.subr.mxu1 %v3791_v10 }
 0x451   : > { %3431 = vmatpush3.msk.msra.mxu1 %vm687_vm0, %v2900_v38 }
 0x452   : > { %3433 = vmatmul.mubr.msk.f32.vlgmr.msra.gmra.mrb[0].mxu1 %vm2906_vm9, %v2901_v44 }
 0x453   : > { %3435 = vmatprep.mubr.msk.f32.mxu1 %vm3790_vm7, %v3791_v10 }
 0x456   : > { %3436 = vmatmul.mubr.msk.f32.gmra.mrb[2].mxu1 %vm2906_vm9, %v2902_v47 }
 0x457   : > { %3438 = vmatprep.mubr.msk.f32.mxu1 %vm3790_vm7, %v3791_v10 }
 0x45a   : > { %3439 = vmatmul.mubr.msk.f32.gmra.mrb[4].mxu1 %vm2906_vm9, %v2903_v9 }
 0x45b   : > { %3441 = vmatprep.mubr.msk.f32.mxu1 %vm3790_vm7, %v3791_v10 }
 0x45e   : > { %3442 = vmatmul.mubr.msk.f32.gmra.mrb[6].mxu1 %vm2906_vm9, %v2904_v37 }
 0x45f   : > { %3444 = vmatprep.mubr.msk.f32.mxu1 %vm3790_vm7, %v3791_v10 }
 0x462   : > { %3445 = vmatmul.mubr.msk.f32.gmra.mrb[8].mxu1 %vm2906_vm9, %v2905_v31 }
 0x525   : > { %v2991_v51 = vpop.f32.mrb[0].mxu1 }
 0x526   : > { %3015 = vst [vmem:[%s294_s26] sm:$0xff] %v2991_v51  ;;  %v3434_v0 = vpop.f32.mrb[1].mxu1 }
 0x529   : > { %v2996_v23 = vpop.f32.mrb[2].mxu1 }
 0x52a   : > { %3016 = vst [vmem:[%s294_s26 + $0x8] sm:$0xff] %v2996_v23  ;;  %v3437_v8 = vpop.f32.mrb[3].mxu1 }
 0x52d   : > { %v3001_v11 = vpop.f32.mrb[4].mxu1 }
 0x52e   : > { %3017 = vst [vmem:[%s294_s26 + $0x10] sm:$0xff] %v3001_v11  ;;  %v3440_v6 = vpop.f32.mrb[5].mxu1 }
 0x531   : > { %v3006_v24 = vpop.f32.mrb[6].mxu1 }
 0x532   : > { %3018 = vst [vmem:[%s294_s26 + $0x18] sm:$0xff] %v3006_v24  ;;  %v3443_v10 = vpop.f32.mrb[7].mxu1 }
 0x535   : > { %v3011_v1 = vpop.f32.mrb[8].mxu1 }
 0x536   : > { %3019 = vst [vmem:[%s294_s26 + $0x20] sm:$0xff] %v3011_v1  ;;  %v3446_v15 = vpop.f32.mrb[9].mxu1 }
 0x537   : > { %3706 = shalt.err (!%p3703_p2)
}
 0x538   : > { %s3707_s27 = scalar_lea.hbm %s6637_s23, 640  ;;  %s3711_s12 = scalar_lea.hbm %s6686_s5, 1280 }
 0x539   : > { %p3708_p4 = scmp.ne.s32.totalorder %s6637_s23, %s3707_s27  ;;  %p3712_p10 = scmp.lt.u32.totalorder %s6637_s23, %s6686_s5 }
 0x53a   : > { %p3713_p12 = scmp.lt.u32.totalorder %s3711_s12, %s3707_s27  ;;  %p3715_p7 = scmp.lt.u32.totalorder %s3707_s27, %s6637_s23 }
 0x53b   : > { %p3709_p8 = pnand %p3708_p4, %p3967_p6 }
 0x53c   : > { %p3714_p3 = por %p3713_p12, %p3712_p10 }
 0x53d   : > { %p3710_p11 = pneg %p3709_p8 }
 0x53e   : > { %p3716_p9 = por %p3715_p7, %p3714_p3 }
 0x540   : > { %p3717_p13 = pnand %p3716_p9, %p3710_p11 }
 0x542   : > { %3720 = shalt.err (!%p3717_p13)
}
 0x543   : > { %s3793_s30 = smov 128   ;;  %s3794_s7 = smov 8  }
 0x544   : > { %3492 = dma.vmem_to_hbm [thread:$0]  (%p3967_p6), %s6632_s24, 640, %s6637_s23, %s3021_s14, %s3793_s30, %s3793_s30, %s3794_s7  }
 0x545 PF: > { %s3049_s11 = sand.u32 1, %s3763_s18   ;;  %p7161_p0 = scmp.ne.s32.totalorder %s6750_s25, 0 }
 0x546   : > { %p7162_p5 = scmp.ge.s32.totalorder %s3775_s21, 2  ;;  %s3050_s10 = scalar_lea.sflag [#allocation4], %s3049_s11 }
 0x548   : > { %p3512_p1 = pnand %p7162_p5, %p7161_p0 }
 0x54a   : > { %3758 = dma.done.wait (!%p3512_p1), %s3050_s10, 640  }
 0x54b   : > { %3760 = vsyncadd (!%p3512_p1), %s3050_s10, 4294966656  ;;  %p19_p2 = scmp.ge.s32.totalorder %s3957_s29, 4   ;;  %s7163_s18 = smov %s3767_s19 }
 0x54c   : > { %s7164_s19 = smov %s3771_s20  ;;  %s7165_s20 = smov %s3973_s9 }
 0x54d   : > { %s7166_s21 = smov %s3957_s29  ;;  %21 = sbr.rel (!%p19_p2) target bundleno = 7 (0x7), region = 102 }
 0x554   :  { %3055 = vsyncpa [#allocation3], 1 }
 0x555   :  { %3057 = vsyncpa [#allocation3 + $0x1], 1 }
 0x556   :  { %3058 = vsyncpa [#allocation10], 1 }
 0x557   :  { %3059 = vsyncpa [#allocation4], 1 }
 0x558   :  { %3061 = vsyncpa [#allocation4 + $0x1], 1 }
 0x559   :  { %3062 = vsyncpa [#allocation5], 1 }
 0x55a   :  { %3064 = vsyncpa [#allocation5 + $0x1], 1 }
 0x55b   :  { %3065 = vsyncpa [#allocation6], 1 }
 0x55c   :  { %3067 = vsyncpa [#allocation6 + $0x1], 1 }

</bundles_post_ra>
